<compile_context>
chip_gen: v6e
topology: v6e:2x2x1
jax: 0.10.0
libtpu: 0.0.40
codegen_flags: <defaults>
</compile_context>

<pallas_src>
import jax
import jax.numpy as jnp
from jax.experimental import pallas as pl
from jax.experimental.pallas import tpu as pltpu

KH = KW = 5
PAD = 2
CIN = 1
COUT = 16
POOL = 2
NPOOL = POOL * POOL            # 4 pool-window offsets
KTAPS = KH * KW                # 25 conv taps
KPACK = NPOOL * KTAPS          # 100 packed contraction dim
CPACK = NPOOL * COUT           # 64 packed conv-output "channels"
NUM_CLASSES = 24
H = W = 28
HO = WO = 14                   # spatial size after 2x2 max-pool
IMG_ROWS = HO * WO             # 196 pooled pixels per image
FEAT = IMG_ROWS * COUT         # 3136


def _round_up(x, m):
    return (x + m - 1) // m * m


def _choose_imgs_per_block(n):
    """Whole images per convpool grid step.

    Large batches get 64-image (12544-row) tiles when that keeps batch-padding
    waste <= ~12.5%; small batches get a single block of the whole padded
    batch.  Always a multiple of 4 => TM = 196*k is a multiple of 784 = 16*49,
    so the bf16 patch block is 16-sublane aligned and no patch padding exists.
    """
    if n < 64:
        return _round_up(n, 4)
    for k in (64, 32, 16, 8, 4):
        if (_round_up(n, k) - n) * 8 <= n:
            return k
    return 4


def _choose_fc_rows(n_pad):
    """FC row tile: largest 16-aligned candidate dividing n_pad, else one block."""
    for c in (512, 256, 128, 64, 32, 16):
        if n_pad % c == 0:
            return c
    return n_pad


# ----------------------------- Pallas kernels ------------------------------ #
def _convpool_kernel(p_ref, w_ref, t_ref, o_ref):
    """Conv (packed im2col matmul) + folded BN + ReLU + 2x2 max-pool.

    p_ref: (TM, 100) bf16  packed patches, col = pool_offset*25 + tap
    w_ref: (100, 64) bf16  block-diagonal conv weight, BN scale pre-folded
    t_ref: (1, 64)   f32   fused BN shift, tiled over the 4 pool offsets
    o_ref: (TM, 16)  bf16  pooled features (channels on lanes)
    """
    y = jnp.dot(p_ref[...], w_ref[...], preferred_element_type=jnp.float32)
    y = jnp.maximum(y + t_ref[...], 0.0)           # BN shift + ReLU (scale in w)
    # 2x2 max-pool == max over the 4 groups of 16 output lanes (VPU has slack).
    pooled = jnp.maximum(
        jnp.maximum(y[:, 0 * COUT:1 * COUT], y[:, 1 * COUT:2 * COUT]),
        jnp.maximum(y[:, 2 * COUT:3 * COUT], y[:, 3 * COUT:4 * COUT]))
    o_ref[...] = pooled.astype(o_ref.dtype)


def _fc_kernel(x_ref, w_ref, b_ref, o_ref):
    """Linear layer tile: (TN, 3136) bf16 @ (3136, 24) bf16 + bias, f32 acc."""
    o_ref[...] = (jnp.dot(x_ref[...], w_ref[...],
                          preferred_element_type=jnp.float32) + b_ref[...])


# ------------------------------- JAX glue ---------------------------------- #
def _extract_pool_patches(x):
    """x: (N,1,28,28) NCHW f32 -> (N*196, 100) bf16 packed im2col patches.

    Row m = n*196 + i*14 + j (pooled pixel); col = (di*2+dj)*25 + (dy*5+dx).
    Built directly in pooled order via stride-2 slices of the padded image,
    so no 6-D transpose / extra HBM relayout pass is needed.
    """
    n = x.shape[0]
    xb = x[:, 0].astype(jnp.bfloat16)                              # (N, 28, 28)
    xp = jnp.pad(xb, ((0, 0), (PAD, PAD), (PAD, PAD)))             # (N, 32, 32)
    cols = []
    for di in range(POOL):
        for dj in range(POOL):
            for dy in range(KH):
                for dx in range(KW):
                    s0, s1 = di + dy, dj + dx
                    cols.append(jax.lax.slice(
                        xp, (0, s0, s1),
                        (n, s0 + 2 * (HO - 1) + 1, s1 + 2 * (WO - 1) + 1),
                        (1, POOL, POOL)))                          # (N, 14, 14)
    taps = jnp.stack(cols, axis=-1)                                # (N, 14, 14, 100)
    return taps.reshape(n * IMG_ROWS, KPACK)                       # (M, 100)


def prepare_params(conv_w, conv_b, gamma, beta, run_mean, run_var, eps,
                   fc_w, fc_b):
    """One-time repacking of the PyTorch-layout params (outside the hot path)."""
    scale = gamma / jnp.sqrt(run_var + eps)                        # (16,)
    shift = beta + (conv_b - run_mean) * scale                     # (16,)
    # Fold BN scale into the conv weight BEFORE the bf16 cast.
    w_taps = (conv_w.reshape(COUT, KTAPS) * scale[:, None]).T      # (25, 16) f32
    wz = jnp.zeros((NPOOL, KTAPS, NPOOL, COUT), jnp.float32)
    for a in range(NPOOL):                                         # block-diagonal
        wz = wz.at[a, :, a, :].set(w_taps)
    w_packed = wz.reshape(KPACK, CPACK).astype(jnp.bfloat16)       # (100, 64)
    shift64 = jnp.tile(shift, NPOOL).reshape(1, CPACK).astype(jnp.float32)

    # fc1 columns permuted from NCHW flatten order (c*196 + p) to the
    # channels-last order (p*16 + c) produced by the conv kernel's output slab.
    fc_w_perm = (fc_w.reshape(NUM_CLASSES, COUT, HO * WO)
                 .transpose(2, 1, 0)
                 .reshape(FEAT, NUM_CLASSES).astype(jnp.bfloat16)) # (3136, 24)
    fc_b_row = fc_b.reshape(1, NUM_CLASSES).astype(jnp.float32)
    return w_packed, shift64, fc_w_perm, fc_b_row


@jax.jit
def convnet_forward(x, w_packed, shift64, fc_w_perm, fc_b_row):
    n = x.shape[0]
    k_img = _choose_imgs_per_block(n)
    n_pad = _round_up(n, k_img)
    if n_pad > n:
        # Pad the cheap raw images (~3 KB/image) instead of the 25x-amplified
        # patch / feature tensors.  Padded rows produce garbage logits that are
        # sliced off at the end (keep the [:n] slice if this is refactored).
        x = jnp.pad(x, ((0, n_pad - n), (0, 0), (0, 0), (0, 0)))

    patches = _extract_pool_patches(x)                             # (M, 100) bf16
    m = n_pad * IMG_ROWS
    tm = k_img * IMG_ROWS              # whole images per block, multiple of 784

    pooled = pl.pallas_call(
        _convpool_kernel,
        out_shape=jax.ShapeDtypeStruct((m, COUT), jnp.bfloat16),
        grid=(m // tm,),
        in_specs=[
            pl.BlockSpec((tm, KPACK), lambda i: (i, 0)),           # patch stream
            pl.BlockSpec((KPACK, CPACK), lambda i: (0, 0)),        # resident weight
            pl.BlockSpec((1, CPACK), lambda i: (0, 0)),            # BN shift
        ],
        out_specs=pl.BlockSpec((tm, COUT), lambda i: (i, 0)),
        compiler_params=pltpu.CompilerParams(
            dimension_semantics=("parallel",),
            vmem_limit_bytes=32 * 1024 * 1024),
    )(patches, w_packed, shift64)

    # Bit-identical flatten: pooled[n*196+p, c] -> feat[n, p*16+c].
    feat = pooled.reshape(n_pad, FEAT)                             # (n_pad, 3136) bf16

    tn = _choose_fc_rows(n_pad)
    logits = pl.pallas_call(
        _fc_kernel,
        out_shape=jax.ShapeDtypeStruct((n_pad, NUM_CLASSES), jnp.float32),
        grid=(n_pad // tn,),
        in_specs=[
            pl.BlockSpec((tn, FEAT), lambda i: (i, 0)),            # feature rows
            pl.BlockSpec((FEAT, NUM_CLASSES), lambda i: (0, 0)),   # resident fc_w
            pl.BlockSpec((1, NUM_CLASSES), lambda i: (0, 0)),      # bias
        ],
        out_specs=pl.BlockSpec((tn, NUM_CLASSES), lambda i: (i, 0)),
        compiler_params=pltpu.CompilerParams(
            dimension_semantics=("parallel",),
            vmem_limit_bytes=32 * 1024 * 1024),
    )(feat, fc_w_perm, fc_b_row)
    return logits[:n]


def _reference(x, conv_w, conv_b, gamma, beta, run_mean, run_var, eps,
               fc_w, fc_b):
    y = jax.lax.conv_general_dilated(
        x, conv_w, window_strides=(1, 1), padding=((PAD, PAD), (PAD, PAD)),
        dimension_numbers=("NCHW", "OIHW", "NCHW"))
    y = y + conv_b[None, :, None, None]
    y = (y - run_mean[None, :, None, None]) * jax.lax.rsqrt(
        run_var[None, :, None, None] + eps)
    y = y * gamma[None, :, None, None] + beta[None, :, None, None]
    y = jnp.maximum(y, 0.0)
    y = jax.lax.reduce_window(y, -jnp.inf, jax.lax.max,
                              (1, 1, POOL, POOL), (1, 1, POOL, POOL), "VALID")
    y = y.reshape(x.shape[0], -1)
    return y @ fc_w.T + fc_b


# --------------------------------- main ------------------------------------ #
if __name__ == "__main__":
    key = jax.random.PRNGKey(0)
    kx, kw, kb, kg, kbe, km, kv, kfw, kfb = jax.random.split(key, 9)

    N = 2
    eps = 1e-5
    x = jax.random.normal(kx, (N, CIN, H, W), jnp.float32)

    conv_w = 0.1 * jax.random.normal(kw, (COUT, CIN, KH, KW), jnp.float32)
    conv_b = 0.1 * jax.random.normal(kb, (COUT,), jnp.float32)
    gamma = 1.0 + 0.1 * jax.random.normal(kg, (COUT,), jnp.float32)
    beta = 0.1 * jax.random.normal(kbe, (COUT,), jnp.float32)
    run_mean = 0.1 * jax.random.normal(km, (COUT,), jnp.float32)
    run_var = jnp.abs(jax.random.normal(kv, (COUT,), jnp.float32)) + 0.5
    fc_w = 0.02 * jax.random.normal(kfw, (NUM_CLASSES, FEAT), jnp.float32)
    fc_b = 0.02 * jax.random.normal(kfb, (NUM_CLASSES,), jnp.float32)

    params = prepare_params(conv_w, conv_b, gamma, beta, run_mean, run_var,
                            eps, fc_w, fc_b)
    out = convnet_forward(x, *params)
    out = jax.block_until_ready(out)

    ref = _reference(x, conv_w, conv_b, gamma, beta, run_mean, run_var, eps,
                     fc_w, fc_b)
    assert out.shape == (N, NUM_CLASSES), out.shape
    # bf16 patch/weight/feature streaming (f32 accumulate) -> loose tolerance.
    assert jnp.allclose(out, ref, atol=2e-2, rtol=2e-2), "mismatch vs reference"
    print("KERNEL_OK")
</pallas_src>

<mosaic_0001>
module attributes {stable_mosaic.version = 11 : i64} {
  func.func @_convpool_kernel(%arg0: i32, %arg1: memref<784x100xbf16, #tpu.memory_space<vmem>>, %arg2: memref<100x64xbf16, #tpu.memory_space<vmem>>, %arg3: memref<1x64xf32, #tpu.memory_space<vmem>>, %arg4: memref<784x16xbf16, #tpu.memory_space<vmem>>) attributes {dimension_semantics = [#tpu.dimension_semantics<parallel>], iteration_bounds = array<i64: 1>, scalar_prefetch = 0 : i64, scratch_operands = 0 : i64, tpu.core_type = #tpu.core_type<tc>, window_params = [{transform_indices = @transform_0, window_bounds = array<i64: 784, 100>}, {pipeline_mode = #tpu.pipeline_mode<synchronous>, transform_indices = @transform_1, window_bounds = array<i64: 100, 64>}, {pipeline_mode = #tpu.pipeline_mode<synchronous>, transform_indices = @transform_2, window_bounds = array<i64: 1, 64>}, {transform_indices = @transform_3, window_bounds = array<i64: 784, 16>}]} {
    %c0 = arith.constant 0 : index
    %c0_0 = arith.constant 0 : index
    %0 = vector.load %arg1[%c0, %c0_0] : memref<784x100xbf16, #tpu.memory_space<vmem>>, vector<784x100xbf16>
    %c0_1 = arith.constant 0 : index
    %c0_2 = arith.constant 0 : index
    %1 = vector.load %arg2[%c0_1, %c0_2] : memref<100x64xbf16, #tpu.memory_space<vmem>>, vector<100x64xbf16>
    %cst = arith.constant dense<0.000000e+00> : vector<784x64xf32>
    %2 = tpu.matmul %0, %1, %cst {dimension_numbers = #tpu.dot_dimension_numbers<[1], [0], [0], [1], [0, 0, 1, 1], [], []>} : vector<784x100xbf16>, vector<100x64xbf16>, vector<784x64xf32> -> vector<784x64xf32>
    %c0_3 = arith.constant 0 : index
    %c0_4 = arith.constant 0 : index
    %3 = vector.load %arg3[%c0_3, %c0_4] : memref<1x64xf32, #tpu.memory_space<vmem>>, vector<1x64xf32>
    %4 = vector.broadcast %3 : vector<1x64xf32> to vector<784x64xf32>
    %5 = arith.addf %2, %4 : vector<784x64xf32>
    %cst_5 = arith.constant 0.000000e+00 : f32
    %6 = vector.broadcast %cst_5 : f32 to vector<784x64xf32>
    %7 = arith.maximumf %5, %6 : vector<784x64xf32>
    %8 = vector.extract_strided_slice %7 {offsets = [0, 0], sizes = [784, 16], strides = [1, 1]} : vector<784x64xf32> to vector<784x16xf32>
    %9 = vector.extract_strided_slice %7 {offsets = [0, 16], sizes = [784, 16], strides = [1, 1]} : vector<784x64xf32> to vector<784x16xf32>
    %10 = arith.maximumf %8, %9 : vector<784x16xf32>
    %11 = vector.extract_strided_slice %7 {offsets = [0, 32], sizes = [784, 16], strides = [1, 1]} : vector<784x64xf32> to vector<784x16xf32>
    %12 = vector.extract_strided_slice %7 {offsets = [0, 48], sizes = [784, 16], strides = [1, 1]} : vector<784x64xf32> to vector<784x16xf32>
    %13 = arith.maximumf %11, %12 : vector<784x16xf32>
    %14 = arith.maximumf %10, %13 : vector<784x16xf32>
    %15 = arith.truncf %14 : vector<784x16xf32> to vector<784x16xbf16>
    %c0_6 = arith.constant 0 : index
    %c0_7 = arith.constant 0 : index
    %16 = vector.load %arg4[%c0_6, %c0_7] : memref<784x16xbf16, #tpu.memory_space<vmem>>, vector<784x16xbf16>
    tpu.vector_store %arg4[%c0_6, %c0_7], %15 {strides = array<i32>} : memref<784x16xbf16, #tpu.memory_space<vmem>>, vector<784x16xbf16>,
    return
  }
  func.func @transform_0(%arg0: i32) -> (i32, i32) {
    %c0_i32 = arith.constant 0 : i32
    %c0_i32_0 = arith.constant 0 : i32
    return %arg0, %c0_i32 : i32, i32
  }
  func.func @transform_1(%arg0: i32) -> (i32, i32) {
    %c0_i32 = arith.constant 0 : i32
    %c0_i32_0 = arith.constant 0 : i32
    %c0_i32_1 = arith.constant 0 : i32
    return %c0_i32, %c0_i32_0 : i32, i32
  }
  func.func @transform_2(%arg0: i32) -> (i32, i32) {
    %c0_i32 = arith.constant 0 : i32
    %c0_i32_0 = arith.constant 0 : i32
    %c0_i32_1 = arith.constant 0 : i32
    return %c0_i32, %c0_i32_0 : i32, i32
  }
  func.func @transform_3(%arg0: i32) -> (i32, i32) {
    %c0_i32 = arith.constant 0 : i32
    %c0_i32_0 = arith.constant 0 : i32
    return %arg0, %c0_i32 : i32, i32
  }
}

module attributes {stable_mosaic.version = 11 : i64} {
  func.func @_fc_kernel(%arg0: i32, %arg1: memref<4x3136xbf16, #tpu.memory_space<vmem>>, %arg2: memref<3136x24xbf16, #tpu.memory_space<vmem>>, %arg3: memref<1x24xf32, #tpu.memory_space<vmem>>, %arg4: memref<4x24xf32, #tpu.memory_space<vmem>>) attributes {dimension_semantics = [#tpu.dimension_semantics<parallel>], iteration_bounds = array<i64: 1>, scalar_prefetch = 0 : i64, scratch_operands = 0 : i64, tpu.core_type = #tpu.core_type<tc>, window_params = [{transform_indices = @transform_0, window_bounds = array<i64: 4, 3136>}, {pipeline_mode = #tpu.pipeline_mode<synchronous>, transform_indices = @transform_1, window_bounds = array<i64: 3136, 24>}, {pipeline_mode = #tpu.pipeline_mode<synchronous>, transform_indices = @transform_2, window_bounds = array<i64: 1, 24>}, {transform_indices = @transform_3, window_bounds = array<i64: 4, 24>}]} {
    %c0 = arith.constant 0 : index
    %c0_0 = arith.constant 0 : index
    %0 = vector.load %arg1[%c0, %c0_0] : memref<4x3136xbf16, #tpu.memory_space<vmem>>, vector<4x3136xbf16>
    %c0_1 = arith.constant 0 : index
    %c0_2 = arith.constant 0 : index
    %1 = vector.load %arg2[%c0_1, %c0_2] : memref<3136x24xbf16, #tpu.memory_space<vmem>>, vector<3136x24xbf16>
    %cst = arith.constant dense<0.000000e+00> : vector<4x24xf32>
    %2 = tpu.matmul %0, %1, %cst {dimension_numbers = #tpu.dot_dimension_numbers<[1], [0], [0], [1], [0, 0, 1, 1], [], []>} : vector<4x3136xbf16>, vector<3136x24xbf16>, vector<4x24xf32> -> vector<4x24xf32>
    %c0_3 = arith.constant 0 : index
    %c0_4 = arith.constant 0 : index
    %3 = vector.load %arg3[%c0_3, %c0_4] : memref<1x24xf32, #tpu.memory_space<vmem>>, vector<1x24xf32>
    %4 = vector.broadcast %3 : vector<1x24xf32> to vector<4x24xf32>
    %5 = arith.addf %2, %4 : vector<4x24xf32>
    %c0_5 = arith.constant 0 : index
    %c0_6 = arith.constant 0 : index
    %6 = vector.load %arg4[%c0_5, %c0_6] : memref<4x24xf32, #tpu.memory_space<vmem>>, vector<4x24xf32>
    tpu.vector_store %arg4[%c0_5, %c0_6], %5 {strides = array<i32>} : memref<4x24xf32, #tpu.memory_space<vmem>>, vector<4x24xf32>,
    return
  }
  func.func @transform_0(%arg0: i32) -> (i32, i32) {
    %c0_i32 = arith.constant 0 : i32
    %c0_i32_0 = arith.constant 0 : i32
    return %arg0, %c0_i32 : i32, i32
  }
  func.func @transform_1(%arg0: i32) -> (i32, i32) {
    %c0_i32 = arith.constant 0 : i32
    %c0_i32_0 = arith.constant 0 : i32
    %c0_i32_1 = arith.constant 0 : i32
    return %c0_i32, %c0_i32_0 : i32, i32
  }
  func.func @transform_2(%arg0: i32) -> (i32, i32) {
    %c0_i32 = arith.constant 0 : i32
    %c0_i32_0 = arith.constant 0 : i32
    %c0_i32_1 = arith.constant 0 : i32
    return %c0_i32, %c0_i32_0 : i32, i32
  }
  func.func @transform_3(%arg0: i32) -> (i32, i32) {
    %c0_i32 = arith.constant 0 : i32
    %c0_i32_0 = arith.constant 0 : i32
    return %arg0, %c0_i32 : i32, i32
  }
}

</mosaic_0001>

<bundles_post_ra>
// kernel: convnet_forward.2
= control target key start
LH: loop header
LB: loop body
LE: loop exit
PB: predicated region body
PF: predicated region fallthrough
CT: control target
= control target key end

     0   :  { %vm565_vm0 = vcmask 1041408   ;;  %v3700_v0 = vmov 0.0   ;;  %vm3701_vm1 = vmmov 0   ;;  %vm417_vm2 = vcmask 818176   ;;  %s3703_s14 = smov 96   ;;  %s5729_s1 = inlined_call_operand.vmem [shape: bf16[100,64], index: 1, kind: input, shape index: {}]   ;;  %s5730_s0 = inlined_call_operand.vmem [shape: bf16[784,100], index: 0, kind: input, shape index: {}]   ;;  %s5731_s2 = inlined_call_operand.vmem [shape: f32[1,64], index: 2, kind: input, shape index: {}]   ;;  %s5732_s3 = inlined_call_operand.vmem [shape: bf16[784,16], index: 3, kind: output, shape index: {}]  }
   0x1   :  { %2925 = vmatprep.subr.bf16.mxu0 %v3700_v0  ;;  %3135 = vmatprep.subr.bf16.mxu1 %v3700_v0  ;;  %v3643_v1 = vld [vmem:[%s5729_s1 + $0x30] ss:$0 sps:$4 sm:$0x33]   ;;  %v3644_v3 = vld [vmem:[%s5729_s1 + $0x28] sm:$0xff]   ;;  %v3645_v4 = vld [vmem:[%s5729_s1 + $0x20] sm:$0xff]   ;;  %vm2464_vm3 = vcmask 125952  }
   0x2   :  { %2939 = vmatprep.mubr.msk.bf16.mxu0 %vm3701_vm1, %v3700_v0  ;;  %3039 = vmatprep.mubr.msk.bf16.mxu1 %vm3701_vm1, %v3700_v0  ;;  %v567_v2 = vsel %vm565_vm0, %v3643_v1, 0  ;;  %v3646_v5 = vld [vmem:[%s5729_s1 + $0x18] sm:$0xff]   ;;  %v3647_v6 = vld [vmem:[%s5729_s1 + $0x10] sm:$0xff]   ;;  %v3648_v7 = vld [vmem:[%s5729_s1 + $0x8] sm:$0xff]  }
   0x3   :  { %2926 = vmatpush3.bf16.msra.mxu0 %v567_v2  ;;  %3142 = vmatpush3.bf16.msra.mxu1 %v567_v2  ;;  %v3649_v8 = vld [vmem:[%s5729_s1] sm:$0xff]   ;;  %v3651_v10 = vld [vmem:[%s5730_s0 + $0xc8] sm:$0xff]   ;;  %v3653_v12 = vld [vmem:[%s5730_s0 + $0xd0] sm:$0xff]  }
   0x4   :  { %2927 = vmatprep.subr.bf16.mxu0 %v3700_v0  ;;  %3136 = vmatprep.subr.bf16.mxu1 %v3700_v0  ;;  %v3650_v9 = vld [vmem:[%s5730_s0] sm:$0xff]   ;;  %v3652_v11 = vld [vmem:[%s5730_s0 + $0x8] sm:$0xff]   ;;  %v3654_v13 = vld [vmem:[%s5730_s0 + $0x10] sm:$0xff]  }
   0x5   :  { %v3655_v14 = vld [vmem:[%s5730_s0 + $0xd8] sm:$0xff]   ;;  %v3657_v16 = vld [vmem:[%s5730_s0 + $0xe0] sm:$0xff]   ;;  %v3659_v18 = vld [vmem:[%s5730_s0 + $0xe8] sm:$0xff]  }
   0x6   :  { %v3656_v15 = vld [vmem:[%s5730_s0 + $0x18] sm:$0xff]   ;;  %v3658_v17 = vld [vmem:[%s5730_s0 + $0x20] sm:$0xff]   ;;  %v3660_v19 = vld [vmem:[%s5730_s0 + $0x28] sm:$0xff]  }
   0x7   :  { %2928 = vmatpush3.bf16.msra.mxu0 %v3644_v3  ;;  %3143 = vmatpush3.bf16.msra.mxu1 %v3644_v3  ;;  %v3661_v20 = vld [vmem:[%s5730_s0 + $0xf0] sm:$0xff]   ;;  %v3663_v22 = vld [vmem:[%s5730_s0 + $0xf8] sm:$0xff]   ;;  %v3665_v24 = vld [vmem:[%s5730_s0 + $0x100] sm:$0xff]  }
   0x8   :  { %2929 = vmatprep.subr.bf16.mxu0 %v3700_v0  ;;  %3137 = vmatprep.subr.bf16.mxu1 %v3700_v0  ;;  %v3662_v21 = vld [vmem:[%s5730_s0 + $0x30] sm:$0xff]   ;;  %v3664_v23 = vld [vmem:[%s5730_s0 + $0x38] sm:$0xff]   ;;  %v3666_v25 = vld [vmem:[%s5730_s0 + $0x40] sm:$0xff]  }
   0x9   :  { %v3667_v26 = vld [vmem:[%s5730_s0 + $0x108] sm:$0xff]   ;;  %v3669_v28 = vld [vmem:[%s5730_s0 + $0x110] sm:$0xff]   ;;  %v3671_v30 = vld [vmem:[%s5730_s0 + $0x118] sm:$0xff]  }
   0xa   :  { %v3668_v27 = vld [vmem:[%s5730_s0 + $0x48] sm:$0xff]   ;;  %v3670_v29 = vld [vmem:[%s5730_s0 + $0x50] sm:$0xff]   ;;  %v3672_v31 = vld [vmem:[%s5730_s0 + $0x58] sm:$0xff]  }
   0xb   :  { %2930 = vmatpush3.bf16.msra.mxu0 %v3645_v4  ;;  %3144 = vmatpush3.bf16.msra.mxu1 %v3645_v4  ;;  %v3673_v32 = vld [vmem:[%s5730_s0 + $0x120] sm:$0xff]   ;;  %v3675_v34 = vld [vmem:[%s5730_s0 + $0x128] sm:$0xff]   ;;  %v3677_v36 = vld [vmem:[%s5730_s0 + $0x130] sm:$0xff]  }
   0xc   :  { %2931 = vmatprep.subr.bf16.mxu0 %v3700_v0  ;;  %3138 = vmatprep.subr.bf16.mxu1 %v3700_v0  ;;  %v3674_v33 = vld [vmem:[%s5730_s0 + $0x60] sm:$0xff]   ;;  %v3676_v35 = vld [vmem:[%s5730_s0 + $0x68] sm:$0xff]   ;;  %v3678_v37 = vld [vmem:[%s5730_s0 + $0x70] sm:$0xff]  }
   0xd   :  { %v3679_v38 = vld [vmem:[%s5730_s0 + $0x138] sm:$0xff]   ;;  %v3681_v40 = vld [vmem:[%s5730_s0 + $0x140] sm:$0xff]   ;;  %v3683_v42 = vld [vmem:[%s5730_s0 + $0x148] sm:$0xff]  }
   0xe   :  { %v3680_v39 = vld [vmem:[%s5730_s0 + $0x78] sm:$0xff]   ;;  %v3682_v41 = vld [vmem:[%s5730_s0 + $0x80] sm:$0xff]   ;;  %v3684_v43 = vld [vmem:[%s5730_s0 + $0x88] sm:$0xff]  }
   0xf   :  { %2932 = vmatpush3.bf16.msra.mxu0 %v3646_v5  ;;  %3145 = vmatpush3.bf16.msra.mxu1 %v3646_v5  ;;  %v3685_v44 = vld [vmem:[%s5730_s0 + $0x150] sm:$0xff]   ;;  %v3687_v46 = vld [vmem:[%s5730_s0 + $0x158] sm:$0xff]   ;;  %v3689_v48 = vld [vmem:[%s5730_s0 + $0x160] sm:$0xff]  }
  0x10   :  { %2933 = vmatprep.subr.bf16.mxu0 %v3700_v0  ;;  %3139 = vmatprep.subr.bf16.mxu1 %v3700_v0  ;;  %v3686_v45 = vld [vmem:[%s5730_s0 + $0x90] sm:$0xff]   ;;  %v3688_v47 = vld [vmem:[%s5730_s0 + $0x98] sm:$0xff]   ;;  %v3690_v49 = vld [vmem:[%s5730_s0 + $0xa0] sm:$0xff]  }
  0x11   :  { %v3691_v50 = vld [vmem:[%s5730_s0 + $0x168] sm:$0xff]   ;;  %v3693_v52 = vld [vmem:[%s5730_s0 + $0x170] sm:$0xff]   ;;  %v3695_v54 = vld [vmem:[%s5730_s0 + $0x178] sm:$0xff]  }
  0x12   :  { %v3692_v51 = vld [vmem:[%s5730_s0 + $0xa8] sm:$0xff]   ;;  %v3694_v53 = vld [vmem:[%s5730_s0 + $0xb0] sm:$0xff]   ;;  %v3696_v55 = vld [vmem:[%s5730_s0 + $0xb8] sm:$0xff]  }
  0x13   :  { %2934 = vmatpush3.bf16.msra.mxu0 %v3647_v6  ;;  %3146 = vmatpush3.bf16.msra.mxu1 %v3647_v6  ;;  %v3697_v56 = vld [vmem:[%s5730_s0 + $0x180] sm:$0xff]  }
  0x14   :  { %2935 = vmatprep.subr.bf16.mxu0 %v3700_v0  ;;  %3140 = vmatprep.subr.bf16.mxu1 %v3700_v0  ;;  %v3698_v57 = vld [vmem:[%s5730_s0 + $0xc0] sm:$0xff]   ;;  %s3702_s0 = smov 112  }
  0x15   :  { %v4055_v58 = vld [vmem:[%s5731_s2] ss:$0 sm:$0xff] }
  0x17   :  { %2936 = vmatpush3.bf16.msra.mxu0 %v3648_v7  ;;  %3147 = vmatpush3.bf16.msra.mxu1 %v3648_v7 }
  0x18   :  { %2937 = vmatprep.subr.bf16.mxu0 %v3700_v0  ;;  %3141 = vmatprep.subr.bf16.mxu1 %v3700_v0 }
  0x1b   :  { %2938 = vmatpush3.bf16.msra.mxu0 %v3649_v8  ;;  %3148 = vmatpush3.bf16.msra.mxu1 %v3649_v8 }
  0x1e   :  { %2940 = vmatmul.mubr.msk.bf16.vlgmr.msra.gmra.mxu0 %vm417_vm2, %v3650_v9  ;;  %3040 = vmatmul.mubr.msk.bf16.vlgmr.msra.gmra.mxu1 %vm417_vm2, %v3651_v10 }
  0x1f   :  { %2943 = vmatprep.mubr.msk.bf16.mxu0 %vm3701_vm1, %v3700_v0  ;;  %3043 = vmatprep.mubr.msk.bf16.mxu1 %vm3701_vm1, %v3700_v0 }
  0x26   :  { %2944 = vmatmul.mubr.msk.bf16.gmra.mxu0 %vm417_vm2, %v3652_v11  ;;  %3044 = vmatmul.mubr.msk.bf16.gmra.mxu1 %vm417_vm2, %v3653_v12 }
  0x27   :  { %2947 = vmatprep.mubr.msk.bf16.mxu0 %vm3701_vm1, %v3700_v0  ;;  %3047 = vmatprep.mubr.msk.bf16.mxu1 %vm3701_vm1, %v3700_v0 }
  0x2e   :  { %2948 = vmatmul.mubr.msk.bf16.gmra.mxu0 %vm417_vm2, %v3654_v13  ;;  %3048 = vmatmul.mubr.msk.bf16.gmra.mxu1 %vm417_vm2, %v3655_v14 }
  0x2f   :  { %2951 = vmatprep.mubr.msk.bf16.mxu0 %vm3701_vm1, %v3700_v0  ;;  %3051 = vmatprep.mubr.msk.bf16.mxu1 %vm3701_vm1, %v3700_v0 }
  0x36   :  { %2952 = vmatmul.mubr.msk.bf16.gmra.mxu0 %vm417_vm2, %v3656_v15  ;;  %3052 = vmatmul.mubr.msk.bf16.gmra.mxu1 %vm417_vm2, %v3657_v16 }
  0x37   :  { %2955 = vmatprep.mubr.msk.bf16.mxu0 %vm3701_vm1, %v3700_v0  ;;  %3055 = vmatprep.mubr.msk.bf16.mxu1 %vm3701_vm1, %v3700_v0 }
  0x3e   :  { %2956 = vmatmul.mubr.msk.bf16.gmra.mxu0 %vm417_vm2, %v3658_v17  ;;  %3056 = vmatmul.mubr.msk.bf16.gmra.mxu1 %vm417_vm2, %v3659_v18 }
  0x3f   :  { %2959 = vmatprep.mubr.msk.bf16.mxu0 %vm3701_vm1, %v3700_v0  ;;  %3059 = vmatprep.mubr.msk.bf16.mxu1 %vm3701_vm1, %v3700_v0 }
  0x46   :  { %2960 = vmatmul.mubr.msk.bf16.gmra.mxu0 %vm417_vm2, %v3660_v19  ;;  %3060 = vmatmul.mubr.msk.bf16.gmra.mxu1 %vm417_vm2, %v3661_v20 }
  0x47   :  { %2963 = vmatprep.mubr.msk.bf16.mxu0 %vm3701_vm1, %v3700_v0  ;;  %3063 = vmatprep.mubr.msk.bf16.mxu1 %vm3701_vm1, %v3700_v0 }
  0x4e   :  { %2964 = vmatmul.mubr.msk.bf16.gmra.mxu0 %vm417_vm2, %v3662_v21  ;;  %3064 = vmatmul.mubr.msk.bf16.gmra.mxu1 %vm417_vm2, %v3663_v22 }
  0x4f   :  { %2967 = vmatprep.mubr.msk.bf16.mxu0 %vm3701_vm1, %v3700_v0  ;;  %3067 = vmatprep.mubr.msk.bf16.mxu1 %vm3701_vm1, %v3700_v0 }
  0x56   :  { %2968 = vmatmul.mubr.msk.bf16.gmra.mxu0 %vm417_vm2, %v3664_v23  ;;  %3068 = vmatmul.mubr.msk.bf16.gmra.mxu1 %vm417_vm2, %v3665_v24 }
  0x57   :  { %2971 = vmatprep.mubr.msk.bf16.mxu0 %vm3701_vm1, %v3700_v0  ;;  %3071 = vmatprep.mubr.msk.bf16.mxu1 %vm3701_vm1, %v3700_v0 }
  0x5e   :  { %2972 = vmatmul.mubr.msk.bf16.gmra.mxu0 %vm417_vm2, %v3666_v25  ;;  %3072 = vmatmul.mubr.msk.bf16.gmra.mxu1 %vm417_vm2, %v3667_v26 }
  0x5f   :  { %2975 = vmatprep.mubr.msk.bf16.mxu0 %vm3701_vm1, %v3700_v0  ;;  %3075 = vmatprep.mubr.msk.bf16.mxu1 %vm3701_vm1, %v3700_v0 }
  0x66   :  { %2976 = vmatmul.mubr.msk.bf16.gmra.mxu0 %vm417_vm2, %v3668_v27  ;;  %3076 = vmatmul.mubr.msk.bf16.gmra.mxu1 %vm417_vm2, %v3669_v28 }
  0x67   :  { %2979 = vmatprep.mubr.msk.bf16.mxu0 %vm3701_vm1, %v3700_v0  ;;  %3079 = vmatprep.mubr.msk.bf16.mxu1 %vm3701_vm1, %v3700_v0 }
  0x6e   :  { %2980 = vmatmul.mubr.msk.bf16.gmra.mxu0 %vm417_vm2, %v3670_v29  ;;  %3080 = vmatmul.mubr.msk.bf16.gmra.mxu1 %vm417_vm2, %v3671_v30 }
  0x6f   :  { %2983 = vmatprep.mubr.msk.bf16.mxu0 %vm3701_vm1, %v3700_v0  ;;  %3083 = vmatprep.mubr.msk.bf16.mxu1 %vm3701_vm1, %v3700_v0 }
  0x76   :  { %2984 = vmatmul.mubr.msk.bf16.gmra.mxu0 %vm417_vm2, %v3672_v31  ;;  %3084 = vmatmul.mubr.msk.bf16.gmra.mxu1 %vm417_vm2, %v3673_v32 }
  0x77   :  { %2987 = vmatprep.mubr.msk.bf16.mxu0 %vm3701_vm1, %v3700_v0  ;;  %3087 = vmatprep.mubr.msk.bf16.mxu1 %vm3701_vm1, %v3700_v0 }
  0x7e   :  { %2988 = vmatmul.mubr.msk.bf16.gmra.mxu0 %vm417_vm2, %v3674_v33  ;;  %3088 = vmatmul.mubr.msk.bf16.gmra.mxu1 %vm417_vm2, %v3675_v34 }
  0x7f   :  { %2991 = vmatprep.mubr.msk.bf16.mxu0 %vm3701_vm1, %v3700_v0  ;;  %3091 = vmatprep.mubr.msk.bf16.mxu1 %vm3701_vm1, %v3700_v0 }
  0x86   :  { %2992 = vmatmul.mubr.msk.bf16.gmra.mxu0 %vm417_vm2, %v3676_v35  ;;  %3092 = vmatmul.mubr.msk.bf16.gmra.mxu1 %vm417_vm2, %v3677_v36 }
  0x87   :  { %2995 = vmatprep.mubr.msk.bf16.mxu0 %vm3701_vm1, %v3700_v0  ;;  %3095 = vmatprep.mubr.msk.bf16.mxu1 %vm3701_vm1, %v3700_v0 }
  0x8e   :  { %2996 = vmatmul.mubr.msk.bf16.gmra.mxu0 %vm417_vm2, %v3678_v37  ;;  %3096 = vmatmul.mubr.msk.bf16.gmra.mxu1 %vm417_vm2, %v3679_v38 }
  0x8f   :  { %2999 = vmatprep.mubr.msk.bf16.mxu0 %vm3701_vm1, %v3700_v0  ;;  %3099 = vmatprep.mubr.msk.bf16.mxu1 %vm3701_vm1, %v3700_v0 }
  0x96   :  { %3000 = vmatmul.mubr.msk.bf16.gmra.mxu0 %vm417_vm2, %v3680_v39  ;;  %3100 = vmatmul.mubr.msk.bf16.gmra.mxu1 %vm417_vm2, %v3681_v40 }
  0x97   :  { %3003 = vmatprep.mubr.msk.bf16.mxu0 %vm3701_vm1, %v3700_v0  ;;  %3103 = vmatprep.mubr.msk.bf16.mxu1 %vm3701_vm1, %v3700_v0 }
  0x9e   :  { %3004 = vmatmul.mubr.msk.bf16.gmra.mxu0 %vm417_vm2, %v3682_v41  ;;  %3104 = vmatmul.mubr.msk.bf16.gmra.mxu1 %vm417_vm2, %v3683_v42 }
  0x9f   :  { %3007 = vmatprep.mubr.msk.bf16.mxu0 %vm3701_vm1, %v3700_v0  ;;  %3107 = vmatprep.mubr.msk.bf16.mxu1 %vm3701_vm1, %v3700_v0 }
  0xa6   :  { %3008 = vmatmul.mubr.msk.bf16.gmra.mxu0 %vm417_vm2, %v3684_v43  ;;  %3108 = vmatmul.mubr.msk.bf16.gmra.mxu1 %vm417_vm2, %v3685_v44 }
  0xa7   :  { %3011 = vmatprep.mubr.msk.bf16.mxu0 %vm3701_vm1, %v3700_v0  ;;  %3111 = vmatprep.mubr.msk.bf16.mxu1 %vm3701_vm1, %v3700_v0 }
  0xae   :  { %3012 = vmatmul.mubr.msk.bf16.gmra.mxu0 %vm417_vm2, %v3686_v45  ;;  %3112 = vmatmul.mubr.msk.bf16.gmra.mxu1 %vm417_vm2, %v3687_v46 }
  0xaf   :  { %3015 = vmatprep.mubr.msk.bf16.mxu0 %vm3701_vm1, %v3700_v0  ;;  %3115 = vmatprep.mubr.msk.bf16.mxu1 %vm3701_vm1, %v3700_v0 }
  0xb6   :  { %3016 = vmatmul.mubr.msk.bf16.gmra.mxu0 %vm417_vm2, %v3688_v47  ;;  %3116 = vmatmul.mubr.msk.bf16.gmra.mxu1 %vm417_vm2, %v3689_v48 }
  0xb7   :  { %3019 = vmatprep.mubr.msk.bf16.mxu0 %vm3701_vm1, %v3700_v0  ;;  %3119 = vmatprep.mubr.msk.bf16.mxu1 %vm3701_vm1, %v3700_v0 }
  0xbe   :  { %3020 = vmatmul.mubr.msk.bf16.gmra.mxu0 %vm417_vm2, %v3690_v49  ;;  %3120 = vmatmul.mubr.msk.bf16.gmra.mxu1 %vm417_vm2, %v3691_v50 }
  0xbf   :  { %3023 = vmatprep.mubr.msk.bf16.mxu0 %vm3701_vm1, %v3700_v0  ;;  %3123 = vmatprep.mubr.msk.bf16.mxu1 %vm3701_vm1, %v3700_v0 }
  0xc6   :  { %3024 = vmatmul.mubr.msk.bf16.gmra.mxu0 %vm417_vm2, %v3692_v51  ;;  %3124 = vmatmul.mubr.msk.bf16.gmra.mxu1 %vm417_vm2, %v3693_v52 }
  0xc7   :  { %3027 = vmatprep.mubr.msk.bf16.mxu0 %vm3701_vm1, %v3700_v0  ;;  %3127 = vmatprep.mubr.msk.bf16.mxu1 %vm3701_vm1, %v3700_v0 }
  0xce   :  { %3028 = vmatmul.mubr.msk.bf16.gmra.mxu0 %vm417_vm2, %v3694_v53  ;;  %3128 = vmatmul.mubr.msk.bf16.gmra.mxu1 %vm417_vm2, %v3695_v54 }
  0xcf   :  { %3031 = vmatprep.mubr.msk.bf16.mxu0 %vm3701_vm1, %v3700_v0  ;;  %3131 = vmatprep.mubr.msk.bf16.mxu1 %vm3701_vm1, %v3700_v0 }
  0xd6   :  { %3032 = vmatmul.mubr.msk.bf16.gmra.mxu0 %vm417_vm2, %v3696_v55  ;;  %3132 = vmatmul.mubr.msk.bf16.gmra.mxu1 %vm417_vm2, %v3697_v56 }
  0xd7   :  { %3035 = vmatprep.mubr.msk.bf16.mxu0 %vm3701_vm1, %v3700_v0 }
  0xde   :  { %v603_v59 = vpop.f32.mrf.mxu0  ;;  %3036 = vmatmul.mubr.msk.bf16.gmra.mxu0 %vm417_vm2, %v3698_v57  ;;  %v803_v60 = vpop.f32.mrf.mxu1 }
  0xdf   :  { %v4059_v61 = vadd.f32 %v4055_v58, %v803_v60  ;;  %v4062_v0 = vadd.f32 %v4055_v58, %v603_v59 }
  0xe0   :  { %v2941_v62 = vpop.f32.mrf.mxu0  ;;  %v3041_v63 = vpop.f32.mrf.mxu1 }
  0xe1   :  { %v5775_v3 = vmax.f32 %v4059_v61, 0.0  ;;  %v5773_v8 = vmax.f32 %v4062_v0, 0.0 }
  0xe2   :  { %v606_v1 = vpop.f32.mrf.mxu0  ;;  %v806_v2 = vpop.f32.mrf.mxu1 }
  0xe3   :  { %v4066_v4 = vadd.f32 %v4055_v58, %v606_v1  ;;  %v4069_v5 = vadd.f32 %v4055_v58, %v806_v2 }
  0xe4   :  { %v2942_v6 = vpop.f32.mrf.mxu0  ;;  %v3042_v7 = vpop.f32.mrf.mxu1 }
  0xe5   :  { %v5774_v9 = vmax.f32 %v4066_v4, 0.0  ;;  %v5780_v10 = vmax.f32 %v4069_v5, 0.0 }
  0xe6   :  { %v611_v11 = vpop.f32.mrf.mxu0  ;;  %v811_v12 = vpop.f32.mrf.mxu1 }
  0xe7   :  { %v3158_v13 = vpack.i.bf16 %v5780_v10, %v5775_v3  ;;  %v3153_v14 = vpack.i.bf16 %v5774_v9, %v5773_v8  ;;  %v4083_v17 = vadd.f32 %v4055_v58, %v611_v11  ;;  %v4088_v20 = vadd.f32 %v4055_v58, %v811_v12 }
  0xe8   :  { %v2945_v15 = vpop.f32.mrf.mxu0  ;;  %v3045_v16 = vpop.f32.mrf.mxu1 }
  0xe9   :  { %3159 = vrot.lane.b32.xlu1 %v3158_v13, %s3702_s0  ;;  %3154 = vrot.lane.b32.xlu0 %v3153_v14, %s3702_s0  ;;  %v5767_v25 = vmax.f32 %v4083_v17, 0.0  ;;  %v5765_v29 = vmax.f32 %v4088_v20, 0.0 }
  0xea   :  { %v614_v18 = vpop.f32.mrf.mxu0  ;;  %v814_v19 = vpop.f32.mrf.mxu1 }
  0xeb   :  { %v4091_v21 = vadd.f32 %v4055_v58, %v614_v18  ;;  %v4094_v22 = vadd.f32 %v4055_v58, %v814_v19 }
  0xec   :  { %v2946_v23 = vpop.f32.mrf.mxu0  ;;  %v3046_v24 = vpop.f32.mrf.mxu1 }
  0xed   :  { %v5772_v26 = vmax.f32 %v4091_v21, 0.0  ;;  %v5766_v31 = vmax.f32 %v4094_v22, 0.0 }
  0xee   :  { %v619_v27 = vpop.f32.mrf.mxu0  ;;  %v819_v28 = vpop.f32.mrf.mxu1 }
  0xef   :  { %v3163_v30 = vpack.i.bf16 %v5772_v26, %v5767_v25  ;;  %v4105_v34 = vadd.f32 %v4055_v58, %v619_v27  ;;  %v3168_v37 = vpack.i.bf16 %v5766_v31, %v5765_v29  ;;  %v4113_v38 = vadd.f32 %v4055_v58, %v819_v28 }
  0xf0   :  { %v2949_v32 = vpop.f32.mrf.mxu0  ;;  %v3049_v33 = vpop.f32.mrf.mxu1 }
  0xf1   :  { %3164 = vrot.lane.b32.xlu0 %v3163_v30, %s3702_s0  ;;  %v5759_v43 = vmax.f32 %v4105_v34, 0.0  ;;  %v5757_v47 = vmax.f32 %v4113_v38, 0.0 }
  0xf2   :  { %v622_v35 = vpop.f32.mrf.mxu0  ;;  %v822_v36 = vpop.f32.mrf.mxu1 }
  0xf3   :  { %v4116_v39 = vadd.f32 %v4055_v58, %v622_v35  ;;  %v4119_v40 = vadd.f32 %v4055_v58, %v822_v36 }
  0xf4   :  { %v2950_v41 = vpop.f32.mrf.mxu0  ;;  %v3050_v42 = vpop.f32.mrf.mxu1 }
  0xf5   :  { %v5764_v44 = vmax.f32 %v4116_v39, 0.0  ;;  %3169 = vrot.lane.b32.xlu0 %v3168_v37, %s3702_s0  ;;  %v5758_v49 = vmax.f32 %v4119_v40, 0.0 }
  0xf6   :  { %v627_v45 = vpop.f32.mrf.mxu0  ;;  %v827_v46 = vpop.f32.mrf.mxu1 }
  0xf7   :  { %v3173_v48 = vpack.i.bf16 %v5764_v44, %v5759_v43  ;;  %v4131_v50 = vadd.f32 %v4055_v58, %v827_v46  ;;  %v4134_v53 = vadd.f32 %v4055_v58, %v627_v45  ;;  %v3178_v56 = vpack.i.bf16 %v5758_v49, %v5757_v47 }
  0xf8   :  { %v2953_v51 = vpop.f32.mrf.mxu0  ;;  %v3053_v52 = vpop.f32.mrf.mxu1 }
  0xf9   :  { %3174 = vrot.lane.b32.xlu1 %v3173_v48, %s3702_s0  ;;  %v5751_v57 = vmax.f32 %v4131_v50, 0.0  ;;  %v5749_v1 = vmax.f32 %v4134_v53, 0.0 }
  0xfa   :  { %v630_v54 = vpop.f32.mrf.mxu0  ;;  %v830_v55 = vpop.f32.mrf.mxu1 }
  0xfb   :  { %v4143_v59 = vadd.f32 %v4055_v58, %v630_v54  ;;  %v4146_v60 = vadd.f32 %v4055_v58, %v830_v55 }
  0xfc   :  { %v2954_v62 = vpop.f32.mrf.mxu0  ;;  %v3054_v63 = vpop.f32.mrf.mxu1 }
  0xfd   :  { %v5750_v2 = vmax.f32 %v4143_v59, 0.0  ;;  %v5756_v6 = vmax.f32 %v4146_v60, 0.0  ;;  %3179 = vrot.lane.b32.xlu1 %v3178_v56, %s3702_s0 }
  0xfe   :  { %v635_v7 = vpop.f32.mrf.mxu0  ;;  %v835_v11 = vpop.f32.mrf.mxu1 }
  0xff   :  { %v3183_v12 = vpack.i.bf16 %v5750_v2, %v5749_v1  ;;  %v3188_v13 = vpack.i.bf16 %v5756_v6, %v5751_v57  ;;  %v4161_v14 = vadd.f32 %v4055_v58, %v835_v11  ;;  %v4164_v18 = vadd.f32 %v4055_v58, %v635_v7 }
 0x100   :  { %v2957_v15 = vpop.f32.mrf.mxu0  ;;  %v3057_v16 = vpop.f32.mrf.mxu1 }
 0x101   :  { %3189 = vrot.lane.b32.xlu0 %v3188_v13, %s3702_s0  ;;  %3184 = vrot.lane.b32.xlu1 %v3183_v12, %s3702_s0  ;;  %v5741_v24 = vmax.f32 %v4161_v14, 0.0  ;;  %v5743_v33 = vmax.f32 %v4164_v18, 0.0 }
 0x102   :  { %v638_v19 = vpop.f32.mrf.mxu0  ;;  %v838_v23 = vpop.f32.mrf.mxu1 }
 0x103   :  { %v4170_v27 = vadd.f32 %v4055_v58, %v638_v19  ;;  %v4173_v28 = vadd.f32 %v4055_v58, %v838_v23 }
 0x104   :  { %v2958_v30 = vpop.f32.mrf.mxu0  ;;  %v3058_v32 = vpop.f32.mrf.mxu1 }
 0x105   :  { %v5748_v35 = vmax.f32 %v4170_v27, 0.0  ;;  %v5742_v36 = vmax.f32 %v4173_v28, 0.0 }
 0x106   :  { %v643_v37 = vpop.f32.mrf.mxu0  ;;  %v843_v41 = vpop.f32.mrf.mxu1 }
 0x107   :  { %v3193_v42 = vpack.i.bf16 %v5748_v35, %v5743_v33  ;;  %v3198_v45 = vpack.i.bf16 %v5742_v36, %v5741_v24  ;;  %v4187_v46 = vadd.f32 %v4055_v58, %v843_v41  ;;  %v4190_v52 = vadd.f32 %v4055_v58, %v643_v37 }
 0x108   :  { %v2961_v48 = vpop.f32.mrf.mxu0  ;;  %v3061_v51 = vpop.f32.mrf.mxu1 }
 0x109   :  { %3199 = vrot.lane.b32.xlu1 %v3198_v45, %s3702_s0  ;;  %3194 = vrot.lane.b32.xlu0 %v3193_v42, %s3702_s0  ;;  %v5735_v56 = vmax.f32 %v4187_v46, 0.0  ;;  %v5733_v12 = vmax.f32 %v4190_v52, 0.0 }
 0x10a   :  { %v646_v54 = vpop.f32.mrf.mxu0  ;;  %v846_v55 = vpop.f32.mrf.mxu1 }
 0x10b   :  { %v4196_v62 = vadd.f32 %v4055_v58, %v646_v54  ;;  %v4199_v63 = vadd.f32 %v4055_v58, %v846_v55 }
 0x10c   :  { %v2962_v7 = vpop.f32.mrf.mxu0  ;;  %v3062_v11 = vpop.f32.mrf.mxu1 }
 0x10d   :  { %v5734_v13 = vmax.f32 %v4196_v62, 0.0  ;;  %v5740_v15 = vmax.f32 %v4199_v63, 0.0 }
 0x10e   :  { %v651_v16 = vpop.f32.mrf.mxu0  ;;  %v851_v19 = vpop.f32.mrf.mxu1 }
 0x10f   :  { %v3203_v23 = vpack.i.bf16 %v5734_v13, %v5733_v12  ;;  %v3208_v30 = vpack.i.bf16 %v5740_v15, %v5735_v56  ;;  %v4213_v32 = vadd.f32 %v4055_v58, %v851_v19  ;;  %v4216_v42 = vadd.f32 %v4055_v58, %v651_v16 }
 0x110   :  { %v2965_v37 = vpop.f32.mrf.mxu0  ;;  %v3065_v41 = vpop.f32.mrf.mxu1 }
 0x111   :  { %3209 = vrot.lane.b32.xlu0 %v3208_v30, %s3702_s0  ;;  %3204 = vrot.lane.b32.xlu1 %v3203_v23, %s3702_s0  ;;  %v5738_v51 = vmax.f32 %v4213_v32, 0.0  ;;  %v5736_v19 = vmax.f32 %v4216_v42, 0.0 }
 0x112   :  { %v654_v45 = vpop.f32.mrf.mxu0  ;;  %v854_v48 = vpop.f32.mrf.mxu1 }
 0x113   :  { %v4222_v54 = vadd.f32 %v4055_v58, %v654_v45  ;;  %v4225_v55 = vadd.f32 %v4055_v58, %v854_v48 }
 0x114   :  { %v2966_v7 = vpop.f32.mrf.mxu0  ;;  %v3066_v11 = vpop.f32.mrf.mxu1 }
 0x115   :  { %v5737_v16 = vmax.f32 %v4222_v54, 0.0  ;;  %v5739_v30 = vmax.f32 %v4225_v55, 0.0 }
 0x116   :  { %v659_v37 = vpop.f32.mrf.mxu0  ;;  %v859_v23 = vpop.f32.mrf.mxu1 }
 0x117   :  { %v3213_v41 = vpack.i.bf16 %v5737_v16, %v5736_v19  ;;  %v3218_v45 = vpack.i.bf16 %v5739_v30, %v5738_v51  ;;  %v4239_v48 = vadd.f32 %v4055_v58, %v859_v23  ;;  %v4242_v12 = vadd.f32 %v4055_v58, %v659_v37 }
 0x118   :  { %v2969_v7 = vpop.f32.mrf.mxu0  ;;  %v3069_v11 = vpop.f32.mrf.mxu1 }
 0x119   :  { %3219 = vrot.lane.b32.xlu1 %v3218_v45, %s3702_s0  ;;  %3214 = vrot.lane.b32.xlu0 %v3213_v41, %s3702_s0  ;;  %v5746_v19 = vmax.f32 %v4239_v48, 0.0  ;;  %v5744_v11 = vmax.f32 %v4242_v12, 0.0 }
 0x11a   :  { %v662_v13 = vpop.f32.mrf.mxu0  ;;  %v862_v56 = vpop.f32.mrf.mxu1 }
 0x11b   :  { %v4248_v16 = vadd.f32 %v4055_v58, %v662_v13  ;;  %v4251_v51 = vadd.f32 %v4055_v58, %v862_v56 }
 0x11c   :  { %v2970_v23 = vpop.f32.mrf.mxu0  ;;  %v3070_v7 = vpop.f32.mrf.mxu1 }
 0x11d   :  { %v5745_v37 = vmax.f32 %v4248_v16, 0.0  ;;  %v5747_v45 = vmax.f32 %v4251_v51, 0.0 }
 0x11e   :  { %v667_v30 = vpop.f32.mrf.mxu0  ;;  %v867_v41 = vpop.f32.mrf.mxu1 }
 0x11f   :  { %v3223_v15 = vpack.i.bf16 %v5745_v37, %v5744_v11  ;;  %v3228_v56 = vpack.i.bf16 %v5747_v45, %v5746_v19  ;;  %v4265_v13 = vadd.f32 %v4055_v58, %v867_v41  ;;  %v4268_v24 = vadd.f32 %v4055_v58, %v667_v30 }
 0x120   :  { %v2973_v23 = vpop.f32.mrf.mxu0  ;;  %v3073_v7 = vpop.f32.mrf.mxu1 }
 0x121   :  { %3229 = vrot.lane.b32.xlu0 %v3228_v56, %s3702_s0  ;;  %3224 = vrot.lane.b32.xlu1 %v3223_v15, %s3702_s0  ;;  %v5754_v11 = vmax.f32 %v4265_v13, 0.0  ;;  %v5752_v7 = vmax.f32 %v4268_v24, 0.0 }
 0x122   :  { %v670_v36 = vpop.f32.mrf.mxu0  ;;  %v870_v33 = vpop.f32.mrf.mxu1 }
 0x123   :  { %v4274_v37 = vadd.f32 %v4055_v58, %v670_v36  ;;  %v4277_v19 = vadd.f32 %v4055_v58, %v870_v33 }
 0x124   :  { %v2974_v41 = vpop.f32.mrf.mxu0  ;;  %v3074_v23 = vpop.f32.mrf.mxu1 }
 0x125   :  { %v5753_v30 = vmax.f32 %v4274_v37, 0.0  ;;  %v5755_v56 = vmax.f32 %v4277_v19, 0.0 }
 0x126   :  { %v675_v45 = vpop.f32.mrf.mxu0  ;;  %v875_v15 = vpop.f32.mrf.mxu1 }
 0x127   :  { %v3233_v35 = vpack.i.bf16 %v5753_v30, %v5752_v7  ;;  %v3238_v33 = vpack.i.bf16 %v5755_v56, %v5754_v11  ;;  %v4291_v36 = vadd.f32 %v4055_v58, %v875_v15  ;;  %v4294_v1 = vadd.f32 %v4055_v58, %v675_v45 }
 0x128   :  { %v2977_v41 = vpop.f32.mrf.mxu0  ;;  %v3077_v23 = vpop.f32.mrf.mxu1 }
 0x129   :  { %3239 = vrot.lane.b32.xlu1 %v3238_v33, %s3702_s0  ;;  %3234 = vrot.lane.b32.xlu0 %v3233_v35, %s3702_s0  ;;  %v5762_v7 = vmax.f32 %v4291_v36, 0.0  ;;  %v5760_v23 = vmax.f32 %v4294_v1, 0.0 }
 0x12a   :  { %v678_v2 = vpop.f32.mrf.mxu0  ;;  %v878_v57 = vpop.f32.mrf.mxu1 }
 0x12b   :  { %v4300_v30 = vadd.f32 %v4055_v58, %v678_v2  ;;  %v4303_v11 = vadd.f32 %v4055_v58, %v878_v57 }
 0x12c   :  { %v2978_v15 = vpop.f32.mrf.mxu0  ;;  %v3078_v41 = vpop.f32.mrf.mxu1 }
 0x12d   :  { %v5761_v45 = vmax.f32 %v4300_v30, 0.0  ;;  %v5763_v33 = vmax.f32 %v4303_v11, 0.0 }
 0x12e   :  { %v683_v56 = vpop.f32.mrf.mxu0  ;;  %v883_v35 = vpop.f32.mrf.mxu1 }
 0x12f   :  { %v3243_v6 = vpack.i.bf16 %v5761_v45, %v5760_v23  ;;  %v3248_v57 = vpack.i.bf16 %v5763_v33, %v5762_v7  ;;  %v4317_v2 = vadd.f32 %v4055_v58, %v683_v56  ;;  %v4320_v15 = vadd.f32 %v4055_v58, %v883_v35 }
 0x130   :  { %v2981_v41 = vpop.f32.mrf.mxu0  ;;  %v3081_v47 = vpop.f32.mrf.mxu1 }
 0x131   :  { %5885 = vst [vmem:[#allocation2_spill] sm:$0xff] %v4320_v15  ;;  %3249 = vrot.lane.b32.xlu0 %v3248_v57, %s3702_s0  ;;  %3244 = vrot.lane.b32.xlu1 %v3243_v6, %s3702_s0  ;;  %v5768_v23 = vmax.f32 %v4317_v2, 0.0  ;;  %v5770_v45 = vmax.f32 %v4320_v15, 0.0 }
 0x132   :  { %v686_v49 = vpop.f32.mrf.mxu0  ;;  %v886_v43 = vpop.f32.mrf.mxu1 }
 0x133   :  { %v4327_v7 = vadd.f32 %v4055_v58, %v686_v49  ;;  %v4330_v56 = vadd.f32 %v4055_v58, %v886_v43 }
 0x134   :  { %v2982_v35 = vpop.f32.mrf.mxu0  ;;  %v3082_v33 = vpop.f32.mrf.mxu1 }
 0x135   :  { %v5769_v47 = vmax.f32 %v4327_v7, 0.0  ;;  %v5771_v57 = vmax.f32 %v4330_v56, 0.0 }
 0x136   :  { %v691_v41 = vpop.f32.mrf.mxu0  ;;  %v891_v6 = vpop.f32.mrf.mxu1 }
 0x137   :  { %v3253_v44 = vpack.i.bf16 %v5769_v47, %v5768_v23  ;;  %v3258_v49 = vpack.i.bf16 %v5771_v57, %v5770_v45  ;;  %v4343_v43 = vadd.f32 %v4055_v58, %v691_v41  ;;  %v4346_v33 = vadd.f32 %v4055_v58, %v891_v6 }
 0x138   :  { %v2985_v35 = vpop.f32.mrf.mxu0  ;;  %v3085_v29 = vpop.f32.mrf.mxu1 }
 0x139   :  { %5886 = vst [vmem:[#allocation3_spill] sm:$0xff] %v4343_v43  ;;  %5887 = vst [vmem:[#allocation4_spill] sm:$0xff] %v4346_v33  ;;  %3259 = vrot.lane.b32.xlu1 %v3258_v49, %s3702_s0  ;;  %3254 = vrot.lane.b32.xlu0 %v3253_v44, %s3702_s0  ;;  %v5776_v23 = vmax.f32 %v4343_v43, 0.0  ;;  %v5778_v47 = vmax.f32 %v4346_v33, 0.0 }
 0x13a   :  { %v694_v31 = vpop.f32.mrf.mxu0  ;;  %v894_v25 = vpop.f32.mrf.mxu1 }
 0x13b   :  { %v4353_v45 = vadd.f32 %v4055_v58, %v694_v31  ;;  %v4356_v41 = vadd.f32 %v4055_v58, %v894_v25 }
 0x13c   :  { %v2986_v6 = vpop.f32.mrf.mxu0  ;;  %v3086_v57 = vpop.f32.mrf.mxu1 }
 0x13d   :  { %5888 = vst [vmem:[#allocation5_spill] sm:$0xff] %v4353_v45  ;;  %5889 = vst [vmem:[#allocation6_spill] sm:$0xff] %v4356_v41  ;;  %v5777_v29 = vmax.f32 %v4353_v45, 0.0  ;;  %v5779_v49 = vmax.f32 %v4356_v41, 0.0  ;;  %v5908_v41 = vmax.f32 %v4062_v0, 0.0 }
 0x13e   :  { %v699_v35 = vpop.f32.mrf.mxu0  ;;  %v899_v44 = vpop.f32.mrf.mxu1 }
 0x13f   :  { %v3263_v26 = vpack.i.bf16 %v5777_v29, %v5776_v23  ;;  %v3268_v31 = vpack.i.bf16 %v5779_v49, %v5778_v47  ;;  %v4369_v25 = vadd.f32 %v4055_v58, %v699_v35  ;;  %v4372_v57 = vadd.f32 %v4055_v58, %v899_v44 }
 0x140   :  { %v2989_v6 = vpop.f32.mrf.mxu0  ;;  %v3089_v8 = vpop.f32.mrf.mxu1 }
 0x141   :  { %5890 = vst [vmem:[#allocation7_spill] sm:$0xff] %v4369_v25  ;;  %5891 = vst [vmem:[#allocation8_spill] sm:$0xff] %v4372_v57  ;;  %3269 = vrot.lane.b32.xlu0 %v3268_v31, %s3702_s0  ;;  %3264 = vrot.lane.b32.xlu1 %v3263_v26, %s3702_s0  ;;  %v5784_v23 = vmax.f32 %v4369_v25, 0.0  ;;  %v5786_v29 = vmax.f32 %v4372_v57, 0.0 }
 0x142   :  { %v702_v9 = vpop.f32.mrf.mxu0  ;;  %v902_v3 = vpop.f32.mrf.mxu1 }
 0x143   :  { %v4379_v47 = vadd.f32 %v4055_v58, %v702_v9  ;;  %v4382_v35 = vadd.f32 %v4055_v58, %v902_v3 }
 0x144   :  { %v2990_v44 = vpop.f32.mrf.mxu0  ;;  %v3090_v49 = vpop.f32.mrf.mxu1 }
 0x145   :  { %5892 = vst [vmem:[#allocation9_spill] sm:$0xff] %v4379_v47  ;;  %5893 = vst [vmem:[#allocation10_spill] sm:$0xff] %v4382_v35  ;;  %v5785_v8 = vmax.f32 %v4379_v47, 0.0  ;;  %v5787_v31 = vmax.f32 %v4382_v35, 0.0 }
 0x146   :  { %v707_v6 = vpop.f32.mrf.mxu0  ;;  %v907_v26 = vpop.f32.mrf.mxu1 }
 0x147   :  { %v3273_v10 = vpack.i.bf16 %v5785_v8, %v5784_v23  ;;  %v3278_v9 = vpack.i.bf16 %v5787_v31, %v5786_v29  ;;  %v4395_v3 = vadd.f32 %v4055_v58, %v707_v6  ;;  %v4398_v49 = vadd.f32 %v4055_v58, %v907_v26 }
 0x148   :  { %v2993_v44 = vpop.f32.mrf.mxu0  ;;  %v3093_v43 = vpop.f32.mrf.mxu1 }
 0x149   :  { %5894 = vst [vmem:[#allocation11_spill] sm:$0xff] %v4395_v3  ;;  %5895 = vst [vmem:[#allocation12_spill] sm:$0xff] %v4398_v49  ;;  %3279 = vrot.lane.b32.xlu1 %v3278_v9, %s3702_s0  ;;  %3274 = vrot.lane.b32.xlu0 %v3273_v10, %s3702_s0  ;;  %v5792_v23 = vmax.f32 %v4395_v3, 0.0  ;;  %v5794_v8 = vmax.f32 %v4398_v49, 0.0 }
 0x14a   :  { %v710_v25 = vpop.f32.mrf.mxu0  ;;  %v910_v47 = vpop.f32.mrf.mxu1 }
 0x14b   :  { %v4405_v29 = vadd.f32 %v4055_v58, %v710_v25  ;;  %v4408_v6 = vadd.f32 %v4055_v58, %v910_v47 }
 0x14c   :  { %v2994_v26 = vpop.f32.mrf.mxu0  ;;  %v3094_v31 = vpop.f32.mrf.mxu1 }
 0x14d   :  { %5896 = vst [vmem:[#allocation13_spill] sm:$0xff] %v4405_v29  ;;  %5897 = vst [vmem:[#allocation14_spill] sm:$0xff] %v4408_v6  ;;  %v5793_v43 = vmax.f32 %v4405_v29, 0.0  ;;  %v5795_v9 = vmax.f32 %v4408_v6, 0.0 }
 0x14e   :  { %v715_v44 = vpop.f32.mrf.mxu0  ;;  %v915_v10 = vpop.f32.mrf.mxu1 }
 0x14f   :  { %v3283_v57 = vpack.i.bf16 %v5793_v43, %v5792_v23  ;;  %v3288_v25 = vpack.i.bf16 %v5795_v9, %v5794_v8  ;;  %v4421_v47 = vadd.f32 %v4055_v58, %v715_v44  ;;  %v4424_v31 = vadd.f32 %v4055_v58, %v915_v10 }
 0x150   :  { %v2997_v26 = vpop.f32.mrf.mxu0  ;;  %v3097_v35 = vpop.f32.mrf.mxu1 }
 0x151   :  { %5898 = vst [vmem:[#allocation15_spill] sm:$0xff] %v4421_v47  ;;  %5899 = vst [vmem:[#allocation16_spill] sm:$0xff] %v4424_v31  ;;  %3289 = vrot.lane.b32.xlu0 %v3288_v25, %s3702_s0  ;;  %3284 = vrot.lane.b32.xlu1 %v3283_v57, %s3702_s0  ;;  %v5800_v23 = vmax.f32 %v4421_v47, 0.0  ;;  %v5802_v43 = vmax.f32 %v4424_v31, 0.0 }
 0x152   :  { %v718_v3 = vpop.f32.mrf.mxu0  ;;  %v918_v29 = vpop.f32.mrf.mxu1 }
 0x153   :  { %v4431_v8 = vadd.f32 %v4055_v58, %v718_v3  ;;  %v4434_v44 = vadd.f32 %v4055_v58, %v918_v29 }
 0x154   :  { %v2998_v10 = vpop.f32.mrf.mxu0  ;;  %v3098_v9 = vpop.f32.mrf.mxu1 }
 0x155   :  { %5900 = vst [vmem:[#allocation17_spill] sm:$0xff] %v4431_v8  ;;  %5901 = vst [vmem:[#allocation18_spill] sm:$0xff] %v4434_v44  ;;  %v5801_v35 = vmax.f32 %v4431_v8, 0.0  ;;  %v5803_v25 = vmax.f32 %v4434_v44, 0.0 }
 0x156   :  { %v723_v26 = vpop.f32.mrf.mxu0  ;;  %v923_v57 = vpop.f32.mrf.mxu1 }
 0x157   :  { %v3293_v49 = vpack.i.bf16 %v5801_v35, %v5800_v23  ;;  %v3298_v3 = vpack.i.bf16 %v5803_v25, %v5802_v43  ;;  %v4449_v45 = vadd.f32 %v4055_v58, %v723_v26  ;;  %v4452_v47 = vadd.f32 %v4055_v58, %v923_v57 }
 0x158   :  { %v3001_v29 = vpop.f32.mrf.mxu0  ;;  %v3101_v6 = vpop.f32.mrf.mxu1  ;;  %v5904_v26 = vmax.f32 %v4069_v5, 0.0  ;;  %v5905_v57 = vmax.f32 %v4059_v61, 0.0 }
 0x159   :  { %3299 = vrot.lane.b32.xlu1 %v3298_v3, %s3702_s0  ;;  %3294 = vrot.lane.b32.xlu0 %v3293_v49, %s3702_s0  ;;  %5902 = vst [vmem:[#allocation19_spill] sm:$0xff] %v4449_v45 }
 0x15a   :  { %v726_v9 = vpop.f32.mrf.mxu0  ;;  %v926_v10 = vpop.f32.mrf.mxu1 }
 0x15b   :  { %v4455_v23 = vadd.f32 %v4055_v58, %v726_v9  ;;  %v4458_v35 = vadd.f32 %v4055_v58, %v926_v10  ;;  %v3160_v29 = vpop.permute.xlu1 %3159  ;;  %v3155_v6 = vpop.permute.xlu0 %3154  ;;  %v5907_v9 = vmax.f32 %v4066_v4, 0.0 }
 0x15c   :  { %v3162_v43 = vunpack.i.h.bf16 %v3160_v29  ;;  %v3161_v3 = vunpack.i.l.bf16 %v3160_v29  ;;  %v3157_v25 = vunpack.i.h.bf16 %v3155_v6  ;;  %v3156_v49 = vunpack.i.l.bf16 %v3155_v6  ;;  %v3002_v8 = vpop.f32.mrf.mxu0  ;;  %v3102_v31 = vpop.f32.mrf.mxu1 }
 0x15d   :  { %5903 = vst [vmem:[#allocation20_spill] sm:$0xff] %v4455_v23  ;;  %v5813_v8 = vmax.f32 %v4449_v45, 0.0  ;;  %v5814_v5 = vmax.f32 %v4455_v23, 0.0  ;;  %v5816_v61 = vmax.f32 %v4458_v35, 0.0  ;;  %v5911_v45 = vmax.f32 %v4091_v21, 0.0 }
 0x15e   :  { %v4462_v44 = vmax.f32 %v5904_v26, %v3162_v43  ;;  %v4466_v33 = vmax.f32 %v5905_v57, %v3161_v3  ;;  %v4470_v10 = vmax.f32 %v5907_v9, %v3157_v25  ;;  %v4474_v15 = vmax.f32 %v5908_v41, %v3156_v49  ;;  %v731_v29 = vpop.f32.mrf.mxu0  ;;  %v931_v6 = vpop.f32.mrf.mxu1 }
 0x15f   :  { %v5815_v43 = vmax.f32 %v4452_v47, 0.0  ;;  %v3313_v49 = vpack.i.bf16 %v5814_v5, %v5813_v8  ;;  %v4491_v26 = vadd.f32 %v4055_v58, %v731_v29  ;;  %v5913_v29 = vmax.f32 %v4083_v17, 0.0 }
 0x160   :  { %5906 = vst [vmem:[#allocation21_spill] sm:$0xff] %v4466_v33  ;;  %v3005_v31 = vpop.f32.mrf.mxu0  ;;  %v3105_v3 = vpop.f32.mrf.mxu1  ;;  %v3303_v4 = vpack.i.bf16 %v4470_v10, %v4474_v15  ;;  %v3308_v0 = vpack.i.bf16 %v4462_v44, %v4466_v33 }
 0x161   :  { %5909 = vst [vmem:[#allocation22_spill] sm:$0xff] %v4491_v26  ;;  %v3318_v9 = vpack.i.bf16 %v5816_v61, %v5815_v43 }
 0x162   :  { %v934_v41 = vpop.f32.mrf.mxu1  ;;  %3304 = vrot.lane.b32.xlu1 %v3303_v4, %s3703_s14  ;;  %3309 = vrot.lane.b32.xlu0 %v3308_v0, %s3703_s14  ;;  %v734_v25 = vpop.f32.mrf.mxu0 }
 0x163   :  { %v3165_v57 = vpop.permute.xlu0 %3164  ;;  %v4498_v31 = vadd.f32 %v4055_v58, %v734_v25 }
 0x164   :  { %v3167_v3 = vunpack.i.h.bf16 %v3165_v57  ;;  %v3166_v4 = vunpack.i.l.bf16 %v3165_v57  ;;  %v3006_v0 = vpop.f32.mrf.mxu0  ;;  %v3106_v33 = vpop.f32.mrf.mxu1  ;;  %v4512_v57 = vadd.f32 %v4055_v58, %v931_v6  ;;  %v5918_v6 = vmax.f32 %v4088_v20, 0.0 }
 0x165   :  { %5910 = vst [vmem:[#allocation23_spill] sm:$0xff] %v4498_v31  ;;  %v4515_v33 = vadd.f32 %v4055_v58, %v934_v41 }
 0x166   :  { %v4502_v23 = vmax.f32 %v5911_v45, %v3167_v3  ;;  %v4506_v8 = vmax.f32 %v5913_v29, %v3166_v4  ;;  %v939_v5 = vpop.f32.mrf.mxu1  ;;  %3319 = vrot.lane.b32.xlu0 %v3318_v9, %s3702_s0  ;;  %3314 = vrot.lane.b32.xlu1 %v3313_v49, %s3702_s0  ;;  %v739_v43 = vpop.f32.mrf.mxu0  ;;  %5915 = vst [vmem:[#allocation26_spill] sm:$0xff] %v4512_v57  ;;  %v5917_v49 = vmax.f32 %v4094_v22, 0.0  ;;  %v5822_v45 = vmax.f32 %v4512_v57, 0.0 }
 0x167   :  { %5916 = vst [vmem:[#allocation27_spill] sm:$0xff] %v4515_v33  ;;  %v3170_v21 = vpop.permute.xlu0 %3169 }
 0x168   :  { %5912 = vst [vmem:[#allocation24_spill] sm:$0xff] %v4502_v23  ;;  %5914 = vst [vmem:[#allocation25_spill] sm:$0xff] %v4506_v8  ;;  %v3172_v17 = vunpack.i.h.bf16 %v3170_v21  ;;  %v3171_v3 = vunpack.i.l.bf16 %v3170_v21  ;;  %v3009_v4 = vpop.f32.mrf.mxu0  ;;  %v3109_v0 = vpop.f32.mrf.mxu1  ;;  %v3323_v9 = vpack.i.bf16 %v4502_v23, %v4506_v8  ;;  %v5823_v21 = vmax.f32 %v4515_v33, 0.0 }
 0x169   :  { %v5920_v0 = vmax.f32 %v4491_v26, 0.0  ;;  %v5921_v8 = vmax.f32 %v4498_v31, 0.0 }
 0x16a   :  { %v4522_v29 = vmax.f32 %v5917_v49, %v3172_v17  ;;  %v4526_v61 = vmax.f32 %v5918_v6, %v3171_v3  ;;  %v942_v41 = vpop.f32.mrf.mxu1  ;;  %3324 = vrot.lane.b32.xlu0 %v3323_v9, %s3703_s14  ;;  %v742_v25 = vpop.f32.mrf.mxu0  ;;  %v3338_v26 = vpack.i.bf16 %v5823_v21, %v5822_v45 }
 0x16b   :  { %v3175_v4 = vpop.permute.xlu1 %3174  ;;  %v3333_v22 = vpack.i.bf16 %v5921_v8, %v5920_v0  ;;  %v4544_v8 = vadd.f32 %v4055_v58, %v939_v5  ;;  %v4561_v31 = vadd.f32 %v4055_v58, %v942_v41 }
 0x16c   :  { %5919 = vst [vmem:[#allocation28_spill] sm:$0xff] %v4526_v61  ;;  %v3177_v17 = vunpack.i.h.bf16 %v3175_v4  ;;  %v3176_v49 = vunpack.i.l.bf16 %v3175_v4  ;;  %v3010_v23 = vpop.f32.mrf.mxu0  ;;  %v3110_v20 = vpop.f32.mrf.mxu1  ;;  %v3328_v3 = vpack.i.bf16 %v4522_v29, %v4526_v61  ;;  %v4550_v4 = vadd.f32 %v4055_v58, %v742_v25 }
 0x16d   :  { %v4547_v23 = vadd.f32 %v4055_v58, %v739_v43  ;;  %v5923_v20 = vmax.f32 %v4116_v39, 0.0  ;;  %v5927_v43 = vmax.f32 %v4119_v40, 0.0  ;;  %v5929_v61 = vmax.f32 %v4113_v38, 0.0 }
 0x16e   :  { %v947_v6 = vpop.f32.mrf.mxu1  ;;  %3329 = vrot.lane.b32.xlu1 %v3328_v3, %s3703_s14  ;;  %3334 = vrot.lane.b32.xlu0 %v3333_v22, %s3702_s0  ;;  %v747_v9 = vpop.f32.mrf.mxu0  ;;  %v5925_v22 = vmax.f32 %v4105_v34, 0.0 }
 0x16f   :  { %5922 = vst [vmem:[#allocation29_spill] sm:$0xff] %v4547_v23  ;;  %v3180_v0 = vpop.permute.xlu1 %3179  ;;  %v4554_v3 = vmax.f32 %v5923_v20, %v3177_v17  ;;  %v4582_v41 = vadd.f32 %v4055_v58, %v947_v6  ;;  %v5935_v6 = vmax.f32 %v4131_v50, 0.0 }
 0x170   :  { %v4558_v57 = vmax.f32 %v5925_v22, %v3176_v49  ;;  %v3182_v33 = vunpack.i.h.bf16 %v3180_v0  ;;  %v3181_v45 = vunpack.i.l.bf16 %v3180_v0  ;;  %v3013_v21 = vpop.f32.mrf.mxu0  ;;  %v3113_v5 = vpop.f32.mrf.mxu1 }
 0x171   :  { %5924 = vst [vmem:[#allocation30_spill] sm:$0xff] %v4554_v3  ;;  %5931 = vst [vmem:[#allocation34_spill] sm:$0xff] %v4582_v41 }
 0x172   :  { %5926 = vst [vmem:[#allocation31_spill] sm:$0xff] %v4558_v57  ;;  %v4565_v25 = vmax.f32 %v5927_v43, %v3182_v33  ;;  %v4569_v39 = vmax.f32 %v5929_v61, %v3181_v45  ;;  %v950_v17 = vpop.f32.mrf.mxu1  ;;  %3339 = vrot.lane.b32.xlu1 %v3338_v26, %s3702_s0  ;;  %v750_v34 = vpop.f32.mrf.mxu0  ;;  %v3343_v38 = vpack.i.bf16 %v4554_v3, %v4558_v57 }
 0x173   :  { %v3190_v0 = vpop.permute.xlu0 %3189  ;;  %v3185_v20 = vpop.permute.xlu1 %3184  ;;  %v4593_v61 = vadd.f32 %v4055_v58, %v950_v17  ;;  %v5939_v17 = vmax.f32 %v4143_v59, 0.0 }
 0x174   :  { %5928 = vst [vmem:[#allocation32_spill] sm:$0xff] %v4565_v25  ;;  %5930 = vst [vmem:[#allocation33_spill] sm:$0xff] %v4569_v39  ;;  %v3192_v22 = vunpack.i.h.bf16 %v3190_v0  ;;  %v3191_v40 = vunpack.i.l.bf16 %v3190_v0  ;;  %v3014_v33 = vpop.f32.mrf.mxu0  ;;  %v3114_v5 = vpop.f32.mrf.mxu1  ;;  %v3187_v45 = vunpack.i.h.bf16 %v3185_v20  ;;  %v3186_v26 = vunpack.i.l.bf16 %v3185_v20 }
 0x175   :  { %v3348_v43 = vpack.i.bf16 %v4565_v25, %v4569_v39  ;;  %v4585_v0 = vadd.f32 %v4055_v58, %v747_v9  ;;  %v5932_v33 = vmax.f32 %v4547_v23, 0.0  ;;  %v5933_v5 = vmax.f32 %v4550_v4, 0.0 }
 0x176   :  { %v955_v49 = vpop.f32.mrf.mxu1  ;;  %3344 = vrot.lane.b32.xlu1 %v3343_v38, %s3703_s14  ;;  %v755_v21 = vpop.f32.mrf.mxu0  ;;  %v5934_v39 = vmax.f32 %v4146_v60, 0.0  ;;  %v4601_v25 = vmax.f32 %v5935_v6, %v3191_v40  ;;  %v5938_v23 = vmax.f32 %v4561_v31, 0.0  ;;  %v5941_v60 = vmax.f32 %v4134_v53, 0.0 }
 0x177   :  { %3349 = vrot.lane.b32.xlu0 %v3348_v43, %s3703_s14  ;;  %v3353_v20 = vpack.i.bf16 %v5933_v5, %v5932_v33  ;;  %v5937_v43 = vmax.f32 %v4544_v8, 0.0  ;;  %v4608_v33 = vadd.f32 %v4055_v58, %v750_v34  ;;  %v4612_v5 = vmax.f32 %v5939_v17, %v3187_v45 }
 0x178   :  { %v4597_v38 = vmax.f32 %v5934_v39, %v3192_v22  ;;  %5936 = vst [vmem:[#allocation35_spill] sm:$0xff] %v4601_v25  ;;  %v3017_v9 = vpop.f32.mrf.mxu0  ;;  %v3117_v57 = vpop.f32.mrf.mxu1  ;;  %v4616_v39 = vmax.f32 %v5941_v60, %v3186_v26  ;;  %v5835_v22 = vmax.f32 %v4582_v41, 0.0  ;;  %v4630_v59 = vadd.f32 %v4055_v58, %v955_v49 }
 0x179   :  { %v3358_v3 = vpack.i.bf16 %v5938_v23, %v5937_v43  ;;  %5940 = vst [vmem:[#allocation36_spill] sm:$0xff] %v4612_v5  ;;  %v5946_v49 = vmax.f32 %v4164_v18, 0.0  ;;  %v5949_v41 = vmax.f32 %v4608_v33, 0.0 }
 0x17a   :  { %5942 = vst [vmem:[#allocation37_spill] sm:$0xff] %v4616_v39  ;;  %v958_v50 = vpop.f32.mrf.mxu1  ;;  %3354 = vrot.lane.b32.xlu1 %v3353_v20, %s3702_s0  ;;  %v758_v57 = vpop.f32.mrf.mxu0  ;;  %v3368_v26 = vpack.i.bf16 %v4597_v38, %v4601_v25  ;;  %v3363_v60 = vpack.i.bf16 %v4612_v5, %v4616_v39  ;;  %v5945_v20 = vmax.f32 %v4170_v27, 0.0  ;;  %v5952_v27 = vmax.f32 %v4161_v14, 0.0 }
 0x17b   :  { %3359 = vrot.lane.b32.xlu0 %v3358_v3, %s3702_s0  ;;  %v3200_v23 = vpop.permute.xlu1 %3199  ;;  %v3195_v34 = vpop.permute.xlu0 %3194 }
 0x17c   :  { %v3197_v45 = vunpack.i.h.bf16 %v3195_v34  ;;  %v3196_v6 = vunpack.i.l.bf16 %v3195_v34  ;;  %v3018_v9 = vpop.f32.mrf.mxu0  ;;  %v3118_v53 = vpop.f32.mrf.mxu1  ;;  %v3202_v43 = vunpack.i.h.bf16 %v3200_v23  ;;  %v3201_v17 = vunpack.i.l.bf16 %v3200_v23 }
 0x17d   :  { %v4633_v34 = vadd.f32 %v4055_v58, %v755_v21  ;;  %v5944_v9 = vmax.f32 %v4593_v61, 0.0  ;;  %v4641_v53 = vadd.f32 %v4055_v58, %v758_v57  ;;  %v5950_v57 = vmax.f32 %v4173_v28, 0.0 }
 0x17e   :  { %v963_v40 = vpop.f32.mrf.mxu1  ;;  %3369 = vrot.lane.b32.xlu1 %v3368_v26, %s3703_s14  ;;  %v763_v3 = vpop.f32.mrf.mxu0  ;;  %v4645_v26 = vmax.f32 %v5945_v20, %v3197_v45  ;;  %v4649_v39 = vmax.f32 %v5946_v49, %v3196_v6  ;;  %v4664_v45 = vmax.f32 %v5952_v27, %v3201_v17 }
 0x17f   :  { %5943 = vst [vmem:[#allocation38_spill] sm:$0xff] %v4633_v34  ;;  %3364 = vrot.lane.b32.xlu0 %v3363_v60, %s3703_s14  ;;  %v3378_v23 = vpack.i.bf16 %v5944_v9, %v5835_v22  ;;  %v5948_v60 = vmax.f32 %v4585_v0, 0.0  ;;  %v4656_v9 = vadd.f32 %v4055_v58, %v958_v50  ;;  %v4660_v22 = vmax.f32 %v5950_v57, %v3202_v43 }
 0x180   :  { %5947 = vst [vmem:[#allocation39_spill] sm:$0xff] %v4649_v39  ;;  %v3021_v21 = vpop.f32.mrf.mxu0  ;;  %v3121_v5 = vpop.f32.mrf.mxu1  ;;  %5953 = vst [vmem:[#allocation41_spill] sm:$0xff] %v4664_v45  ;;  %v5840_v20 = vmax.f32 %v4633_v34, 0.0  ;;  %v3383_v17 = vpack.i.bf16 %v4645_v26, %v4649_v39  ;;  %v4678_v28 = vadd.f32 %v4055_v58, %v963_v40  ;;  %v5957_v40 = vmax.f32 %v4187_v46, 0.0 }
 0x181   :  { %v3373_v25 = vpack.i.bf16 %v5949_v41, %v5948_v60  ;;  %5951 = vst [vmem:[#allocation40_spill] sm:$0xff] %v4660_v22  ;;  %v3388_v27 = vpack.i.bf16 %v4660_v22, %v4664_v45  ;;  %v5960_v34 = vmax.f32 %v4656_v9, 0.0 }
 0x182   :  { %v966_v18 = vpop.f32.mrf.mxu1  ;;  %3379 = vrot.lane.b32.xlu1 %v3378_v23, %s3702_s0  ;;  %v766_v5 = vpop.f32.mrf.mxu0  ;;  %5954 = vst [vmem:[#allocation42_spill] sm:$0xff] %v4678_v28  ;;  %v5956_v23 = vmax.f32 %v4199_v63, 0.0  ;;  %v5963_v63 = vmax.f32 %v4190_v52, 0.0 }
 0x183   :  { %3374 = vrot.lane.b32.xlu0 %v3373_v25, %s3702_s0  ;;  %v3210_v41 = vpop.permute.xlu0 %3209  ;;  %v3205_v50 = vpop.permute.xlu1 %3204 }
 0x184   :  { %v3212_v43 = vunpack.i.h.bf16 %v3210_v41  ;;  %v3211_v49 = vunpack.i.l.bf16 %v3210_v41  ;;  %v3022_v21 = vpop.f32.mrf.mxu0  ;;  %v3122_v14 = vpop.f32.mrf.mxu1  ;;  %v3207_v60 = vunpack.i.h.bf16 %v3205_v50  ;;  %v3206_v57 = vunpack.i.l.bf16 %v3205_v50 }
 0x185   :  { %v4681_v41 = vadd.f32 %v4055_v58, %v763_v3  ;;  %v5955_v21 = vmax.f32 %v4641_v53, 0.0  ;;  %v4689_v14 = vadd.f32 %v4055_v58, %v966_v18  ;;  %v5961_v18 = vmax.f32 %v4196_v62, 0.0 }
 0x186   :  { %v971_v6 = vpop.f32.mrf.mxu1  ;;  %3384 = vrot.lane.b32.xlu1 %v3383_v17, %s3703_s14  ;;  %v771_v25 = vpop.f32.mrf.mxu0  ;;  %v4693_v17 = vmax.f32 %v5956_v23, %v3212_v43  ;;  %v4697_v45 = vmax.f32 %v5957_v40, %v3211_v49  ;;  %v4712_v43 = vmax.f32 %v5963_v63, %v3206_v57  ;;  %v5845_v49 = vmax.f32 %v4678_v28, 0.0 }
 0x187   :  { %3389 = vrot.lane.b32.xlu0 %v3388_v27, %s3703_s14  ;;  %v3393_v50 = vpack.i.bf16 %v5955_v21, %v5840_v20  ;;  %v5959_v27 = vmax.f32 %v4630_v59, 0.0  ;;  %v4704_v21 = vadd.f32 %v4055_v58, %v766_v5  ;;  %v4708_v20 = vmax.f32 %v5961_v18, %v3207_v60 }
 0x188   :  { %5958 = vst [vmem:[#allocation43_spill] sm:$0xff] %v4697_v45  ;;  %v3025_v3 = vpop.f32.mrf.mxu0  ;;  %v3125_v22 = vpop.f32.mrf.mxu1  ;;  %5964 = vst [vmem:[#allocation45_spill] sm:$0xff] %v4712_v43  ;;  %v5846_v62 = vmax.f32 %v4689_v14, 0.0  ;;  %v3408_v57 = vpack.i.bf16 %v4693_v17, %v4697_v45 }
 0x189   :  { %v3398_v39 = vpack.i.bf16 %v5960_v34, %v5959_v27  ;;  %5962 = vst [vmem:[#allocation44_spill] sm:$0xff] %v4708_v20  ;;  %v3403_v18 = vpack.i.bf16 %v4708_v20, %v4712_v43  ;;  %v5970_v28 = vmax.f32 %v4704_v21, 0.0 }
 0x18a   :  { %v974_v46 = vpop.f32.mrf.mxu1  ;;  %3394 = vrot.lane.b32.xlu1 %v3393_v50, %s3702_s0  ;;  %v774_v22 = vpop.f32.mrf.mxu0  ;;  %v5966_v50 = vmax.f32 %v4222_v54, 0.0  ;;  %v5973_v54 = vmax.f32 %v4213_v32, 0.0 }
 0x18b   :  { %3399 = vrot.lane.b32.xlu0 %v3398_v39, %s3702_s0  ;;  %v3220_v58 = vpop.permute.xlu1 %3219  ;;  %v3215_v34 = vpop.permute.xlu0 %3214 }
 0x18c   :  { %v3217_v5 = vunpack.i.h.bf16 %v3215_v34  ;;  %v3216_v60 = vunpack.i.l.bf16 %v3215_v34  ;;  %v3026_v40 = vpop.f32.mrf.mxu0  ;;  %v3126_v52 = vpop.f32.mrf.mxu1  ;;  %v3222_v3 = vunpack.i.h.bf16 %v3220_v58  ;;  %v3221_v27 = vunpack.i.l.bf16 %v3220_v58  ;;  %v4728_v34 = vld [vmem:[%s5731_s2] ss:$0 sm:$0xff] }
 0x18d   :  { %v4731_v40 = vadd.f32 %v4728_v34, %v971_v6  ;;  %v4734_v52 = vadd.f32 %v4728_v34, %v771_v25  ;;  %v3418_v58 = vpack.i.bf16 %v5846_v62, %v5845_v49  ;;  %v5967_v6 = vmax.f32 %v4216_v42, 0.0 }
 0x18e   :  { %v979_v63 = vpop.f32.mrf.mxu1  ;;  %3409 = vrot.lane.b32.xlu1 %v3408_v57, %s3703_s14  ;;  %v779_v39 = vpop.f32.mrf.mxu0  ;;  %v4742_v57 = vadd.f32 %v4728_v34, %v774_v22  ;;  %v4746_v23 = vmax.f32 %v5966_v50, %v3217_v5  ;;  %v4757_v49 = vadd.f32 %v4728_v34, %v974_v46  ;;  %v5971_v22 = vmax.f32 %v4225_v55, 0.0 }
 0x18f   :  { %5965 = vst [vmem:[#allocation46_spill] sm:$0xff] %v4734_v52  ;;  %3404 = vrot.lane.b32.xlu0 %v3403_v18, %s3703_s14  ;;  %v4750_v43 = vmax.f32 %v5967_v6, %v3216_v60  ;;  %v5969_v18 = vmax.f32 %v4681_v41, 0.0  ;;  %v4765_v5 = vmax.f32 %v5973_v54, %v3221_v27  ;;  %v5851_v50 = vmax.f32 %v4734_v52, 0.0 }
 0x190   :  { %v3029_v25 = vpop.f32.mrf.mxu0  ;;  %v3129_v20 = vpop.f32.mrf.mxu1  ;;  %v4761_v62 = vmax.f32 %v5971_v22, %v3222_v3  ;;  %v4779_v55 = vadd.f32 %v4728_v34, %v979_v63  ;;  %v5979_v63 = vmax.f32 %v4239_v48, 0.0  ;;  %v5981_v52 = vmax.f32 %v4757_v49, 0.0 }
 0x191   :  { %5968 = vst [vmem:[#allocation47_spill] sm:$0xff] %v4750_v43  ;;  %v3413_v45 = vpack.i.bf16 %v5970_v28, %v5969_v18  ;;  %5974 = vst [vmem:[#allocation49_spill] sm:$0xff] %v4765_v5  ;;  %v3423_v27 = vpack.i.bf16 %v4746_v23, %v4750_v43 }
 0x192   :  { %5972 = vst [vmem:[#allocation48_spill] sm:$0xff] %v4761_v62  ;;  %v982_v42 = vpop.f32.mrf.mxu1  ;;  %3419 = vrot.lane.b32.xlu1 %v3418_v58, %s3702_s0  ;;  %v782_v20 = vpop.f32.mrf.mxu0  ;;  %v3428_v54 = vpack.i.bf16 %v4761_v62, %v4765_v5  ;;  %5975 = vst [vmem:[#allocation50_spill] sm:$0xff] %v4779_v55  ;;  %v5978_v58 = vmax.f32 %v4251_v51, 0.0  ;;  %v5983_v51 = vmax.f32 %v4242_v12, 0.0 }
 0x193   :  { %3414 = vrot.lane.b32.xlu0 %v3413_v45, %s3702_s0  ;;  %v3230_v28 = vpop.permute.xlu0 %3229  ;;  %v3225_v46 = vpop.permute.xlu1 %3224 }
 0x194   :  { %v3232_v3 = vunpack.i.h.bf16 %v3230_v28  ;;  %v3231_v6 = vunpack.i.l.bf16 %v3230_v28  ;;  %v3030_v25 = vpop.f32.mrf.mxu0  ;;  %v3130_v32 = vpop.f32.mrf.mxu1  ;;  %v3227_v18 = vunpack.i.h.bf16 %v3225_v46  ;;  %v3226_v22 = vunpack.i.l.bf16 %v3225_v46 }
 0x195   :  { %v4782_v28 = vadd.f32 %v4728_v34, %v779_v39  ;;  %v5976_v25 = vmax.f32 %v4742_v57, 0.0  ;;  %v4790_v32 = vadd.f32 %v4728_v34, %v982_v42  ;;  %v5982_v42 = vmax.f32 %v4248_v16, 0.0 }
 0x196   :  { %v987_v60 = vpop.f32.mrf.mxu1  ;;  %3424 = vrot.lane.b32.xlu1 %v3423_v27, %s3703_s14  ;;  %v787_v45 = vpop.f32.mrf.mxu0  ;;  %v4794_v27 = vmax.f32 %v5978_v58, %v3232_v3  ;;  %v4798_v5 = vmax.f32 %v5979_v63, %v3231_v6  ;;  %v4813_v3 = vmax.f32 %v5983_v51, %v3226_v22  ;;  %v5853_v6 = vmax.f32 %v4779_v55, 0.0 }
 0x197   :  { %3429 = vrot.lane.b32.xlu0 %v3428_v54, %s3703_s14  ;;  %v3433_v46 = vpack.i.bf16 %v5976_v25, %v5851_v50  ;;  %5977 = vst [vmem:[#allocation51_spill] sm:$0xff] %v4790_v32  ;;  %v5980_v54 = vmax.f32 %v4731_v40, 0.0  ;;  %v4805_v25 = vadd.f32 %v4728_v34, %v782_v20  ;;  %v4809_v50 = vmax.f32 %v5982_v42, %v3227_v18 }
 0x198   :  { %v3033_v39 = vpop.f32.mrf.mxu0  ;;  %v3133_v62 = vpop.f32.mrf.mxu1  ;;  %5984 = vst [vmem:[#allocation52_spill] sm:$0xff] %v4813_v3  ;;  %v5855_v58 = vmax.f32 %v4782_v28, 0.0  ;;  %v5854_v20 = vmax.f32 %v4790_v32, 0.0  ;;  %v3448_v12 = vpack.i.bf16 %v4794_v27, %v4798_v5  ;;  %v4833_v51 = vadd.f32 %v4728_v34, %v787_v45 }
 0x199   :  { %v3438_v43 = vpack.i.bf16 %v5981_v52, %v5980_v54 }
 0x19a   :  { %v990_v48 = vpop.f32.mrf.mxu1  ;;  %3434 = vrot.lane.b32.xlu1 %v3433_v46, %s3702_s0  ;;  %v790_v62 = vpop.f32.mrf.mxu0  ;;  %v4824_v46 = vadd.f32 %v4728_v34, %v987_v60  ;;  %v3458_v45 = vpack.i.bf16 %v5854_v20, %v5853_v6 }
 0x19b   :  { %3439 = vrot.lane.b32.xlu0 %v3438_v43, %s3702_s0  ;;  %v3235_v52 = vpop.permute.xlu0 %3234  ;;  %v4827_v54 = vadd.f32 %v4728_v34, %v990_v48  ;;  %v3443_v43 = vpack.i.bf16 %v4809_v50, %v4813_v3  ;;  %v5986_v48 = vmax.f32 %v4268_v24, 0.0 }
 0x19c   :  { %v3237_v16 = vunpack.i.h.bf16 %v3235_v52  ;;  %v3236_v18 = vunpack.i.l.bf16 %v3235_v52  ;;  %v3034_v63 = vpop.f32.mrf.mxu0  ;;  %v3134_v39 = vpop.f32.mrf.mxu1  ;;  %v4836_v52 = vadd.f32 %v4728_v34, %v790_v62  ;;  %v5988_v62 = vmax.f32 %v4805_v25, 0.0 }
 0x19d   :  { %v3240_v63 = vpop.permute.xlu1 %3239  ;;  %v5985_v39 = vmax.f32 %v4274_v37, 0.0 }
 0x19e   :  { %3449 = vrot.lane.b32.xlu1 %v3448_v12, %s3703_s14  ;;  %v795_v42 = vpop.f32.mrf.mxu0  ;;  %v4844_v22 = vmax.f32 %v5986_v48, %v3236_v18  ;;  %v3453_v3 = vpack.i.bf16 %v5988_v62, %v5855_v58 }
 0x19f   :  { %v4840_v60 = vmax.f32 %v5985_v39, %v3237_v16  ;;  %3444 = vrot.lane.b32.xlu0 %v3443_v43, %s3703_s14  ;;  %v5989_v16 = vmax.f32 %v4824_v46, 0.0  ;;  %v4868_v18 = vadd.f32 %v4728_v34, %v795_v42  ;;  %v5991_v43 = vmax.f32 %v4300_v30, 0.0 }
 0x1a0   :  { %5987 = vst [vmem:[#allocation53_spill] sm:$0xff] %v4844_v22  ;;  %v3037_v12 = vpop.f32.mrf.mxu0  ;;  %v5994_v42 = vmax.f32 %v4836_v52, 0.0  ;;  %v5996_v30 = vmax.f32 %v4291_v36, 0.0 }
 0x1a1   :  { %v3463_v12 = vpack.i.bf16 %v4840_v60, %v4844_v22 }
 0x1a2   :  { %3459 = vrot.lane.b32.xlu1 %v3458_v45, %s3702_s0  ;;  %v798_v24 = vpop.f32.mrf.mxu0  ;;  %v5990_v45 = vmax.f32 %v4827_v54, 0.0 }
 0x1a3   :  { %3454 = vrot.lane.b32.xlu0 %v3453_v3, %s3702_s0  ;;  %v3250_v39 = vpop.permute.xlu0 %3249  ;;  %v3245_v48 = vpop.permute.xlu1 %3244  ;;  %v4871_v3 = vadd.f32 %v4728_v34, %v798_v24  ;;  %v5995_v34 = vmax.f32 %v4303_v11, 0.0 }
 0x1a4   :  { %v3252_v6 = vunpack.i.h.bf16 %v3250_v39  ;;  %v3251_v62 = vunpack.i.l.bf16 %v3250_v39  ;;  %v3247_v20 = vunpack.i.h.bf16 %v3245_v48  ;;  %v3246_v58 = vunpack.i.l.bf16 %v3245_v48  ;;  %v3038_v37 = vpop.f32.mrf.mxu0 }
 0x1a5   :  { %v3473_v55 = vpack.i.bf16 %v5990_v45, %v5989_v16  ;;  %v5992_v39 = vmax.f32 %v4294_v1, 0.0  ;;  %v3242_v37 = vunpack.i.h.bf16 %v3240_v63  ;;  %v5993_v16 = vmax.f32 %v4833_v51, 0.0 }
 0x1a6   :  { %v4875_v32 = vmax.f32 %v5991_v43, %v3247_v20  ;;  %3464 = vrot.lane.b32.xlu1 %v3463_v12, %s3703_s14  ;;  %v4889_v24 = vmax.f32 %v5995_v34, %v3252_v6  ;;  %v4893_v20 = vmax.f32 %v5996_v30, %v3251_v62  ;;  %v5859_v43 = vmax.f32 %v4868_v18, 0.0 }
 0x1a7   :  { %v4879_v22 = vmax.f32 %v5992_v39, %v3246_v58  ;;  %3474 = vrot.lane.b32.xlu0 %v3473_v55, %s3702_s0  ;;  %v3468_v48 = vpack.i.bf16 %v5994_v42, %v5993_v16  ;;  %v3241_v58 = vunpack.i.l.bf16 %v3240_v63  ;;  %v5860_v55 = vmax.f32 %v4871_v3, 0.0 }
 0x1a8   :  { %v5997_v6 = vmax.f32 %v4277_v19, 0.0  ;;  %v3493_v39 = vpack.i.bf16 %v4889_v24, %v4893_v20  ;;  %v5998_v63 = vmax.f32 %v4265_v13, 0.0  ;;  %v6000_v19 = vmax.f32 %v4327_v7, 0.0 }
 0x1a9   :  { %v3478_v1 = vpack.i.bf16 %v4875_v32, %v4879_v22  ;;  %v3483_v42 = vpack.i.bf16 %v5860_v55, %v5859_v43  ;;  %v6001_v30 = vmax.f32 %v4317_v2, 0.0  ;;  %v6016_v55 = vld [vmem:[#allocation3_spill] sm:$0xff] }
 0x1aa   :  { %3469 = vrot.lane.b32.xlu1 %v3468_v48, %s3702_s0  ;;  %v4903_v45 = vmax.f32 %v5997_v6, %v3242_v37  ;;  %v4909_v16 = vmax.f32 %v5998_v63, %v3241_v58  ;;  %v6002_v58 = vmax.f32 %v4330_v56, 0.0 }
 0x1ab   :  { %3479 = vrot.lane.b32.xlu0 %v3478_v1, %s3703_s14  ;;  %v3260_v12 = vpop.permute.xlu1 %3259  ;;  %v3255_v11 = vpop.permute.xlu0 %3254 }
 0x1ac   :  { %v3257_v36 = vunpack.i.h.bf16 %v3255_v11  ;;  %v3256_v62 = vunpack.i.l.bf16 %v3255_v11  ;;  %5999 = vst [vmem:[#allocation54_spill] sm:$0xff] %v4909_v16  ;;  %v3262_v48 = vunpack.i.h.bf16 %v3260_v12  ;;  %v3261_v34 = vunpack.i.l.bf16 %v3260_v12  ;;  %v6004_v12 = vld [vmem:[#allocation2_spill] sm:$0xff] }
 0x1ad   :  { %v6005_v6 = vmax.f32 %v6004_v12, 0.0  ;;  %v3488_v2 = vpack.i.bf16 %v4903_v45, %v4909_v16  ;;  %v6017_v16 = vmax.f32 %v6016_v55, 0.0 }
 0x1ae   :  { %v4917_v37 = vmax.f32 %v6000_v19, %v3257_v36  ;;  %v4921_v1 = vmax.f32 %v6001_v30, %v3256_v62  ;;  %3494 = vrot.lane.b32.xlu1 %v3493_v39, %s3703_s14  ;;  %v4929_v11 = vmax.f32 %v6002_v58, %v3262_v48  ;;  %v6007_v48 = vld [vmem:[#allocation6_spill] sm:$0xff]  ;;  %v6010_v58 = vld [vmem:[#allocation4_spill] sm:$0xff] }
 0x1af   :  { %3484 = vrot.lane.b32.xlu0 %v3483_v42, %s3702_s0  ;;  %v4933_v7 = vmax.f32 %v6005_v6, %v3261_v34  ;;  %v6008_v30 = vmax.f32 %v6007_v48, 0.0  ;;  %v6011_v12 = vmax.f32 %v6010_v58, 0.0 }
 0x1b0   :  { %v3498_v13 = vpack.i.bf16 %v4917_v37, %v4921_v1  ;;  %6003 = vst [vmem:[#allocation55_spill] sm:$0xff] %v4929_v11 }
 0x1b1   :  { %6006 = vst [vmem:[#allocation2_spill] sm:$0xff] %v4933_v7  ;;  %v3503_v56 = vpack.i.bf16 %v4929_v11, %v4933_v7 }
 0x1b2   :  { %3499 = vrot.lane.b32.xlu1 %v3498_v13, %s3703_s14  ;;  %v6013_v13 = vld [vmem:[#allocation5_spill] sm:$0xff] }
 0x1b3   :  { %3489 = vrot.lane.b32.xlu0 %v3488_v2, %s3703_s14  ;;  %v3270_v36 = vpop.permute.xlu0 %3269  ;;  %v3265_v62 = vpop.permute.xlu1 %3264  ;;  %v6014_v43 = vmax.f32 %v6013_v13, 0.0 }
 0x1b4   :  { %v3272_v39 = vunpack.i.h.bf16 %v3270_v36  ;;  %v3271_v63 = vunpack.i.l.bf16 %v3270_v36  ;;  %v3267_v42 = vunpack.i.h.bf16 %v3265_v62  ;;  %v3266_v19 = vunpack.i.l.bf16 %v3265_v62 }
 0x1b6   :  { %v4943_v34 = vmax.f32 %v6008_v30, %v3272_v39  ;;  %v4947_v6 = vmax.f32 %v6011_v12, %v3271_v63  ;;  %v4951_v2 = vmax.f32 %v6014_v43, %v3267_v42  ;;  %v4955_v36 = vmax.f32 %v6017_v16, %v3266_v19  ;;  %v6019_v16 = vld [vmem:[#allocation10_spill] sm:$0xff] }
 0x1b7   :  { %3504 = vrot.lane.b32.xlu0 %v3503_v56, %s3703_s14  ;;  %v6020_v19 = vmax.f32 %v6019_v16, 0.0  ;;  %v6022_v56 = vld [vmem:[#allocation8_spill] sm:$0xff] }
 0x1b8   :  { %6009 = vst [vmem:[#allocation6_spill] sm:$0xff] %v4943_v34  ;;  %6012 = vst [vmem:[#allocation4_spill] sm:$0xff] %v4947_v6  ;;  %v3513_v62 = vpack.i.bf16 %v4943_v34, %v4947_v6  ;;  %v3508_v39 = vpack.i.bf16 %v4951_v2, %v4955_v36  ;;  %v6023_v12 = vmax.f32 %v6022_v56, 0.0  ;;  %v6025_v6 = vld [vmem:[#allocation9_spill] sm:$0xff] }
 0x1b9   :  { %6015 = vst [vmem:[#allocation5_spill] sm:$0xff] %v4951_v2  ;;  %6018 = vst [vmem:[#allocation3_spill] sm:$0xff] %v4955_v36  ;;  %v6026_v36 = vmax.f32 %v6025_v6, 0.0 }
 0x1ba   :  { %3514 = vrot.lane.b32.xlu1 %v3513_v62, %s3703_s14  ;;  %v6028_v62 = vld [vmem:[#allocation7_spill] sm:$0xff] }
 0x1bb   :  { %3509 = vrot.lane.b32.xlu0 %v3508_v39, %s3703_s14  ;;  %v3280_v63 = vpop.permute.xlu1 %3279  ;;  %v3275_v48 = vpop.permute.xlu0 %3274  ;;  %v6029_v39 = vmax.f32 %v6028_v62, 0.0 }
 0x1bc   :  { %v3282_v43 = vunpack.i.h.bf16 %v3280_v63  ;;  %v3281_v42 = vunpack.i.l.bf16 %v3280_v63  ;;  %v3277_v30 = vunpack.i.h.bf16 %v3275_v48  ;;  %v3276_v55 = vunpack.i.l.bf16 %v3275_v48 }
 0x1be   :  { %v4966_v58 = vmax.f32 %v6020_v19, %v3282_v43  ;;  %v4970_v13 = vmax.f32 %v6023_v12, %v3281_v42  ;;  %v4974_v2 = vmax.f32 %v6026_v36, %v3277_v30  ;;  %v4978_v34 = vmax.f32 %v6029_v39, %v3276_v55  ;;  %v6031_v19 = vld [vmem:[#allocation14_spill] sm:$0xff]  ;;  %v6034_v12 = vld [vmem:[#allocation12_spill] sm:$0xff] }
 0x1bf   :  { %v6032_v56 = vmax.f32 %v6031_v19, 0.0  ;;  %v6035_v62 = vmax.f32 %v6034_v12, 0.0 }
 0x1c0   :  { %6021 = vst [vmem:[#allocation10_spill] sm:$0xff] %v4966_v58  ;;  %6024 = vst [vmem:[#allocation8_spill] sm:$0xff] %v4970_v13  ;;  %v3518_v63 = vpack.i.bf16 %v4974_v2, %v4978_v34  ;;  %v3523_v48 = vpack.i.bf16 %v4966_v58, %v4970_v13 }
 0x1c1   :  { %6027 = vst [vmem:[#allocation9_spill] sm:$0xff] %v4974_v2  ;;  %6030 = vst [vmem:[#allocation7_spill] sm:$0xff] %v4978_v34  ;;  %v6037_v34 = vld [vmem:[#allocation13_spill] sm:$0xff] }
 0x1c2   :  { %3519 = vrot.lane.b32.xlu1 %v3518_v63, %s3703_s14  ;;  %3524 = vrot.lane.b32.xlu0 %v3523_v48, %s3703_s14  ;;  %v6038_v13 = vmax.f32 %v6037_v34, 0.0  ;;  %v6040_v63 = vld [vmem:[#allocation11_spill] sm:$0xff] }
 0x1c3   :  { %v3290_v43 = vpop.permute.xlu0 %3289  ;;  %v3285_v42 = vpop.permute.xlu1 %3284  ;;  %v6041_v48 = vmax.f32 %v6040_v63, 0.0 }
 0x1c4   :  { %v3292_v16 = vunpack.i.h.bf16 %v3290_v43  ;;  %v3291_v6 = vunpack.i.l.bf16 %v3290_v43  ;;  %v3287_v36 = vunpack.i.h.bf16 %v3285_v42  ;;  %v3286_v30 = vunpack.i.l.bf16 %v3285_v42 }
 0x1c6   :  { %v4988_v55 = vmax.f32 %v6032_v56, %v3292_v16  ;;  %v4992_v39 = vmax.f32 %v6035_v62, %v3291_v6  ;;  %v4996_v58 = vmax.f32 %v6038_v13, %v3287_v36  ;;  %v5000_v2 = vmax.f32 %v6041_v48, %v3286_v30  ;;  %v6043_v56 = vld [vmem:[#allocation18_spill] sm:$0xff]  ;;  %v6046_v62 = vld [vmem:[#allocation16_spill] sm:$0xff] }
 0x1c7   :  { %v6044_v12 = vmax.f32 %v6043_v56, 0.0  ;;  %v6047_v63 = vmax.f32 %v6046_v62, 0.0 }
 0x1c8   :  { %6033 = vst [vmem:[#allocation14_spill] sm:$0xff] %v4988_v55  ;;  %6036 = vst [vmem:[#allocation12_spill] sm:$0xff] %v4992_v39  ;;  %v3533_v43 = vpack.i.bf16 %v4988_v55, %v4992_v39  ;;  %v3528_v42 = vpack.i.bf16 %v4996_v58, %v5000_v2  ;;  %v6049_v39 = vld [vmem:[#allocation17_spill] sm:$0xff] }
 0x1c9   :  { %6039 = vst [vmem:[#allocation13_spill] sm:$0xff] %v4996_v58  ;;  %6042 = vst [vmem:[#allocation11_spill] sm:$0xff] %v5000_v2  ;;  %v6050_v2 = vmax.f32 %v6049_v39, 0.0 }
 0x1ca   :  { %3534 = vrot.lane.b32.xlu1 %v3533_v43, %s3703_s14  ;;  %3529 = vrot.lane.b32.xlu0 %v3528_v42, %s3703_s14  ;;  %v6052_v43 = vld [vmem:[#allocation15_spill] sm:$0xff] }
 0x1cb   :  { %v3300_v16 = vpop.permute.xlu1 %3299  ;;  %v3295_v6 = vpop.permute.xlu0 %3294  ;;  %v6053_v42 = vmax.f32 %v6052_v43, 0.0 }
 0x1cc   :  { %v3302_v19 = vunpack.i.h.bf16 %v3300_v16  ;;  %v3301_v34 = vunpack.i.l.bf16 %v3300_v16  ;;  %v3297_v13 = vunpack.i.h.bf16 %v3295_v6  ;;  %v3296_v36 = vunpack.i.l.bf16 %v3295_v6 }
 0x1ce   :  { %v5010_v30 = vmax.f32 %v6044_v12, %v3302_v19  ;;  %v5014_v48 = vmax.f32 %v6047_v63, %v3301_v34  ;;  %v5018_v58 = vmax.f32 %v6050_v2, %v3297_v13  ;;  %v5022_v55 = vmax.f32 %v6053_v42, %v3296_v36  ;;  %v6055_v63 = vld [vmem:[#allocation21_spill] sm:$0xff] }
 0x1d0   :  { %6045 = vst [vmem:[#allocation18_spill] sm:$0xff] %v5010_v30  ;;  %6048 = vst [vmem:[#allocation16_spill] sm:$0xff] %v5014_v48  ;;  %v3538_v16 = vpack.i.bf16 %v5018_v58, %v5022_v55  ;;  %v3543_v6 = vpack.i.bf16 %v5010_v30, %v5014_v48 }
 0x1d1   :  { %6051 = vst [vmem:[#allocation17_spill] sm:$0xff] %v5018_v58  ;;  %6054 = vst [vmem:[#allocation15_spill] sm:$0xff] %v5022_v55 }
 0x1d2   :  { %3539 = vrot.lane.b32.xlu1 %v3538_v16, %s3703_s14  ;;  %3544 = vrot.lane.b32.xlu0 %v3543_v6, %s3703_s14 }
 0x1d4   :  { %v3305_v19 = vpop.permute.xlu1 %3304  ;;  %v3310_v34 = vpop.permute.xlu0 %3309 }
 0x1d5   :  { %v3307_v56 = vunpack.i.h.bf16 %v3305_v19  ;;  %v3306_v39 = vunpack.i.l.bf16 %v3305_v19  ;;  %v3312_v2 = vunpack.i.h.bf16 %v3310_v34  ;;  %v3311_v13 = vunpack.i.l.bf16 %v3310_v34  ;;  %v6058_v34 = vld [vmem:[#allocation20_spill] sm:$0xff] }
 0x1d7   :  { %v1975_v12 = vmax.f32 %v4470_v10, %v3307_v56  ;;  %v1974_v36 = vmax.f32 %v4474_v15, %v3306_v39  ;;  %v2025_v62 = vmax.f32 %v4462_v44, %v3312_v2  ;;  %v2024_v43 = vmax.f32 %v6055_v63, %v3311_v13  ;;  %v6060_v39 = vld [vmem:[#allocation19_spill] sm:$0xff] }
 0x1d8   :  { %v3320_v42 = vpop.permute.xlu0 %3319  ;;  %v3315_v48 = vpop.permute.xlu1 %3314  ;;  %v6056_v15 = vmax.f32 %v4458_v35, 0.0  ;;  %v6057_v10 = vmax.f32 %v4452_v47, 0.0  ;;  %v6061_v2 = vmax.f32 %v6060_v39, 0.0  ;;  %v6063_v47 = vld [vmem:[#allocation24_spill] sm:$0xff] }
 0x1d9   :  { %v2772_v16 = vpack.c.bf16 %v1975_v12, %v1975_v12  ;;  %v2771_v30 = vpack.c.bf16 %v1974_v36, %v1974_v36  ;;  %v2822_v6 = vpack.c.bf16 %v2025_v62, %v2025_v62  ;;  %v2821_v55 = vpack.c.bf16 %v2024_v43, %v2024_v43 }
 0x1da   :  { %v3322_v58 = vunpack.i.h.bf16 %v3320_v42  ;;  %v3321_v7 = vunpack.i.l.bf16 %v3320_v42  ;;  %v3317_v19 = vunpack.i.h.bf16 %v3315_v48  ;;  %v3316_v11 = vunpack.i.l.bf16 %v3315_v48 }
 0x1db   :  { %2466 = vst.msk [vmem:[%s5732_s3 + $0x4] sm:$0xf] %vm2464_vm3, %v2772_v16  ;;  %2465 = vst.msk [vmem:[%s5732_s3] sm:$0xf] %vm2464_vm3, %v2771_v30  ;;  %v6059_v30 = vmax.f32 %v6058_v34, 0.0 }
 0x1dc   :  { %2516 = vst.msk [vmem:[%s5732_s3 + $0xcc] sm:$0xf] %vm2464_vm3, %v2822_v6  ;;  %2515 = vst.msk [vmem:[%s5732_s3 + $0xc8] sm:$0xf] %vm2464_vm3, %v2821_v55  ;;  %v5052_v44 = vmax.f32 %v6056_v15, %v3322_v58  ;;  %v5056_v48 = vmax.f32 %v6057_v10, %v3321_v7  ;;  %v5064_v13 = vmax.f32 %v6061_v2, %v3316_v11  ;;  %v3325_v12 = vpop.permute.xlu0 %3324  ;;  %v6064_v55 = vld [vmem:[#allocation25_spill] sm:$0xff]  ;;  %v6066_v2 = vld [vmem:[#allocation23_spill] sm:$0xff] }
 0x1dd   :  { %v5060_v56 = vmax.f32 %v6059_v30, %v3317_v19  ;;  %v3327_v36 = vunpack.i.h.bf16 %v3325_v12  ;;  %v3326_v62 = vunpack.i.l.bf16 %v3325_v12  ;;  %v6065_v30 = vld [vmem:[#allocation28_spill] sm:$0xff]  ;;  %v6067_v12 = vmax.f32 %v6066_v2, 0.0 }
 0x1de   :  { %6062 = vst [vmem:[#allocation21_spill] sm:$0xff] %v5064_v13  ;;  %v3553_v35 = vpack.i.bf16 %v5052_v44, %v5056_v48 }
 0x1df   :  { %v3548_v58 = vpack.i.bf16 %v5060_v56, %v5064_v13  ;;  %v1977_v7 = vmax.f32 %v6063_v47, %v3327_v36  ;;  %v1976_v63 = vmax.f32 %v6064_v55, %v3326_v62  ;;  %v6069_v62 = vld [vmem:[#allocation22_spill] sm:$0xff] }
 0x1e0   :  { %3554 = vrot.lane.b32.xlu1 %v3553_v35, %s3703_s14  ;;  %v3330_v43 = vpop.permute.xlu1 %3329  ;;  %v3335_v11 = vpop.permute.xlu0 %3334  ;;  %v6070_v35 = vmax.f32 %v6069_v62, 0.0 }
 0x1e1   :  { %3549 = vrot.lane.b32.xlu0 %v3548_v58, %s3703_s14  ;;  %v2774_v42 = vpack.c.bf16 %v1977_v7, %v1977_v7  ;;  %v2773_v16 = vpack.c.bf16 %v1976_v63, %v1976_v63  ;;  %v3332_v6 = vunpack.i.h.bf16 %v3330_v43  ;;  %v3331_v19 = vunpack.i.l.bf16 %v3330_v43 }
 0x1e2   :  { %v3337_v15 = vunpack.i.h.bf16 %v3335_v11  ;;  %v3336_v10 = vunpack.i.l.bf16 %v3335_v11 }
 0x1e3   :  { %2468 = vst.msk [vmem:[%s5732_s3 + $0xc] sm:$0xf] %vm2464_vm3, %v2774_v42  ;;  %2467 = vst.msk [vmem:[%s5732_s3 + $0x8] sm:$0xf] %vm2464_vm3, %v2773_v16  ;;  %v2027_v34 = vmax.f32 %v4522_v29, %v3332_v6  ;;  %v2026_v39 = vmax.f32 %v6065_v30, %v3331_v19  ;;  %v6072_v29 = vld [vmem:[#allocation27_spill] sm:$0xff]  ;;  %v6075_v6 = vld [vmem:[#allocation26_spill] sm:$0xff] }
 0x1e4   :  { %v5086_v36 = vmax.f32 %v6067_v12, %v3337_v15  ;;  %v5090_v58 = vmax.f32 %v6070_v35, %v3336_v10  ;;  %v3340_v47 = vpop.permute.xlu1 %3339  ;;  %v6073_v42 = vmax.f32 %v6072_v29, 0.0  ;;  %v6076_v19 = vmax.f32 %v6075_v6, 0.0  ;;  %v6078_v35 = vld [vmem:[#allocation30_spill] sm:$0xff]  ;;  %v6081_v29 = vld [vmem:[#allocation33_spill] sm:$0xff] }
 0x1e5   :  { %v2824_v7 = vpack.c.bf16 %v2027_v34, %v2027_v34  ;;  %v2823_v55 = vpack.c.bf16 %v2026_v39, %v2026_v39  ;;  %v3342_v63 = vunpack.i.h.bf16 %v3340_v47  ;;  %v3341_v43 = vunpack.i.l.bf16 %v3340_v47 }
 0x1e6   :  { %6068 = vst [vmem:[#allocation20_spill] sm:$0xff] %v5086_v36  ;;  %6071 = vst [vmem:[#allocation19_spill] sm:$0xff] %v5090_v58  ;;  %v3558_v11 = vpack.i.bf16 %v5086_v36, %v5090_v58 }
 0x1e7   :  { %2518 = vst.msk [vmem:[%s5732_s3 + $0xd4] sm:$0xf] %vm2464_vm3, %v2824_v7  ;;  %2517 = vst.msk [vmem:[%s5732_s3 + $0xd0] sm:$0xf] %vm2464_vm3, %v2823_v55  ;;  %v5104_v16 = vmax.f32 %v6073_v42, %v3342_v63  ;;  %v5108_v15 = vmax.f32 %v6076_v19, %v3341_v43  ;;  %v6079_v7 = vld [vmem:[#allocation31_spill] sm:$0xff]  ;;  %v6080_v63 = vld [vmem:[#allocation32_spill] sm:$0xff] }
 0x1e8   :  { %3559 = vrot.lane.b32.xlu1 %v3558_v11, %s3703_s14  ;;  %v3345_v10 = vpop.permute.xlu1 %3344 }
 0x1e9   :  { %6074 = vst [vmem:[#allocation24_spill] sm:$0xff] %v5104_v16  ;;  %6077 = vst [vmem:[#allocation25_spill] sm:$0xff] %v5108_v15  ;;  %v3347_v34 = vunpack.i.h.bf16 %v3345_v10  ;;  %v3346_v30 = vunpack.i.l.bf16 %v3345_v10  ;;  %v3350_v39 = vpop.permute.xlu0 %3349  ;;  %v3563_v2 = vpack.i.bf16 %v5104_v16, %v5108_v15 }
 0x1ea   :  { %v3352_v12 = vunpack.i.h.bf16 %v3350_v39  ;;  %v3351_v62 = vunpack.i.l.bf16 %v3350_v39 }
 0x1eb   :  { %v1979_v47 = vmax.f32 %v6078_v35, %v3347_v34  ;;  %v1978_v55 = vmax.f32 %v6079_v7, %v3346_v30  ;;  %3564 = vrot.lane.b32.xlu0 %v3563_v2, %s3703_s14  ;;  %v6082_v34 = vmax.f32 %v4550_v4, 0.0  ;;  %v6083_v2 = vld [vmem:[#allocation29_spill] sm:$0xff]  ;;  %v6085_v35 = vmax.f32 %v4561_v31, 0.0 }
 0x1ec   :  { %v2029_v43 = vmax.f32 %v6080_v63, %v3352_v12  ;;  %v2028_v42 = vmax.f32 %v6081_v29, %v3351_v62  ;;  %v3355_v11 = vpop.permute.xlu1 %3354  ;;  %v6084_v12 = vmax.f32 %v6083_v2, 0.0  ;;  %v6086_v4 = vmax.f32 %v4544_v8, 0.0  ;;  %v6088_v8 = vld [vmem:[#allocation36_spill] sm:$0xff] }
 0x1ed   :  { %v2776_v6 = vpack.c.bf16 %v1979_v47, %v1979_v47  ;;  %v2775_v19 = vpack.c.bf16 %v1978_v55, %v1978_v55  ;;  %v3360_v10 = vpop.permute.xlu0 %3359  ;;  %v3357_v58 = vunpack.i.h.bf16 %v3355_v11  ;;  %v3356_v36 = vunpack.i.l.bf16 %v3355_v11 }
 0x1ee   :  { %v2826_v13 = vpack.c.bf16 %v2029_v43, %v2029_v43  ;;  %v2825_v15 = vpack.c.bf16 %v2028_v42, %v2028_v42  ;;  %v3362_v16 = vunpack.i.h.bf16 %v3360_v10  ;;  %v3361_v39 = vunpack.i.l.bf16 %v3360_v10 }
 0x1ef   :  { %2470 = vst.msk [vmem:[%s5732_s3 + $0x14] sm:$0xf] %vm2464_vm3, %v2776_v6  ;;  %2469 = vst.msk [vmem:[%s5732_s3 + $0x10] sm:$0xf] %vm2464_vm3, %v2775_v19  ;;  %v5128_v30 = vmax.f32 %v6082_v34, %v3357_v58  ;;  %v5132_v62 = vmax.f32 %v6084_v12, %v3356_v36  ;;  %v6089_v6 = vld [vmem:[#allocation37_spill] sm:$0xff] }
 0x1f0   :  { %2520 = vst.msk [vmem:[%s5732_s3 + $0xdc] sm:$0xf] %vm2464_vm3, %v2826_v13  ;;  %2519 = vst.msk [vmem:[%s5732_s3 + $0xd8] sm:$0xf] %vm2464_vm3, %v2825_v15  ;;  %v5144_v47 = vmax.f32 %v6085_v35, %v3362_v16  ;;  %v5148_v58 = vmax.f32 %v6086_v4, %v3361_v39  ;;  %v3370_v36 = vpop.permute.xlu1 %3369  ;;  %v6087_v16 = vld [vmem:[#allocation35_spill] sm:$0xff] }
 0x1f1   :  { %v3365_v7 = vpop.permute.xlu0 %3364  ;;  %v3372_v55 = vunpack.i.h.bf16 %v3370_v36  ;;  %v3371_v63 = vunpack.i.l.bf16 %v3370_v36  ;;  %v3568_v13 = vpack.i.bf16 %v5128_v30, %v5132_v62 }
 0x1f2   :  { %v3367_v43 = vunpack.i.h.bf16 %v3365_v7  ;;  %v3366_v29 = vunpack.i.l.bf16 %v3365_v7  ;;  %v3573_v15 = vpack.i.bf16 %v5144_v47, %v5148_v58 }
 0x1f3   :  { %v2031_v31 = vmax.f32 %v4597_v38, %v3372_v55  ;;  %v2030_v42 = vmax.f32 %v6087_v16, %v3371_v63  ;;  %3569 = vrot.lane.b32.xlu0 %v3568_v13, %s3703_s14  ;;  %v6090_v55 = vmax.f32 %v4593_v61, 0.0  ;;  %v6091_v13 = vld [vmem:[#allocation34_spill] sm:$0xff]  ;;  %v6094_v61 = vmax.f32 %v4585_v0, 0.0  ;;  %v6096_v0 = vld [vmem:[#allocation40_spill] sm:$0xff] }
 0x1f4   :  { %v1981_v11 = vmax.f32 %v6088_v8, %v3367_v43  ;;  %v1980_v19 = vmax.f32 %v6089_v6, %v3366_v29  ;;  %3574 = vrot.lane.b32.xlu1 %v3573_v15, %s3703_s14  ;;  %v3380_v10 = vpop.permute.xlu1 %3379  ;;  %v6092_v43 = vmax.f32 %v6091_v13, 0.0  ;;  %v6093_v15 = vmax.f32 %v4608_v33, 0.0 }
 0x1f5   :  { %v2828_v39 = vpack.c.bf16 %v2031_v31, %v2031_v31  ;;  %v2827_v34 = vpack.c.bf16 %v2030_v42, %v2030_v42  ;;  %v3382_v2 = vunpack.i.h.bf16 %v3380_v10  ;;  %v3381_v12 = vunpack.i.l.bf16 %v3380_v10  ;;  %v3375_v35 = vpop.permute.xlu0 %3374 }
 0x1f6   :  { %v2778_v4 = vpack.c.bf16 %v1981_v11, %v1981_v11  ;;  %v2777_v36 = vpack.c.bf16 %v1980_v19, %v1980_v19  ;;  %v3377_v7 = vunpack.i.h.bf16 %v3375_v35  ;;  %v3376_v38 = vunpack.i.l.bf16 %v3375_v35 }
 0x1f7   :  { %2522 = vst.msk [vmem:[%s5732_s3 + $0xe4] sm:$0xf] %vm2464_vm3, %v2828_v39  ;;  %2521 = vst.msk [vmem:[%s5732_s3 + $0xe0] sm:$0xf] %vm2464_vm3, %v2827_v34  ;;  %v5170_v63 = vmax.f32 %v6090_v55, %v3382_v2  ;;  %v5174_v29 = vmax.f32 %v6092_v43, %v3381_v12  ;;  %v6095_v2 = vld [vmem:[#allocation39_spill] sm:$0xff] }
 0x1f8   :  { %2472 = vst.msk [vmem:[%s5732_s3 + $0x1c] sm:$0xf] %vm2464_vm3, %v2778_v4  ;;  %2471 = vst.msk [vmem:[%s5732_s3 + $0x18] sm:$0xf] %vm2464_vm3, %v2777_v36  ;;  %v5186_v31 = vmax.f32 %v6093_v15, %v3377_v7  ;;  %v5190_v16 = vmax.f32 %v6094_v61, %v3376_v38  ;;  %v3385_v42 = vpop.permute.xlu1 %3384  ;;  %v6097_v4 = vld [vmem:[#allocation41_spill] sm:$0xff] }
 0x1f9   :  { %v3387_v8 = vunpack.i.h.bf16 %v3385_v42  ;;  %v3386_v11 = vunpack.i.l.bf16 %v3385_v42  ;;  %v3390_v6 = vpop.permute.xlu0 %3389  ;;  %v3583_v19 = vpack.i.bf16 %v5170_v63, %v5174_v29 }
 0x1fa   :  { %v3392_v10 = vunpack.i.h.bf16 %v3390_v6  ;;  %v3391_v39 = vunpack.i.l.bf16 %v3390_v6  ;;  %v3578_v34 = vpack.i.bf16 %v5186_v31, %v5190_v16 }
 0x1fb   :  { %v1983_v33 = vmax.f32 %v4645_v26, %v3387_v8  ;;  %v1982_v12 = vmax.f32 %v6095_v2, %v3386_v11  ;;  %3584 = vrot.lane.b32.xlu0 %v3583_v19, %s3703_s14  ;;  %v6098_v8 = vmax.f32 %v4641_v53, 0.0  ;;  %v6099_v19 = vld [vmem:[#allocation38_spill] sm:$0xff]  ;;  %v6102_v53 = vmax.f32 %v4630_v59, 0.0  ;;  %v6104_v59 = vld [vmem:[#allocation44_spill] sm:$0xff] }
 0x1fc   :  { %v2033_v35 = vmax.f32 %v6096_v0, %v3392_v10  ;;  %v2032_v36 = vmax.f32 %v6097_v4, %v3391_v39  ;;  %3579 = vrot.lane.b32.xlu1 %v3578_v34, %s3703_s14  ;;  %v3395_v7 = vpop.permute.xlu1 %3394  ;;  %v6100_v10 = vmax.f32 %v6099_v19, 0.0  ;;  %v6101_v34 = vmax.f32 %v4656_v9, 0.0 }
 0x1fd   :  { %v2780_v38 = vpack.c.bf16 %v1983_v33, %v1983_v33  ;;  %v2779_v55 = vpack.c.bf16 %v1982_v12, %v1982_v12  ;;  %v3400_v13 = vpop.permute.xlu0 %3399  ;;  %v3397_v43 = vunpack.i.h.bf16 %v3395_v7  ;;  %v3396_v15 = vunpack.i.l.bf16 %v3395_v7 }
 0x1fe   :  { %v2830_v61 = vpack.c.bf16 %v2033_v35, %v2033_v35  ;;  %v2829_v42 = vpack.c.bf16 %v2032_v36, %v2032_v36  ;;  %v3402_v6 = vunpack.i.h.bf16 %v3400_v13  ;;  %v3401_v26 = vunpack.i.l.bf16 %v3400_v13  ;;  %v6103_v13 = vld [vmem:[#allocation43_spill] sm:$0xff] }
 0x1ff   :  { %2474 = vst.msk [vmem:[%s5732_s3 + $0x24] sm:$0xf] %vm2464_vm3, %v2780_v38  ;;  %2473 = vst.msk [vmem:[%s5732_s3 + $0x20] sm:$0xf] %vm2464_vm3, %v2779_v55  ;;  %v5212_v11 = vmax.f32 %v6098_v8, %v3397_v43  ;;  %v5216_v39 = vmax.f32 %v6100_v10, %v3396_v15 }
 0x200   :  { %2524 = vst.msk [vmem:[%s5732_s3 + $0xec] sm:$0xf] %vm2464_vm3, %v2830_v61  ;;  %2523 = vst.msk [vmem:[%s5732_s3 + $0xe8] sm:$0xf] %vm2464_vm3, %v2829_v42  ;;  %v5228_v33 = vmax.f32 %v6101_v34, %v3402_v6  ;;  %v5232_v2 = vmax.f32 %v6102_v53, %v3401_v26  ;;  %v3410_v12 = vpop.permute.xlu1 %3409  ;;  %v6105_v61 = vld [vmem:[#allocation45_spill] sm:$0xff] }
 0x201   :  { %v3405_v0 = vpop.permute.xlu0 %3404  ;;  %v3412_v35 = vunpack.i.h.bf16 %v3410_v12  ;;  %v3411_v4 = vunpack.i.l.bf16 %v3410_v12  ;;  %v3588_v36 = vpack.i.bf16 %v5212_v11, %v5216_v39 }
 0x202   :  { %v3407_v7 = vunpack.i.h.bf16 %v3405_v0  ;;  %v3406_v38 = vunpack.i.l.bf16 %v3405_v0  ;;  %v3593_v55 = vpack.i.bf16 %v5228_v33, %v5232_v2 }
 0x203   :  { %v2035_v9 = vmax.f32 %v4693_v17, %v3412_v35  ;;  %v2034_v43 = vmax.f32 %v6103_v13, %v3411_v4  ;;  %3589 = vrot.lane.b32.xlu0 %v3588_v36, %s3703_s14  ;;  %v6106_v35 = vmax.f32 %v4689_v14, 0.0  ;;  %v6107_v36 = vld [vmem:[#allocation42_spill] sm:$0xff]  ;;  %v6110_v14 = vmax.f32 %v4681_v41, 0.0  ;;  %v6112_v41 = vld [vmem:[#allocation48_spill] sm:$0xff] }
 0x204   :  { %v1985_v15 = vmax.f32 %v6104_v59, %v3407_v7  ;;  %v1984_v42 = vmax.f32 %v6105_v61, %v3406_v38  ;;  %3594 = vrot.lane.b32.xlu1 %v3593_v55, %s3703_s14  ;;  %v3420_v6 = vpop.permute.xlu1 %3419  ;;  %v6108_v7 = vmax.f32 %v6107_v36, 0.0  ;;  %v6109_v55 = vmax.f32 %v4704_v21, 0.0 }
 0x205   :  { %v2832_v26 = vpack.c.bf16 %v2035_v9, %v2035_v9  ;;  %v2831_v8 = vpack.c.bf16 %v2034_v43, %v2034_v43  ;;  %v3422_v19 = vunpack.i.h.bf16 %v3420_v6  ;;  %v3421_v10 = vunpack.i.l.bf16 %v3420_v6  ;;  %v3415_v34 = vpop.permute.xlu0 %3414 }
 0x206   :  { %v2782_v53 = vpack.c.bf16 %v1985_v15, %v1985_v15  ;;  %v2781_v12 = vpack.c.bf16 %v1984_v42, %v1984_v42  ;;  %v3417_v0 = vunpack.i.h.bf16 %v3415_v34  ;;  %v3416_v17 = vunpack.i.l.bf16 %v3415_v34 }
 0x207   :  { %2526 = vst.msk [vmem:[%s5732_s3 + $0xf4] sm:$0xf] %vm2464_vm3, %v2832_v26  ;;  %2525 = vst.msk [vmem:[%s5732_s3 + $0xf0] sm:$0xf] %vm2464_vm3, %v2831_v8  ;;  %v5254_v4 = vmax.f32 %v6106_v35, %v3422_v19  ;;  %v5258_v38 = vmax.f32 %v6108_v7, %v3421_v10  ;;  %v6111_v19 = vld [vmem:[#allocation47_spill] sm:$0xff] }
 0x208   :  { %2476 = vst.msk [vmem:[%s5732_s3 + $0x2c] sm:$0xf] %vm2464_vm3, %v2782_v53  ;;  %2475 = vst.msk [vmem:[%s5732_s3 + $0x28] sm:$0xf] %vm2464_vm3, %v2781_v12  ;;  %v5270_v9 = vmax.f32 %v6109_v55, %v3417_v0  ;;  %v5274_v13 = vmax.f32 %v6110_v14, %v3416_v17  ;;  %v3425_v43 = vpop.permute.xlu1 %3424  ;;  %v6113_v53 = vld [vmem:[#allocation49_spill] sm:$0xff] }
 0x209   :  { %v3427_v59 = vunpack.i.h.bf16 %v3425_v43  ;;  %v3426_v15 = vunpack.i.l.bf16 %v3425_v43  ;;  %v3430_v61 = vpop.permute.xlu0 %3429  ;;  %v3603_v42 = vpack.i.bf16 %v5254_v4, %v5258_v38 }
 0x20a   :  { %v3432_v6 = vunpack.i.h.bf16 %v3430_v61  ;;  %v3431_v26 = vunpack.i.l.bf16 %v3430_v61  ;;  %v3598_v8 = vpack.i.bf16 %v5270_v9, %v5274_v13 }
 0x20b   :  { %v1987_v21 = vmax.f32 %v4746_v23, %v3427_v59  ;;  %v1986_v10 = vmax.f32 %v6111_v19, %v3426_v15  ;;  %3604 = vrot.lane.b32.xlu0 %v3603_v42, %s3703_s14  ;;  %v6114_v59 = vmax.f32 %v4742_v57, 0.0  ;;  %v6115_v42 = vld [vmem:[#allocation46_spill] sm:$0xff]  ;;  %v6118_v57 = vmax.f32 %v4731_v40, 0.0 }
 0x20c   :  { %v2037_v34 = vmax.f32 %v6112_v41, %v3432_v6  ;;  %v2036_v12 = vmax.f32 %v6113_v53, %v3431_v26  ;;  %3599 = vrot.lane.b32.xlu1 %v3598_v8, %s3703_s14  ;;  %v3435_v0 = vpop.permute.xlu1 %3434  ;;  %v6116_v6 = vmax.f32 %v6115_v42, 0.0  ;;  %v6117_v8 = vmax.f32 %v4757_v49, 0.0 }
 0x20d   :  { %v2784_v17 = vpack.c.bf16 %v1987_v21, %v1987_v21  ;;  %v2783_v35 = vpack.c.bf16 %v1986_v10, %v1986_v10  ;;  %v3440_v36 = vpop.permute.xlu0 %3439  ;;  %v3437_v7 = vunpack.i.h.bf16 %v3435_v0  ;;  %v3436_v55 = vunpack.i.l.bf16 %v3435_v0 }
 0x20e   :  { %v2834_v14 = vpack.c.bf16 %v2037_v34, %v2037_v34  ;;  %v2833_v43 = vpack.c.bf16 %v2036_v12, %v2036_v12  ;;  %v3442_v61 = vunpack.i.h.bf16 %v3440_v36  ;;  %v3441_v23 = vunpack.i.l.bf16 %v3440_v36 }
 0x20f   :  { %2478 = vst.msk [vmem:[%s5732_s3 + $0x34] sm:$0xf] %vm2464_vm3, %v2784_v17  ;;  %2477 = vst.msk [vmem:[%s5732_s3 + $0x30] sm:$0xf] %vm2464_vm3, %v2783_v35  ;;  %v5296_v15 = vmax.f32 %v6114_v59, %v3437_v7  ;;  %v5300_v26 = vmax.f32 %v6116_v6, %v3436_v55  ;;  %v6119_v7 = vld [vmem:[#allocation52_spill] sm:$0xff] }
 0x210   :  { %2528 = vst.msk [vmem:[%s5732_s3 + $0xfc] sm:$0xf] %vm2464_vm3, %v2834_v14  ;;  %2527 = vst.msk [vmem:[%s5732_s3 + $0xf8] sm:$0xf] %vm2464_vm3, %v2833_v43  ;;  %v5312_v21 = vmax.f32 %v6117_v8, %v3442_v61  ;;  %v5316_v19 = vmax.f32 %v6118_v57, %v3441_v23  ;;  %v3450_v10 = vpop.permute.xlu1 %3449 }
 0x211   :  { %v3445_v41 = vpop.permute.xlu0 %3444  ;;  %v3452_v34 = vunpack.i.h.bf16 %v3450_v10  ;;  %v3451_v53 = vunpack.i.l.bf16 %v3450_v10  ;;  %v3608_v12 = vpack.i.bf16 %v5296_v15, %v5300_v26 }
 0x212   :  { %v3447_v0 = vunpack.i.h.bf16 %v3445_v41  ;;  %v3446_v17 = vunpack.i.l.bf16 %v3445_v41  ;;  %v3613_v35 = vpack.i.bf16 %v5312_v21, %v5316_v19 }
 0x213   :  { %v2039_v49 = vmax.f32 %v4794_v27, %v3452_v34  ;;  %v2038_v36 = vmax.f32 %v4798_v5, %v3451_v53  ;;  %3609 = vrot.lane.b32.xlu0 %v3608_v12, %s3703_s14  ;;  %v6120_v5 = vmax.f32 %v4805_v25, 0.0  ;;  %v6121_v27 = vmax.f32 %v4782_v28, 0.0 }
 0x214   :  { %v1989_v40 = vmax.f32 %v4809_v50, %v3447_v0  ;;  %v1988_v55 = vmax.f32 %v6119_v7, %v3446_v17  ;;  %3614 = vrot.lane.b32.xlu1 %v3613_v35, %s3703_s14  ;;  %v3460_v14 = vpop.permute.xlu1 %3459 }
 0x215   :  { %v2836_v43 = vpack.c.bf16 %v2039_v49, %v2039_v49  ;;  %v2835_v61 = vpack.c.bf16 %v2038_v36, %v2038_v36  ;;  %v3455_v23 = vpop.permute.xlu0 %3454  ;;  %v3462_v0 = vunpack.i.h.bf16 %v3460_v14  ;;  %v3461_v17 = vunpack.i.l.bf16 %v3460_v14  ;;  %v6122_v49 = vld [vmem:[#allocation53_spill] sm:$0xff] }
 0x216   :  { %v2786_v59 = vpack.c.bf16 %v1989_v40, %v1989_v40  ;;  %v2785_v42 = vpack.c.bf16 %v1988_v55, %v1988_v55  ;;  %v3457_v6 = vunpack.i.h.bf16 %v3455_v23  ;;  %v3456_v8 = vunpack.i.l.bf16 %v3455_v23 }
 0x217   :  { %2530 = vst.msk [vmem:[%s5732_s3 + $0x104] sm:$0xf] %vm2464_vm3, %v2836_v43  ;;  %2529 = vst.msk [vmem:[%s5732_s3 + $0x100] sm:$0xf] %vm2464_vm3, %v2835_v61 }
 0x218   :  { %2480 = vst.msk [vmem:[%s5732_s3 + $0x3c] sm:$0xf] %vm2464_vm3, %v2786_v59  ;;  %2479 = vst.msk [vmem:[%s5732_s3 + $0x38] sm:$0xf] %vm2464_vm3, %v2785_v42  ;;  %v5346_v50 = vmax.f32 %v6120_v5, %v3457_v6  ;;  %v5350_v57 = vmax.f32 %v6121_v27, %v3456_v8  ;;  %v3465_v10 = vpop.permute.xlu1 %3464  ;;  %v6123_v59 = vld [vmem:[#allocation51_spill] sm:$0xff]  ;;  %v6125_v8 = vld [vmem:[#allocation50_spill] sm:$0xff] }
 0x219   :  { %v3467_v41 = vunpack.i.h.bf16 %v3465_v10  ;;  %v3466_v34 = vunpack.i.l.bf16 %v3465_v10  ;;  %v3475_v53 = vpop.permute.xlu0 %3474  ;;  %v6124_v42 = vmax.f32 %v6123_v59, 0.0  ;;  %v6126_v14 = vmax.f32 %v6125_v8, 0.0 }
 0x21a   :  { %v3618_v12 = vpack.i.bf16 %v5346_v50, %v5350_v57  ;;  %v6128_v10 = vmax.f32 %v4833_v51, 0.0 }
 0x21b   :  { %v1991_v35 = vmax.f32 %v4840_v60, %v3467_v41  ;;  %v1990_v36 = vmax.f32 %v6122_v49, %v3466_v34  ;;  %v5359_v6 = vmax.f32 %v6124_v42, %v3462_v0  ;;  %v5363_v5 = vmax.f32 %v6126_v14, %v3461_v17 }
 0x21c   :  { %3619 = vrot.lane.b32.xlu1 %v3618_v12, %s3703_s14  ;;  %v3470_v25 = vpop.permute.xlu1 %3469  ;;  %v6127_v60 = vmax.f32 %v4836_v52, 0.0  ;;  %v3477_v34 = vunpack.i.h.bf16 %v3475_v53  ;;  %v3476_v12 = vunpack.i.l.bf16 %v3475_v53 }
 0x21d   :  { %v2788_v40 = vpack.c.bf16 %v1991_v35, %v1991_v35  ;;  %v2787_v28 = vpack.c.bf16 %v1990_v36, %v1990_v36  ;;  %v3480_v7 = vpop.permute.xlu0 %3479  ;;  %v3472_v55 = vunpack.i.h.bf16 %v3470_v25  ;;  %v3471_v43 = vunpack.i.l.bf16 %v3470_v25 }
 0x21e   :  { %v3482_v61 = vunpack.i.h.bf16 %v3480_v7  ;;  %v3481_v23 = vunpack.i.l.bf16 %v3480_v7 }
 0x21f   :  { %2482 = vst.msk [vmem:[%s5732_s3 + $0x44] sm:$0xf] %vm2464_vm3, %v2788_v40  ;;  %2481 = vst.msk [vmem:[%s5732_s3 + $0x40] sm:$0xf] %vm2464_vm3, %v2787_v28  ;;  %v5375_v27 = vmax.f32 %v6127_v60, %v3472_v55  ;;  %v5379_v41 = vmax.f32 %v6128_v10, %v3471_v43 }
 0x220   :  { %v1993_v0 = vmax.f32 %v4875_v32, %v3482_v61  ;;  %v1992_v17 = vmax.f32 %v4879_v22, %v3481_v23  ;;  %v3495_v35 = vpop.permute.xlu1 %3494  ;;  %v3633_v32 = vpack.i.bf16 %v5359_v6, %v5363_v5  ;;  %v6129_v22 = vmax.f32 %v4827_v54, 0.0 }
 0x221   :  { %v3497_v49 = vunpack.i.h.bf16 %v3495_v35  ;;  %v3496_v36 = vunpack.i.l.bf16 %v3495_v35  ;;  %v3485_v25 = vpop.permute.xlu0 %3484  ;;  %v3623_v40 = vpack.i.bf16 %v5375_v27, %v5379_v41  ;;  %v6130_v61 = vmax.f32 %v4824_v46, 0.0  ;;  %v6133_v35 = vld [vmem:[#allocation54_spill] sm:$0xff] }
 0x222   :  { %v2790_v52 = vpack.c.bf16 %v1993_v0, %v1993_v0  ;;  %v2789_v28 = vpack.c.bf16 %v1992_v17, %v1992_v17  ;;  %v3487_v7 = vunpack.i.h.bf16 %v3485_v25  ;;  %v3486_v55 = vunpack.i.l.bf16 %v3485_v25 }
 0x223   :  { %v2043_v51 = vmax.f32 %v4889_v24, %v3497_v49  ;;  %v2042_v43 = vmax.f32 %v4893_v20, %v3496_v36  ;;  %3624 = vrot.lane.b32.xlu0 %v3623_v40, %s3703_s14  ;;  %v5392_v53 = vmax.f32 %v6129_v22, %v3477_v34  ;;  %v5396_v23 = vmax.f32 %v6130_v61, %v3476_v12 }
 0x224   :  { %2484 = vst.msk [vmem:[%s5732_s3 + $0x4c] sm:$0xf] %vm2464_vm3, %v2790_v52  ;;  %2483 = vst.msk [vmem:[%s5732_s3 + $0x48] sm:$0xf] %vm2464_vm3, %v2789_v28  ;;  %v6131_v24 = vmax.f32 %v4871_v3, 0.0  ;;  %v6132_v54 = vmax.f32 %v4868_v18, 0.0  ;;  %v3500_v46 = vpop.permute.xlu1 %3499 }
 0x225   :  { %v2840_v42 = vpack.c.bf16 %v2043_v51, %v2043_v51  ;;  %v2839_v8 = vpack.c.bf16 %v2042_v43, %v2042_v43  ;;  %v3502_v14 = vunpack.i.h.bf16 %v3500_v46  ;;  %v3501_v60 = vunpack.i.l.bf16 %v3500_v46  ;;  %v3490_v10 = vpop.permute.xlu0 %3489  ;;  %v6135_v51 = vld [vmem:[#allocation2_spill] sm:$0xff] }
 0x226   :  { %v5408_v20 = vmax.f32 %v6131_v24, %v3487_v7  ;;  %v5412_v59 = vmax.f32 %v6132_v54, %v3486_v55  ;;  %v3492_v34 = vunpack.i.h.bf16 %v3490_v10  ;;  %v3491_v12 = vunpack.i.l.bf16 %v3490_v10  ;;  %v6137_v10 = vld [vmem:[#allocation4_spill] sm:$0xff] }
 0x227   :  { %2534 = vst.msk [vmem:[%s5732_s3 + $0x114] sm:$0xf] %vm2464_vm3, %v2840_v42  ;;  %2533 = vst.msk [vmem:[%s5732_s3 + $0x110] sm:$0xf] %vm2464_vm3, %v2839_v8  ;;  %v1995_v18 = vmax.f32 %v4917_v37, %v3502_v14  ;;  %v1994_v3 = vmax.f32 %v4921_v1, %v3501_v60  ;;  %3634 = vrot.lane.b32.xlu0 %v3633_v32, %s3703_s14  ;;  %v3638_v52 = vpack.i.bf16 %v5392_v53, %v5396_v23  ;;  %v6136_v14 = vld [vmem:[#allocation6_spill] sm:$0xff] }
 0x228   :  { %v3628_v0 = vpack.i.bf16 %v5408_v20, %v5412_v59  ;;  %v2041_v17 = vmax.f32 %v4903_v45, %v3492_v34  ;;  %v2040_v49 = vmax.f32 %v6133_v35, %v3491_v12  ;;  %v6134_v45 = vld [vmem:[#allocation55_spill] sm:$0xff]  ;;  %v6138_v12 = vld [vmem:[#allocation5_spill] sm:$0xff] }
 0x229   :  { %v2792_v36 = vpack.c.bf16 %v1995_v18, %v1995_v18  ;;  %v2791_v25 = vpack.c.bf16 %v1994_v3, %v1994_v3  ;;  %v3505_v40 = vpop.permute.xlu0 %3504  ;;  %v6139_v18 = vld [vmem:[#allocation3_spill] sm:$0xff] }
 0x22a   :  { %3629 = vrot.lane.b32.xlu1 %v3628_v0, %s3703_s14  ;;  %v2838_v28 = vpack.c.bf16 %v2041_v17, %v2041_v17  ;;  %v2837_v7 = vpack.c.bf16 %v2040_v49, %v2040_v49  ;;  %v3507_v55 = vunpack.i.h.bf16 %v3505_v40  ;;  %v3506_v37 = vunpack.i.l.bf16 %v3505_v40 }
 0x22b   :  { %2486 = vst.msk [vmem:[%s5732_s3 + $0x54] sm:$0xf] %vm2464_vm3, %v2792_v36  ;;  %2485 = vst.msk [vmem:[%s5732_s3 + $0x50] sm:$0xf] %vm2464_vm3, %v2791_v25 }
 0x22c   :  { %2532 = vst.msk [vmem:[%s5732_s3 + $0x10c] sm:$0xf] %vm2464_vm3, %v2838_v28  ;;  %2531 = vst.msk [vmem:[%s5732_s3 + $0x108] sm:$0xf] %vm2464_vm3, %v2837_v7  ;;  %v2045_v1 = vmax.f32 %v6134_v45, %v3507_v55  ;;  %v2044_v43 = vmax.f32 %v6135_v51, %v3506_v37  ;;  %v3515_v32 = vpop.permute.xlu1 %3514  ;;  %v6140_v37 = vld [vmem:[#allocation9_spill] sm:$0xff] }
 0x22d   :  { %v3517_v22 = vunpack.i.h.bf16 %v3515_v32  ;;  %v3516_v61 = vunpack.i.l.bf16 %v3515_v32  ;;  %v3510_v24 = vpop.permute.xlu0 %3509 }
 0x22e   :  { %3639 = vrot.lane.b32.xlu1 %v3638_v52, %s3703_s14  ;;  %v2842_v54 = vpack.c.bf16 %v2045_v1, %v2045_v1  ;;  %v2841_v46 = vpack.c.bf16 %v2044_v43, %v2044_v43  ;;  %v3512_v42 = vunpack.i.h.bf16 %v3510_v24  ;;  %v3511_v8 = vunpack.i.l.bf16 %v3510_v24  ;;  %v6141_v1 = vld [vmem:[#allocation7_spill] sm:$0xff]  ;;  %v6142_v43 = vld [vmem:[#allocation10_spill] sm:$0xff] }
 0x22f   :  { %v2047_v60 = vmax.f32 %v6136_v14, %v3517_v22  ;;  %v2046_v34 = vmax.f32 %v6137_v10, %v3516_v61  ;;  %v6143_v22 = vld [vmem:[#allocation8_spill] sm:$0xff] }
 0x230   :  { %2536 = vst.msk [vmem:[%s5732_s3 + $0x11c] sm:$0xf] %vm2464_vm3, %v2842_v54  ;;  %2535 = vst.msk [vmem:[%s5732_s3 + $0x118] sm:$0xf] %vm2464_vm3, %v2841_v46  ;;  %v1997_v0 = vmax.f32 %v6138_v12, %v3512_v42  ;;  %v1996_v3 = vmax.f32 %v6139_v18, %v3511_v8 }
 0x231   :  { %v2844_v17 = vpack.c.bf16 %v2047_v60, %v2047_v60  ;;  %v2843_v35 = vpack.c.bf16 %v2046_v34, %v2046_v34 }
 0x232   :  { %v2794_v49 = vpack.c.bf16 %v1997_v0, %v1997_v0  ;;  %v2793_v36 = vpack.c.bf16 %v1996_v3, %v1996_v3  ;;  %v6144_v0 = vld [vmem:[#allocation14_spill] sm:$0xff]  ;;  %v6145_v3 = vld [vmem:[#allocation12_spill] sm:$0xff] }
 0x233   :  { %2538 = vst.msk [vmem:[%s5732_s3 + $0x124] sm:$0xf] %vm2464_vm3, %v2844_v17  ;;  %2537 = vst.msk [vmem:[%s5732_s3 + $0x120] sm:$0xf] %vm2464_vm3, %v2843_v35  ;;  %v6146_v35 = vld [vmem:[#allocation13_spill] sm:$0xff] }
 0x234   :  { %2488 = vst.msk [vmem:[%s5732_s3 + $0x5c] sm:$0xf] %vm2464_vm3, %v2794_v49  ;;  %2487 = vst.msk [vmem:[%s5732_s3 + $0x58] sm:$0xf] %vm2464_vm3, %v2793_v36  ;;  %v3520_v25 = vpop.permute.xlu1 %3519  ;;  %v3525_v40 = vpop.permute.xlu0 %3524  ;;  %v6147_v36 = vld [vmem:[#allocation11_spill] sm:$0xff] }
 0x235   :  { %v3522_v52 = vunpack.i.h.bf16 %v3520_v25  ;;  %v3521_v28 = vunpack.i.l.bf16 %v3520_v25  ;;  %v3527_v7 = vunpack.i.h.bf16 %v3525_v40  ;;  %v3526_v55 = vunpack.i.l.bf16 %v3525_v40 }
 0x237   :  { %v1999_v45 = vmax.f32 %v6140_v37, %v3522_v52  ;;  %v1998_v51 = vmax.f32 %v6141_v1, %v3521_v28  ;;  %v2049_v32 = vmax.f32 %v6142_v43, %v3527_v7  ;;  %v2048_v61 = vmax.f32 %v6143_v22, %v3526_v55 }
 0x239   :  { %v2796_v24 = vpack.c.bf16 %v1999_v45, %v1999_v45  ;;  %v2795_v54 = vpack.c.bf16 %v1998_v51, %v1998_v51  ;;  %v2846_v46 = vpack.c.bf16 %v2049_v32, %v2049_v32  ;;  %v2845_v42 = vpack.c.bf16 %v2048_v61, %v2048_v61  ;;  %v6148_v32 = vld [vmem:[#allocation17_spill] sm:$0xff]  ;;  %v6149_v61 = vld [vmem:[#allocation15_spill] sm:$0xff] }
 0x23b   :  { %2490 = vst.msk [vmem:[%s5732_s3 + $0x64] sm:$0xf] %vm2464_vm3, %v2796_v24  ;;  %2489 = vst.msk [vmem:[%s5732_s3 + $0x60] sm:$0xf] %vm2464_vm3, %v2795_v54  ;;  %v6150_v54 = vld [vmem:[#allocation18_spill] sm:$0xff] }
 0x23c   :  { %2540 = vst.msk [vmem:[%s5732_s3 + $0x12c] sm:$0xf] %vm2464_vm3, %v2846_v46  ;;  %2539 = vst.msk [vmem:[%s5732_s3 + $0x128] sm:$0xf] %vm2464_vm3, %v2845_v42  ;;  %v3535_v8 = vpop.permute.xlu1 %3534  ;;  %v3530_v14 = vpop.permute.xlu0 %3529  ;;  %v6151_v42 = vld [vmem:[#allocation16_spill] sm:$0xff] }
 0x23d   :  { %v3537_v60 = vunpack.i.h.bf16 %v3535_v8  ;;  %v3536_v10 = vunpack.i.l.bf16 %v3535_v8  ;;  %v3532_v34 = vunpack.i.h.bf16 %v3530_v14  ;;  %v3531_v12 = vunpack.i.l.bf16 %v3530_v14 }
 0x23f   :  { %v2051_v18 = vmax.f32 %v6144_v0, %v3537_v60  ;;  %v2050_v17 = vmax.f32 %v6145_v3, %v3536_v10  ;;  %v2001_v49 = vmax.f32 %v6146_v35, %v3532_v34  ;;  %v2000_v25 = vmax.f32 %v6147_v36, %v3531_v12 }
 0x241   :  { %v2848_v40 = vpack.c.bf16 %v2051_v18, %v2051_v18  ;;  %v2847_v52 = vpack.c.bf16 %v2050_v17, %v2050_v17  ;;  %v2798_v28 = vpack.c.bf16 %v2001_v49, %v2001_v49  ;;  %v2797_v7 = vpack.c.bf16 %v2000_v25, %v2000_v25 }
 0x243   :  { %2542 = vst.msk [vmem:[%s5732_s3 + $0x134] sm:$0xf] %vm2464_vm3, %v2848_v40  ;;  %2541 = vst.msk [vmem:[%s5732_s3 + $0x130] sm:$0xf] %vm2464_vm3, %v2847_v52  ;;  %v6152_v40 = vld [vmem:[#allocation21_spill] sm:$0xff] }
 0x244   :  { %2492 = vst.msk [vmem:[%s5732_s3 + $0x6c] sm:$0xf] %vm2464_vm3, %v2798_v28  ;;  %2491 = vst.msk [vmem:[%s5732_s3 + $0x68] sm:$0xf] %vm2464_vm3, %v2797_v7  ;;  %v3540_v55 = vpop.permute.xlu1 %3539  ;;  %v3545_v37 = vpop.permute.xlu0 %3544 }
 0x245   :  { %v3542_v45 = vunpack.i.h.bf16 %v3540_v55  ;;  %v3541_v1 = vunpack.i.l.bf16 %v3540_v55  ;;  %v3547_v51 = vunpack.i.h.bf16 %v3545_v37  ;;  %v3546_v43 = vunpack.i.l.bf16 %v3545_v37 }
 0x247   :  { %v2003_v22 = vmax.f32 %v6148_v32, %v3542_v45  ;;  %v2002_v24 = vmax.f32 %v6149_v61, %v3541_v1  ;;  %v2053_v46 = vmax.f32 %v6150_v54, %v3547_v51  ;;  %v2052_v8 = vmax.f32 %v6151_v42, %v3546_v43  ;;  %v6153_v45 = vld [vmem:[#allocation20_spill] sm:$0xff]  ;;  %v6154_v51 = vld [vmem:[#allocation19_spill] sm:$0xff] }
 0x249   :  { %v2800_v14 = vpack.c.bf16 %v2003_v22, %v2003_v22  ;;  %v2799_v60 = vpack.c.bf16 %v2002_v24, %v2002_v24  ;;  %v2850_v10 = vpack.c.bf16 %v2053_v46, %v2053_v46  ;;  %v2849_v34 = vpack.c.bf16 %v2052_v8, %v2052_v8  ;;  %v6155_v46 = vld [vmem:[#allocation24_spill] sm:$0xff]  ;;  %v6156_v8 = vld [vmem:[#allocation25_spill] sm:$0xff] }
 0x24b   :  { %2494 = vst.msk [vmem:[%s5732_s3 + $0x74] sm:$0xf] %vm2464_vm3, %v2800_v14  ;;  %2493 = vst.msk [vmem:[%s5732_s3 + $0x70] sm:$0xf] %vm2464_vm3, %v2799_v60 }
 0x24c   :  { %2544 = vst.msk [vmem:[%s5732_s3 + $0x13c] sm:$0xf] %vm2464_vm3, %v2850_v10  ;;  %2543 = vst.msk [vmem:[%s5732_s3 + $0x138] sm:$0xf] %vm2464_vm3, %v2849_v34 }
 0x252   :  { %v3555_v12 = vpop.permute.xlu1 %3554 }
 0x253   :  { %v3550_v0 = vpop.permute.xlu0 %3549  ;;  %v3557_v18 = vunpack.i.h.bf16 %v3555_v12  ;;  %v3556_v3 = vunpack.i.l.bf16 %v3555_v12 }
 0x254   :  { %v3552_v17 = vunpack.i.h.bf16 %v3550_v0  ;;  %v3551_v35 = vunpack.i.l.bf16 %v3550_v0 }
 0x255   :  { %v2055_v49 = vmax.f32 %v5052_v44, %v3557_v18  ;;  %v2054_v36 = vmax.f32 %v5056_v48, %v3556_v3 }
 0x256   :  { %v2005_v25 = vmax.f32 %v5060_v56, %v3552_v17  ;;  %v2004_v52 = vmax.f32 %v6152_v40, %v3551_v35 }
 0x257   :  { %v2852_v28 = vpack.c.bf16 %v2055_v49, %v2055_v49  ;;  %v2851_v7 = vpack.c.bf16 %v2054_v36, %v2054_v36 }
 0x258   :  { %v2802_v55 = vpack.c.bf16 %v2005_v25, %v2005_v25  ;;  %v2801_v37 = vpack.c.bf16 %v2004_v52, %v2004_v52 }
 0x259   :  { %2546 = vst.msk [vmem:[%s5732_s3 + $0x144] sm:$0xf] %vm2464_vm3, %v2852_v28  ;;  %2545 = vst.msk [vmem:[%s5732_s3 + $0x140] sm:$0xf] %vm2464_vm3, %v2851_v7 }
 0x25a   :  { %2496 = vst.msk [vmem:[%s5732_s3 + $0x7c] sm:$0xf] %vm2464_vm3, %v2802_v55  ;;  %2495 = vst.msk [vmem:[%s5732_s3 + $0x78] sm:$0xf] %vm2464_vm3, %v2801_v37  ;;  %v3560_v44 = vpop.permute.xlu1 %3559 }
 0x25b   :  { %v3562_v48 = vunpack.i.h.bf16 %v3560_v44  ;;  %v3561_v56 = vunpack.i.l.bf16 %v3560_v44 }
 0x25d   :  { %v2007_v1 = vmax.f32 %v6153_v45, %v3562_v48  ;;  %v2006_v43 = vmax.f32 %v6154_v51, %v3561_v56  ;;  %v3565_v32 = vpop.permute.xlu0 %3564 }
 0x25e   :  { %v3567_v22 = vunpack.i.h.bf16 %v3565_v32  ;;  %v3566_v61 = vunpack.i.l.bf16 %v3565_v32 }
 0x25f   :  { %v2804_v24 = vpack.c.bf16 %v2007_v1, %v2007_v1  ;;  %v2803_v54 = vpack.c.bf16 %v2006_v43, %v2006_v43 }
 0x260   :  { %v2057_v42 = vmax.f32 %v6155_v46, %v3567_v22  ;;  %v2056_v14 = vmax.f32 %v6156_v8, %v3566_v61 }
 0x261   :  { %2498 = vst.msk [vmem:[%s5732_s3 + $0x84] sm:$0xf] %vm2464_vm3, %v2804_v24  ;;  %2497 = vst.msk [vmem:[%s5732_s3 + $0x80] sm:$0xf] %vm2464_vm3, %v2803_v54 }
 0x262   :  { %v2854_v60 = vpack.c.bf16 %v2057_v42, %v2057_v42  ;;  %v2853_v10 = vpack.c.bf16 %v2056_v14, %v2056_v14 }
 0x264   :  { %2548 = vst.msk [vmem:[%s5732_s3 + $0x14c] sm:$0xf] %vm2464_vm3, %v2854_v60  ;;  %2547 = vst.msk [vmem:[%s5732_s3 + $0x148] sm:$0xf] %vm2464_vm3, %v2853_v10 }
 0x265   :  { %v3570_v34 = vpop.permute.xlu0 %3569 }
 0x266   :  { %v3575_v12 = vpop.permute.xlu1 %3574  ;;  %v3572_v0 = vunpack.i.h.bf16 %v3570_v34  ;;  %v3571_v18 = vunpack.i.l.bf16 %v3570_v34 }
 0x267   :  { %v3577_v3 = vunpack.i.h.bf16 %v3575_v12  ;;  %v3576_v17 = vunpack.i.l.bf16 %v3575_v12 }
 0x268   :  { %v2009_v35 = vmax.f32 %v5128_v30, %v3572_v0  ;;  %v2008_v49 = vmax.f32 %v5132_v62, %v3571_v18 }
 0x269   :  { %v2059_v36 = vmax.f32 %v5144_v47, %v3577_v3  ;;  %v2058_v25 = vmax.f32 %v5148_v58, %v3576_v17 }
 0x26a   :  { %v2806_v40 = vpack.c.bf16 %v2009_v35, %v2009_v35  ;;  %v2805_v52 = vpack.c.bf16 %v2008_v49, %v2008_v49 }
 0x26b   :  { %v2856_v28 = vpack.c.bf16 %v2059_v36, %v2059_v36  ;;  %v2855_v7 = vpack.c.bf16 %v2058_v25, %v2058_v25 }
 0x26c   :  { %2500 = vst.msk [vmem:[%s5732_s3 + $0x8c] sm:$0xf] %vm2464_vm3, %v2806_v40  ;;  %2499 = vst.msk [vmem:[%s5732_s3 + $0x88] sm:$0xf] %vm2464_vm3, %v2805_v52 }
 0x26d   :  { %2550 = vst.msk [vmem:[%s5732_s3 + $0x154] sm:$0xf] %vm2464_vm3, %v2856_v28  ;;  %2549 = vst.msk [vmem:[%s5732_s3 + $0x150] sm:$0xf] %vm2464_vm3, %v2855_v7  ;;  %v3585_v30 = vpop.permute.xlu0 %3584 }
 0x26e   :  { %v3580_v62 = vpop.permute.xlu1 %3579  ;;  %v3587_v47 = vunpack.i.h.bf16 %v3585_v30  ;;  %v3586_v58 = vunpack.i.l.bf16 %v3585_v30 }
 0x26f   :  { %v3582_v55 = vunpack.i.h.bf16 %v3580_v62  ;;  %v3581_v37 = vunpack.i.l.bf16 %v3580_v62 }
 0x270   :  { %v2061_v44 = vmax.f32 %v5170_v63, %v3587_v47  ;;  %v2060_v48 = vmax.f32 %v5174_v29, %v3586_v58 }
 0x271   :  { %v2011_v56 = vmax.f32 %v5186_v31, %v3582_v55  ;;  %v2010_v45 = vmax.f32 %v5190_v16, %v3581_v37 }
 0x272   :  { %v2858_v1 = vpack.c.bf16 %v2061_v44, %v2061_v44  ;;  %v2857_v51 = vpack.c.bf16 %v2060_v48, %v2060_v48 }
 0x273   :  { %v2808_v43 = vpack.c.bf16 %v2011_v56, %v2011_v56  ;;  %v2807_v32 = vpack.c.bf16 %v2010_v45, %v2010_v45 }
 0x274   :  { %2552 = vst.msk [vmem:[%s5732_s3 + $0x15c] sm:$0xf] %vm2464_vm3, %v2858_v1  ;;  %2551 = vst.msk [vmem:[%s5732_s3 + $0x158] sm:$0xf] %vm2464_vm3, %v2857_v51 }
 0x275   :  { %2502 = vst.msk [vmem:[%s5732_s3 + $0x94] sm:$0xf] %vm2464_vm3, %v2808_v43  ;;  %2501 = vst.msk [vmem:[%s5732_s3 + $0x90] sm:$0xf] %vm2464_vm3, %v2807_v32  ;;  %v3590_v63 = vpop.permute.xlu0 %3589 }
 0x276   :  { %v3595_v29 = vpop.permute.xlu1 %3594  ;;  %v3592_v31 = vunpack.i.h.bf16 %v3590_v63  ;;  %v3591_v16 = vunpack.i.l.bf16 %v3590_v63 }
 0x277   :  { %v3597_v22 = vunpack.i.h.bf16 %v3595_v29  ;;  %v3596_v61 = vunpack.i.l.bf16 %v3595_v29 }
 0x278   :  { %v2013_v24 = vmax.f32 %v5212_v11, %v3592_v31  ;;  %v2012_v54 = vmax.f32 %v5216_v39, %v3591_v16 }
 0x279   :  { %v2063_v46 = vmax.f32 %v5228_v33, %v3597_v22  ;;  %v2062_v42 = vmax.f32 %v5232_v2, %v3596_v61 }
 0x27a   :  { %v2810_v8 = vpack.c.bf16 %v2013_v24, %v2013_v24  ;;  %v2809_v14 = vpack.c.bf16 %v2012_v54, %v2012_v54 }
 0x27b   :  { %v2860_v60 = vpack.c.bf16 %v2063_v46, %v2063_v46  ;;  %v2859_v10 = vpack.c.bf16 %v2062_v42, %v2062_v42 }
 0x27c   :  { %2504 = vst.msk [vmem:[%s5732_s3 + $0x9c] sm:$0xf] %vm2464_vm3, %v2810_v8  ;;  %2503 = vst.msk [vmem:[%s5732_s3 + $0x98] sm:$0xf] %vm2464_vm3, %v2809_v14 }
 0x27d   :  { %2554 = vst.msk [vmem:[%s5732_s3 + $0x164] sm:$0xf] %vm2464_vm3, %v2860_v60  ;;  %2553 = vst.msk [vmem:[%s5732_s3 + $0x160] sm:$0xf] %vm2464_vm3, %v2859_v10  ;;  %v3605_v11 = vpop.permute.xlu0 %3604 }
 0x27e   :  { %v3600_v39 = vpop.permute.xlu1 %3599  ;;  %v3607_v33 = vunpack.i.h.bf16 %v3605_v11  ;;  %v3606_v2 = vunpack.i.l.bf16 %v3605_v11 }
 0x27f   :  { %v3602_v34 = vunpack.i.h.bf16 %v3600_v39  ;;  %v3601_v12 = vunpack.i.l.bf16 %v3600_v39 }
 0x280   :  { %v2065_v0 = vmax.f32 %v5254_v4, %v3607_v33  ;;  %v2064_v18 = vmax.f32 %v5258_v38, %v3606_v2 }
 0x281   :  { %v2015_v3 = vmax.f32 %v5270_v9, %v3602_v34  ;;  %v2014_v17 = vmax.f32 %v5274_v13, %v3601_v12 }
 0x282   :  { %v2862_v35 = vpack.c.bf16 %v2065_v0, %v2065_v0  ;;  %v2861_v49 = vpack.c.bf16 %v2064_v18, %v2064_v18 }
 0x283   :  { %v2812_v36 = vpack.c.bf16 %v2015_v3, %v2015_v3  ;;  %v2811_v25 = vpack.c.bf16 %v2014_v17, %v2014_v17 }
 0x284   :  { %2556 = vst.msk [vmem:[%s5732_s3 + $0x16c] sm:$0xf] %vm2464_vm3, %v2862_v35  ;;  %2555 = vst.msk [vmem:[%s5732_s3 + $0x168] sm:$0xf] %vm2464_vm3, %v2861_v49 }
 0x285   :  { %2506 = vst.msk [vmem:[%s5732_s3 + $0xa4] sm:$0xf] %vm2464_vm3, %v2812_v36  ;;  %2505 = vst.msk [vmem:[%s5732_s3 + $0xa0] sm:$0xf] %vm2464_vm3, %v2811_v25  ;;  %v3610_v4 = vpop.permute.xlu0 %3609 }
 0x286   :  { %v3615_v38 = vpop.permute.xlu1 %3614  ;;  %v3612_v9 = vunpack.i.h.bf16 %v3610_v4  ;;  %v3611_v13 = vunpack.i.l.bf16 %v3610_v4 }
 0x287   :  { %v3617_v40 = vunpack.i.h.bf16 %v3615_v38  ;;  %v3616_v52 = vunpack.i.l.bf16 %v3615_v38 }
 0x288   :  { %v2017_v28 = vmax.f32 %v5296_v15, %v3612_v9  ;;  %v2016_v7 = vmax.f32 %v5300_v26, %v3611_v13 }
 0x289   :  { %v2067_v30 = vmax.f32 %v5312_v21, %v3617_v40  ;;  %v2066_v62 = vmax.f32 %v5316_v19, %v3616_v52 }
 0x28a   :  { %v2814_v47 = vpack.c.bf16 %v2017_v28, %v2017_v28  ;;  %v2813_v58 = vpack.c.bf16 %v2016_v7, %v2016_v7 }
 0x28b   :  { %v2864_v55 = vpack.c.bf16 %v2067_v30, %v2067_v30  ;;  %v2863_v37 = vpack.c.bf16 %v2066_v62, %v2066_v62 }
 0x28c   :  { %2508 = vst.msk [vmem:[%s5732_s3 + $0xac] sm:$0xf] %vm2464_vm3, %v2814_v47  ;;  %2507 = vst.msk [vmem:[%s5732_s3 + $0xa8] sm:$0xf] %vm2464_vm3, %v2813_v58 }
 0x28d   :  { %2558 = vst.msk [vmem:[%s5732_s3 + $0x174] sm:$0xf] %vm2464_vm3, %v2864_v55  ;;  %2557 = vst.msk [vmem:[%s5732_s3 + $0x170] sm:$0xf] %vm2464_vm3, %v2863_v37 }
 0x28e   :  { %v3620_v15 = vpop.permute.xlu1 %3619 }
 0x28f   :  { %v3622_v26 = vunpack.i.h.bf16 %v3620_v15  ;;  %v3621_v21 = vunpack.i.l.bf16 %v3620_v15 }
 0x291   :  { %v2019_v19 = vmax.f32 %v5346_v50, %v3622_v26  ;;  %v2018_v44 = vmax.f32 %v5350_v57, %v3621_v21 }
 0x293   :  { %v2816_v48 = vpack.c.bf16 %v2019_v19, %v2019_v19  ;;  %v2815_v56 = vpack.c.bf16 %v2018_v44, %v2018_v44 }
 0x295   :  { %2510 = vst.msk [vmem:[%s5732_s3 + $0xb4] sm:$0xf] %vm2464_vm3, %v2816_v48  ;;  %2509 = vst.msk [vmem:[%s5732_s3 + $0xb0] sm:$0xf] %vm2464_vm3, %v2815_v56  ;;  %v3625_v45 = vpop.permute.xlu0 %3624 }
 0x296   :  { %v3627_v1 = vunpack.i.h.bf16 %v3625_v45  ;;  %v3626_v51 = vunpack.i.l.bf16 %v3625_v45 }
 0x298   :  { %v2021_v43 = vmax.f32 %v5375_v27, %v3627_v1  ;;  %v2020_v50 = vmax.f32 %v5379_v41, %v3626_v51 }
 0x299   :  { %v3635_v57 = vpop.permute.xlu0 %3634 }
 0x29a   :  { %v2818_v32 = vpack.c.bf16 %v2021_v43, %v2021_v43  ;;  %v2817_v63 = vpack.c.bf16 %v2020_v50, %v2020_v50  ;;  %v3637_v29 = vunpack.i.h.bf16 %v3635_v57  ;;  %v3636_v31 = vunpack.i.l.bf16 %v3635_v57 }
 0x29c   :  { %v3630_v16 = vpop.permute.xlu1 %3629  ;;  %2512 = vst.msk [vmem:[%s5732_s3 + $0xbc] sm:$0xf] %vm2464_vm3, %v2818_v32  ;;  %2511 = vst.msk [vmem:[%s5732_s3 + $0xb8] sm:$0xf] %vm2464_vm3, %v2817_v63  ;;  %v2069_v27 = vmax.f32 %v5359_v6, %v3637_v29  ;;  %v2068_v41 = vmax.f32 %v5363_v5, %v3636_v31 }
 0x29d   :  { %v3632_v22 = vunpack.i.h.bf16 %v3630_v16  ;;  %v3631_v61 = vunpack.i.l.bf16 %v3630_v16 }
 0x29e   :  { %v2866_v46 = vpack.c.bf16 %v2069_v27, %v2069_v27  ;;  %v2865_v42 = vpack.c.bf16 %v2068_v41, %v2068_v41 }
 0x29f   :  { %v2023_v24 = vmax.f32 %v5408_v20, %v3632_v22  ;;  %v2022_v54 = vmax.f32 %v5412_v59, %v3631_v61 }
 0x2a0   :  { %v3640_v8 = vpop.permute.xlu1 %3639  ;;  %2560 = vst.msk [vmem:[%s5732_s3 + $0x17c] sm:$0xf] %vm2464_vm3, %v2866_v46  ;;  %2559 = vst.msk [vmem:[%s5732_s3 + $0x178] sm:$0xf] %vm2464_vm3, %v2865_v42 }
 0x2a1   :  { %v2820_v14 = vpack.c.bf16 %v2023_v24, %v2023_v24  ;;  %v2819_v60 = vpack.c.bf16 %v2022_v54, %v2022_v54  ;;  %v3642_v10 = vunpack.i.h.bf16 %v3640_v8  ;;  %v3641_v11 = vunpack.i.l.bf16 %v3640_v8 }
 0x2a3   :  { %2514 = vst.msk [vmem:[%s5732_s3 + $0xc4] sm:$0xf] %vm2464_vm3, %v2820_v14  ;;  %2513 = vst.msk [vmem:[%s5732_s3 + $0xc0] sm:$0xf] %vm2464_vm3, %v2819_v60  ;;  %v2071_v6 = vmax.f32 %v5392_v53, %v3642_v10  ;;  %v2070_v5 = vmax.f32 %v5396_v23, %v3641_v11 }
 0x2a5   :  { %v2868_v20 = vpack.c.bf16 %v2071_v6, %v2071_v6  ;;  %v2867_v59 = vpack.c.bf16 %v2070_v5, %v2070_v5 }
 0x2a7   :  { %2562 = vst.msk [vmem:[%s5732_s3 + $0x184] sm:$0xf] %vm2464_vm3, %v2868_v20  ;;  %2561 = vst.msk [vmem:[%s5732_s3 + $0x180] sm:$0xf] %vm2464_vm3, %v2867_v59 }

// kernel: convnet_forward.3
= control target key start
LH: loop header
LB: loop body
LE: loop exit
PB: predicated region body
PF: predicated region fallthrough
CT: control target
= control target key end

     0   :  { %v2952_v21 = vmov 1983009808   ;;  %v432_v23 = vlaneseq  ;;  %vm2954_vm0 = vmmov 0   ;;  %vm1737_vm1 = vcmask 523264   ;;  %s3604_s1 = inlined_call_operand.vmem [shape: bf16[3136,24], index: 1, kind: input, shape index: {}]   ;;  %s3605_s0 = inlined_call_operand.vmem [shape: bf16[4,3136], index: 0, kind: input, shape index: {}]   ;;  %s3606_s2 = inlined_call_operand.vmem [shape: f32[1,24], index: 2, kind: input, shape index: {}]   ;;  %s3607_s3 = inlined_call_operand.vmem [shape: f32[4,24], index: 3, kind: output, shape index: {}]  }
   0x1   :  { %v2750_v0 = vld [vmem:[%s3604_s1 + $0x78] sm:$0xff]   ;;  %v2754_v4 = vld [vmem:[%s3604_s1 + $0x70] sm:$0xff]   ;;  %v2758_v8 = vld [vmem:[%s3604_s1 + $0x68] sm:$0xff]   ;;  %v430_v22 = vunpack.c.l.s4 %v2952_v21  ;;  %vm2261_vm2 = vcmask 191488  }
   0x2   :  { %v2751_v1 = vld [vmem:[%s3604_s1 + $0x38] sm:$0xff]   ;;  %2466 = vmatprep.subr.bf16.mxu0 %v2750_v0  ;;  %v2755_v5 = vld [vmem:[%s3604_s1 + $0x30] sm:$0xff]   ;;  %v2759_v9 = vld [vmem:[%s3604_s1 + $0x28] sm:$0xff]   ;;  %v433_v29 = vshrl.u32 %v432_v23, 7 }
   0x3   :  { %v2752_v2 = vld [vmem:[%s3604_s1 + $0xf8] sm:$0xff]   ;;  %2467 = vmatpush3.bf16.msra.mxu0 %v2751_v1  ;;  %v2756_v6 = vld [vmem:[%s3604_s1 + $0xf0] sm:$0xff]   ;;  %v2760_v10 = vld [vmem:[%s3604_s1 + $0xe8] sm:$0xff]   ;;  %v431_v28 = vunpack.c.0.s8 %v430_v22 }
   0x4   :  { %v2753_v3 = vld [vmem:[%s3604_s1 + $0xb8] sm:$0xff]   ;;  %2488 = vmatprep.subr.bf16.mxu1 %v2752_v2  ;;  %2468 = vmatprep.subr.bf16.mxu0 %v2754_v4  ;;  %v2757_v7 = vld [vmem:[%s3604_s1 + $0xb0] sm:$0xff]   ;;  %v2761_v11 = vld [vmem:[%s3604_s1 + $0xa8] sm:$0xff]  }
   0x5   :  { %2489 = vmatpush3.bf16.msra.mxu1 %v2753_v3  ;;  %v2762_v12 = vld [vmem:[%s3604_s1 + $0x60] sm:$0xff]   ;;  %v2766_v16 = vld [vmem:[%s3604_s1 + $0x58] sm:$0xff]   ;;  %v2770_v20 = vld [vmem:[%s3604_s1 + $0x50] sm:$0xff]   ;;  %v3062_v34 = vsub.s32 %v431_v28, %v433_v29 }
   0x6   :  { %2490 = vmatprep.subr.bf16.mxu1 %v2756_v6  ;;  %v2763_v13 = vld [vmem:[%s3604_s1 + $0x20] sm:$0xff]   ;;  %v2767_v17 = vld [vmem:[%s3604_s1 + $0x18] sm:$0xff]   ;;  %v2771_v24 = vld [vmem:[%s3604_s1 + $0x10] sm:$0xff]  }
   0x7   :  { %2469 = vmatpush3.bf16.msra.mxu0 %v2755_v5  ;;  %v2764_v14 = vld [vmem:[%s3604_s1 + $0xe0] sm:$0xff]   ;;  %v2768_v18 = vld [vmem:[%s3604_s1 + $0xd8] sm:$0xff]   ;;  %v2772_v25 = vld [vmem:[%s3604_s1 + $0xd0] sm:$0xff]  }
   0x8   :  { %2470 = vmatprep.subr.bf16.mxu0 %v2758_v8  ;;  %v2765_v15 = vld [vmem:[%s3604_s1 + $0xa0] sm:$0xff]   ;;  %v2769_v19 = vld [vmem:[%s3604_s1 + $0x98] sm:$0xff]   ;;  %v2773_v26 = vld [vmem:[%s3604_s1 + $0x90] sm:$0xff]  }
   0x9   :  { %2491 = vmatpush3.bf16.msra.mxu1 %v2757_v7  ;;  %v2774_v27 = vld [vmem:[%s3604_s1 + $0x48] sm:$0xff]   ;;  %v2778_v33 = vld [vmem:[%s3604_s1 + $0x40] sm:$0xff]   ;;  %v2782_v41 = vld [vmem:[%s3604_s1 + $0x178] sm:$0xff]  }
   0xa   :  { %2492 = vmatprep.subr.bf16.mxu1 %v2760_v10  ;;  %v2775_v30 = vld [vmem:[%s3604_s1 + $0x8] sm:$0xff]   ;;  %v2779_v35 = vld [vmem:[%s3604_s1] sm:$0xff]   ;;  %v2784_v44 = vld [vmem:[%s3604_s1 + $0x138] sm:$0xff]  }
   0xb   :  { %2471 = vmatpush3.bf16.msra.mxu0 %v2759_v9  ;;  %v2776_v31 = vld [vmem:[%s3604_s1 + $0xc8] sm:$0xff]   ;;  %v2780_v36 = vld [vmem:[%s3604_s1 + $0xc0] sm:$0xff]   ;;  %v2785_v45 = vld [vmem:[%s3604_s1 + $0x1f8] sm:$0xff]  }
   0xc   :  { %2472 = vmatprep.subr.bf16.mxu0 %v2762_v12  ;;  %v2777_v32 = vld [vmem:[%s3604_s1 + $0x88] sm:$0xff]   ;;  %v15_v37 = vld [vmem:[%s3605_s0] sm:$0xff]  ;;  %v2786_v47 = vld [vmem:[%s3604_s1 + $0x1b8] sm:$0xff]  }
   0xd   :  { %2493 = vmatpush3.bf16.msra.mxu1 %v2761_v11  ;;  %v435_v38 = vrot.slane %v15_v37, %v3062_v34  ;;  %v2781_v39 = vld [vmem:[%s3604_s1 + $0x80] sm:$0xff]   ;;  %v428_v40 = vcombine.high %v15_v37, %v15_v37  ;;  %v2787_v48 = vld [vmem:[%s3604_s1 + $0x170] sm:$0xff]   ;;  %v2791_v52 = vld [vmem:[%s3604_s1 + $0x168] sm:$0xff]  }
   0xe   :  { %2494 = vmatprep.subr.bf16.mxu1 %v2764_v14  ;;  %v2788_v49 = vld [vmem:[%s3604_s1 + $0x130] sm:$0xff]   ;;  %v2792_v53 = vld [vmem:[%s3604_s1 + $0x128] sm:$0xff]   ;;  %v2795_v56 = vld [vmem:[%s3604_s1 + $0x160] sm:$0xff]  }
   0xf   :  { %2473 = vmatpush3.bf16.msra.mxu0 %v2763_v13  ;;  %v443_v42 = vcombine.high %v435_v38, %v435_v38  ;;  %v442_v43 = vrot.slane %v428_v40, %v3062_v34  ;;  %v2789_v50 = vld [vmem:[%s3604_s1 + $0x1f0] sm:$0xff]   ;;  %v2793_v54 = vld [vmem:[%s3604_s1 + $0x1e8] sm:$0xff]   ;;  %v2796_v57 = vld [vmem:[%s3604_s1 + $0x120] sm:$0xff]  }
  0x10   :  { %2474 = vmatprep.subr.bf16.mxu0 %v2766_v16  ;;  %v2790_v51 = vld [vmem:[%s3604_s1 + $0x1b0] sm:$0xff]   ;;  %v2794_v55 = vld [vmem:[%s3604_s1 + $0x1a8] sm:$0xff]   ;;  %v2797_v58 = vld [vmem:[%s3604_s1 + $0x1e0] sm:$0xff]  }
  0x11   :  { %2495 = vmatpush3.bf16.msra.mxu1 %v2765_v15  ;;  %1773 = vmatprep.mubr.bf16.mxu0 %v443_v42  ;;  %v444_v46 = vcombine.high %v442_v43, %v442_v43  ;;  %v2798_v59 = vld [vmem:[%s3604_s1 + $0x1a0] sm:$0xff]   ;;  %v2799_v60 = vld [vmem:[%s3604_s1 + $0x158] sm:$0xff]   ;;  %v2803_v0 = vld [vmem:[%s3604_s1 + $0x150] sm:$0xff]  }
  0x12   :  { %2496 = vmatprep.subr.bf16.mxu1 %v2768_v18  ;;  %v2800_v61 = vld [vmem:[%s3604_s1 + $0x118] sm:$0xff]   ;;  %v2804_v1 = vld [vmem:[%s3604_s1 + $0x110] sm:$0xff]   ;;  %v2807_v4 = vld [vmem:[%s3604_s1 + $0x148] sm:$0xff]  }
  0x13   :  { %2475 = vmatpush3.bf16.msra.mxu0 %v2767_v17  ;;  %1813 = vmatprep.mubr.bf16.mxu1 %v444_v46  ;;  %v2801_v62 = vld [vmem:[%s3604_s1 + $0x1d8] sm:$0xff]   ;;  %v2805_v2 = vld [vmem:[%s3604_s1 + $0x1d0] sm:$0xff]   ;;  %v2808_v5 = vld [vmem:[%s3604_s1 + $0x108] sm:$0xff]  }
  0x14   :  { %2476 = vmatprep.subr.bf16.mxu0 %v2770_v20  ;;  %v2802_v63 = vld [vmem:[%s3604_s1 + $0x198] sm:$0xff]   ;;  %v2806_v3 = vld [vmem:[%s3604_s1 + $0x190] sm:$0xff]   ;;  %v2809_v6 = vld [vmem:[%s3604_s1 + $0x1c8] sm:$0xff]  }
  0x15   :  { %2497 = vmatpush3.bf16.msra.mxu1 %v2769_v19  ;;  %v2810_v7 = vld [vmem:[%s3604_s1 + $0x188] sm:$0xff]   ;;  %v2811_v8 = vld [vmem:[%s3604_s1 + $0x140] sm:$0xff]   ;;  %v2815_v15 = vld [vmem:[%s3604_s1 + $0x278] sm:$0xff]  }
  0x16   :  { %2498 = vmatprep.subr.bf16.mxu1 %v2772_v25  ;;  %v2812_v9 = vld [vmem:[%s3604_s1 + $0x100] sm:$0xff]   ;;  %v16_v11 = vld [vmem:[%s3605_s0 + $0x8] sm:$0xff]  ;;  %v2817_v18 = vld [vmem:[%s3604_s1 + $0x238] sm:$0xff]  }
  0x17   :  { %2477 = vmatpush3.bf16.msra.mxu0 %v2771_v24  ;;  %v2813_v10 = vld [vmem:[%s3604_s1 + $0x1c0] sm:$0xff]   ;;  %v452_v12 = vrot.slane %v16_v11, %v3062_v34  ;;  %v445_v14 = vcombine.high %v16_v11, %v16_v11  ;;  %v2818_v19 = vld [vmem:[%s3604_s1 + $0x2f8] sm:$0xff]   ;;  %v2820_v22 = vld [vmem:[%s3604_s1 + $0x270] sm:$0xff]  }
  0x18   :  { %2478 = vmatprep.subr.bf16.mxu0 %v2774_v27  ;;  %v2814_v13 = vld [vmem:[%s3604_s1 + $0x180] sm:$0xff]   ;;  %v2819_v21 = vld [vmem:[%s3604_s1 + $0x2b8] sm:$0xff]   ;;  %v2821_v23 = vld [vmem:[%s3604_s1 + $0x230] sm:$0xff]  }
  0x19   :  { %2499 = vmatpush3.bf16.msra.mxu1 %v2773_v26  ;;  %v460_v16 = vcombine.high %v452_v12, %v452_v12  ;;  %v459_v17 = vrot.slane %v445_v14, %v3062_v34  ;;  %v2822_v24 = vld [vmem:[%s3604_s1 + $0x2f0] sm:$0xff]   ;;  %v2824_v26 = vld [vmem:[%s3604_s1 + $0x268] sm:$0xff]   ;;  %v2834_v37 = vld [vmem:[%s3604_s1 + $0x2d8] sm:$0xff]  }
  0x1a   :  { %2500 = vmatprep.subr.bf16.mxu1 %v2776_v31  ;;  %v2823_v25 = vld [vmem:[%s3604_s1 + $0x2b0] sm:$0xff]   ;;  %v2825_v27 = vld [vmem:[%s3604_s1 + $0x228] sm:$0xff]   ;;  %v2829_v31 = vld [vmem:[%s3604_s1 + $0x220] sm:$0xff]  }
  0x1b   :  { %2479 = vmatpush3.bf16.msra.mxu0 %v2775_v30  ;;  %v461_v20 = vcombine.high %v459_v17, %v459_v17  ;;  %v2826_v28 = vld [vmem:[%s3604_s1 + $0x2e8] sm:$0xff]   ;;  %v2828_v30 = vld [vmem:[%s3604_s1 + $0x260] sm:$0xff]   ;;  %v2837_v40 = vld [vmem:[%s3604_s1 + $0x210] sm:$0xff]  }
  0x1c   :  { %2480 = vmatprep.subr.bf16.mxu0 %v2778_v33  ;;  %v2827_v29 = vld [vmem:[%s3604_s1 + $0x2a8] sm:$0xff]   ;;  %v2831_v33 = vld [vmem:[%s3604_s1 + $0x2a0] sm:$0xff]   ;;  %v2839_v42 = vld [vmem:[%s3604_s1 + $0x290] sm:$0xff]  }
  0x1d   :  { %2501 = vmatpush3.bf16.msra.mxu1 %v2777_v32  ;;  %v2830_v32 = vld [vmem:[%s3604_s1 + $0x2e0] sm:$0xff]   ;;  %v2843_v46 = vld [vmem:[%s3604_s1 + $0x288] sm:$0xff]   ;;  %v2867_v11 = vld [vmem:[%s3604_s1 + $0x3d8] sm:$0xff]  }
  0x1e   :  { %2502 = vmatprep.subr.bf16.mxu1 %v2780_v36  ;;  %v2833_v36 = vld [vmem:[%s3604_s1 + $0x218] sm:$0xff]   ;;  %v2870_v14 = vld [vmem:[%s3604_s1 + $0x310] sm:$0xff]  }
  0x1f   :  { %2481 = vmatpush3.bf16.msra.mxu0 %v2779_v35  ;;  %v2832_v35 = vld [vmem:[%s3604_s1 + $0x258] sm:$0xff]  }
  0x20   :  { %2510 = vmatprep.subr.bf16.mxu0 %v2782_v41  ;;  %v2838_v41 = vld [vmem:[%s3604_s1 + $0x2d0] sm:$0xff]  }
  0x21   :  { %2503 = vmatpush3.bf16.msra.mxu1 %v2781_v39  ;;  %v2836_v39 = vld [vmem:[%s3604_s1 + $0x250] sm:$0xff]  }
  0x22   :  { %1774 = vmatmul.mubr.bf16.vlgmr.msra.gmra.mxu0 %v435_v38  ;;  %2532 = vmatprep.subr.bf16.mxu1 %v2785_v45  ;;  %v2835_v38 = vld [vmem:[%s3604_s1 + $0x298] sm:$0xff]   ;;  %v2842_v45 = vld [vmem:[%s3604_s1 + $0x2c8] sm:$0xff]  }
  0x23   :  { %2511 = vmatpush3.bf16.msra.mxu0 %v2784_v44  ;;  %1853 = vmatprep.mubr.bf16.mxu0 %v460_v16  ;;  %v2841_v44 = vld [vmem:[%s3604_s1 + $0x208] sm:$0xff]   ;;  %v2872_v16 = vld [vmem:[%s3604_s1 + $0x390] sm:$0xff]  }
  0x24   :  { %1814 = vmatmul.mubr.bf16.vlgmr.msra.gmra.mxu1 %v442_v43  ;;  %2512 = vmatprep.subr.bf16.mxu0 %v2787_v48  ;;  %v2840_v43 = vld [vmem:[%s3604_s1 + $0x248] sm:$0xff]   ;;  %v2845_v48 = vld [vmem:[%s3604_s1 + $0x200] sm:$0xff]  }
  0x25   :  { %2533 = vmatpush3.bf16.msra.mxu1 %v2786_v47  ;;  %1893 = vmatprep.mubr.bf16.mxu1 %v461_v20  ;;  %v2844_v47 = vld [vmem:[%s3604_s1 + $0x240] sm:$0xff]   ;;  %v2876_v20 = vld [vmem:[%s3604_s1 + $0x388] sm:$0xff]  }
  0x26   :  { %2534 = vmatprep.subr.bf16.mxu1 %v2789_v50  ;;  %v17_v50 = vld [vmem:[%s3605_s0 + $0x10] sm:$0xff] }
  0x27   :  { %2513 = vmatpush3.bf16.msra.mxu0 %v2788_v49  ;;  %v2846_v49 = vld [vmem:[%s3604_s1 + $0x2c0] sm:$0xff]  }
  0x28   :  { %2514 = vmatprep.subr.bf16.mxu0 %v2791_v52  ;;  %v2847_v52 = vld [vmem:[%s3604_s1 + $0x280] sm:$0xff]  }
  0x29   :  { %2535 = vmatpush3.bf16.msra.mxu1 %v2790_v51  ;;  %v469_v51 = vrot.slane %v17_v50, %v3062_v34 }
  0x2a   :  { %2536 = vmatprep.subr.bf16.mxu1 %v2793_v54  ;;  %v2848_v54 = vld [vmem:[%s3604_s1 + $0x378] sm:$0xff]  }
  0x2b   :  { %2515 = vmatpush3.bf16.msra.mxu0 %v2792_v53  ;;  %v462_v53 = vcombine.high %v17_v50, %v17_v50  ;;  %v2900_v50 = vld [vmem:[%s3604_s1 + $0x4d8] sm:$0xff]  }
  0x2c   :  { %2516 = vmatprep.subr.bf16.mxu0 %v2795_v56 }
  0x2d   :  { %2537 = vmatpush3.bf16.msra.mxu1 %v2794_v55  ;;  %v477_v55 = vcombine.high %v469_v51, %v469_v51  ;;  %v476_v56 = vrot.slane %v462_v53, %v3062_v34  ;;  %v2903_v53 = vld [vmem:[%s3604_s1 + $0x410] sm:$0xff]  }
  0x2e   :  { %2538 = vmatprep.subr.bf16.mxu1 %v2797_v58  ;;  %v2851_v58 = vld [vmem:[%s3604_s1 + $0x3f8] sm:$0xff]  }
  0x2f   :  { %2517 = vmatpush3.bf16.msra.mxu0 %v2796_v57  ;;  %v2850_v57 = vld [vmem:[%s3604_s1 + $0x338] sm:$0xff]  }
  0x30   :  { %2518 = vmatprep.subr.bf16.mxu0 %v2799_v60  ;;  %v2852_v60 = vld [vmem:[%s3604_s1 + $0x3b8] sm:$0xff]  }
  0x31   :  { %2539 = vmatpush3.bf16.msra.mxu1 %v2798_v59  ;;  %v478_v59 = vcombine.high %v476_v56, %v476_v56 }
  0x32   :  { %2540 = vmatprep.subr.bf16.mxu1 %v2801_v62  ;;  %v2854_v62 = vld [vmem:[%s3604_s1 + $0x330] sm:$0xff]  }
  0x33   :  { %2519 = vmatpush3.bf16.msra.mxu0 %v2800_v61  ;;  %v2853_v61 = vld [vmem:[%s3604_s1 + $0x370] sm:$0xff]  }
  0x34   :  { %2520 = vmatprep.subr.bf16.mxu0 %v2803_v0  ;;  %v2856_v0 = vld [vmem:[%s3604_s1 + $0x3b0] sm:$0xff]  }
  0x35   :  { %2541 = vmatpush3.bf16.msra.mxu1 %v2802_v63  ;;  %v2855_v63 = vld [vmem:[%s3604_s1 + $0x3f0] sm:$0xff]  }
  0x36   :  { %2542 = vmatprep.subr.bf16.mxu1 %v2805_v2  ;;  %v2858_v2 = vld [vmem:[%s3604_s1 + $0x328] sm:$0xff]  }
  0x37   :  { %2521 = vmatpush3.bf16.msra.mxu0 %v2804_v1  ;;  %v2857_v1 = vld [vmem:[%s3604_s1 + $0x368] sm:$0xff]  }
  0x38   :  { %2522 = vmatprep.subr.bf16.mxu0 %v2807_v4  ;;  %v2860_v4 = vld [vmem:[%s3604_s1 + $0x3a8] sm:$0xff]  }
  0x39   :  { %2543 = vmatpush3.bf16.msra.mxu1 %v2806_v3  ;;  %v2859_v3 = vld [vmem:[%s3604_s1 + $0x3e8] sm:$0xff]  }
  0x3a   :  { %2544 = vmatprep.subr.bf16.mxu1 %v2809_v6  ;;  %v2862_v6 = vld [vmem:[%s3604_s1 + $0x320] sm:$0xff]  }
  0x3b   :  { %2523 = vmatpush3.bf16.msra.mxu0 %v2808_v5  ;;  %v2861_v5 = vld [vmem:[%s3604_s1 + $0x360] sm:$0xff]  }
  0x3c   :  { %2524 = vmatprep.subr.bf16.mxu0 %v2811_v8  ;;  %v2864_v8 = vld [vmem:[%s3604_s1 + $0x3a0] sm:$0xff]  }
  0x3d   :  { %2545 = vmatpush3.bf16.msra.mxu1 %v2810_v7  ;;  %v2863_v7 = vld [vmem:[%s3604_s1 + $0x3e0] sm:$0xff]  }
  0x3e   :  { %2546 = vmatprep.subr.bf16.mxu1 %v2813_v10  ;;  %v2866_v10 = vld [vmem:[%s3604_s1 + $0x318] sm:$0xff]  }
  0x3f   :  { %2525 = vmatpush3.bf16.msra.mxu0 %v2812_v9  ;;  %v2865_v9 = vld [vmem:[%s3604_s1 + $0x358] sm:$0xff]  }
  0x40   :  { %2554 = vmatprep.subr.bf16.mxu0 %v2815_v15  ;;  %v2871_v15 = vld [vmem:[%s3604_s1 + $0x3d0] sm:$0xff]  }
  0x41   :  { %2547 = vmatpush3.bf16.msra.mxu1 %v2814_v13  ;;  %v2869_v13 = vld [vmem:[%s3604_s1 + $0x350] sm:$0xff]  }
  0x42   :  { %1854 = vmatmul.mubr.bf16.vlgmr.msra.gmra.mxu0 %v452_v12  ;;  %2576 = vmatprep.subr.bf16.mxu1 %v2818_v19  ;;  %v2868_v12 = vld [vmem:[%s3604_s1 + $0x398] sm:$0xff]   ;;  %v2875_v19 = vld [vmem:[%s3604_s1 + $0x3c8] sm:$0xff]  }
  0x43   :  { %2555 = vmatpush3.bf16.msra.mxu0 %v2817_v18  ;;  %1933 = vmatprep.mubr.bf16.mxu0 %v477_v55  ;;  %v2874_v18 = vld [vmem:[%s3604_s1 + $0x308] sm:$0xff]   ;;  %v2905_v55 = vld [vmem:[%s3604_s1 + $0x490] sm:$0xff]  }
  0x44   :  { %1894 = vmatmul.mubr.bf16.vlgmr.msra.gmra.mxu1 %v459_v17  ;;  %2556 = vmatprep.subr.bf16.mxu0 %v2820_v22  ;;  %v2873_v17 = vld [vmem:[%s3604_s1 + $0x348] sm:$0xff]   ;;  %v2878_v22 = vld [vmem:[%s3604_s1 + $0x300] sm:$0xff]  }
  0x45   :  { %2577 = vmatpush3.bf16.msra.mxu1 %v2819_v21  ;;  %1973 = vmatprep.mubr.bf16.mxu1 %v478_v59  ;;  %v2877_v21 = vld [vmem:[%s3604_s1 + $0x340] sm:$0xff]   ;;  %v2909_v59 = vld [vmem:[%s3604_s1 + $0x488] sm:$0xff]  }
  0x46   :  { %2578 = vmatprep.subr.bf16.mxu1 %v2822_v24  ;;  %v18_v24 = vld [vmem:[%s3605_s0 + $0x18] sm:$0xff] }
  0x47   :  { %2557 = vmatpush3.bf16.msra.mxu0 %v2821_v23  ;;  %v2879_v23 = vld [vmem:[%s3604_s1 + $0x3c0] sm:$0xff]  }
  0x48   :  { %2558 = vmatprep.subr.bf16.mxu0 %v2824_v26  ;;  %v2880_v26 = vld [vmem:[%s3604_s1 + $0x380] sm:$0xff]  }
  0x49   :  { %2579 = vmatpush3.bf16.msra.mxu1 %v2823_v25  ;;  %v486_v25 = vrot.slane %v18_v24, %v3062_v34 }
  0x4a   :  { %2580 = vmatprep.subr.bf16.mxu1 %v2826_v28  ;;  %v2881_v28 = vld [vmem:[%s3604_s1 + $0x478] sm:$0xff]  }
  0x4b   :  { %2559 = vmatpush3.bf16.msra.mxu0 %v2825_v27  ;;  %v479_v27 = vcombine.high %v18_v24, %v18_v24  ;;  %v2933_v24 = vld [vmem:[%s3604_s1 + $0x5d8] sm:$0xff]  }
  0x4c   :  { %2560 = vmatprep.subr.bf16.mxu0 %v2828_v30 }
  0x4d   :  { %2581 = vmatpush3.bf16.msra.mxu1 %v2827_v29  ;;  %v494_v29 = vcombine.high %v486_v25, %v486_v25  ;;  %v493_v30 = vrot.slane %v479_v27, %v3062_v34  ;;  %v2936_v27 = vld [vmem:[%s3604_s1 + $0x510] sm:$0xff]  }
  0x4e   :  { %2582 = vmatprep.subr.bf16.mxu1 %v2830_v32  ;;  %v2884_v32 = vld [vmem:[%s3604_s1 + $0x4f8] sm:$0xff]  }
  0x4f   :  { %2561 = vmatpush3.bf16.msra.mxu0 %v2829_v31  ;;  %v2883_v31 = vld [vmem:[%s3604_s1 + $0x438] sm:$0xff]  }
  0x50   :  { %2562 = vmatprep.subr.bf16.mxu0 %v2832_v35  ;;  %v2885_v35 = vld [vmem:[%s3604_s1 + $0x4b8] sm:$0xff]  }
  0x51   :  { %2583 = vmatpush3.bf16.msra.mxu1 %v2831_v33  ;;  %v495_v33 = vcombine.high %v493_v30, %v493_v30 }
  0x52   :  { %2584 = vmatprep.subr.bf16.mxu1 %v2834_v37  ;;  %v2887_v37 = vld [vmem:[%s3604_s1 + $0x430] sm:$0xff]  }
  0x53   :  { %2563 = vmatpush3.bf16.msra.mxu0 %v2833_v36  ;;  %v2886_v36 = vld [vmem:[%s3604_s1 + $0x470] sm:$0xff]  }
  0x54   :  { %2564 = vmatprep.subr.bf16.mxu0 %v2836_v39  ;;  %v2889_v39 = vld [vmem:[%s3604_s1 + $0x4b0] sm:$0xff]  }
  0x55   :  { %2585 = vmatpush3.bf16.msra.mxu1 %v2835_v38  ;;  %v2888_v38 = vld [vmem:[%s3604_s1 + $0x4f0] sm:$0xff]  }
  0x56   :  { %2586 = vmatprep.subr.bf16.mxu1 %v2838_v41  ;;  %v2891_v41 = vld [vmem:[%s3604_s1 + $0x428] sm:$0xff]  }
  0x57   :  { %2565 = vmatpush3.bf16.msra.mxu0 %v2837_v40  ;;  %v2890_v40 = vld [vmem:[%s3604_s1 + $0x468] sm:$0xff]  }
  0x58   :  { %2566 = vmatprep.subr.bf16.mxu0 %v2840_v43  ;;  %v2893_v43 = vld [vmem:[%s3604_s1 + $0x4a8] sm:$0xff]  }
  0x59   :  { %2587 = vmatpush3.bf16.msra.mxu1 %v2839_v42  ;;  %v2892_v42 = vld [vmem:[%s3604_s1 + $0x4e8] sm:$0xff]  }
  0x5a   :  { %2588 = vmatprep.subr.bf16.mxu1 %v2842_v45  ;;  %v2895_v45 = vld [vmem:[%s3604_s1 + $0x420] sm:$0xff]  }
  0x5b   :  { %2567 = vmatpush3.bf16.msra.mxu0 %v2841_v44  ;;  %v2894_v44 = vld [vmem:[%s3604_s1 + $0x460] sm:$0xff]  }
  0x5c   :  { %2568 = vmatprep.subr.bf16.mxu0 %v2844_v47  ;;  %v2897_v47 = vld [vmem:[%s3604_s1 + $0x4a0] sm:$0xff]  }
  0x5d   :  { %2589 = vmatpush3.bf16.msra.mxu1 %v2843_v46  ;;  %v2896_v46 = vld [vmem:[%s3604_s1 + $0x4e0] sm:$0xff]  }
  0x5e   :  { %2590 = vmatprep.subr.bf16.mxu1 %v2846_v49  ;;  %v2899_v49 = vld [vmem:[%s3604_s1 + $0x418] sm:$0xff]  }
  0x5f   :  { %2569 = vmatpush3.bf16.msra.mxu0 %v2845_v48  ;;  %v2898_v48 = vld [vmem:[%s3604_s1 + $0x458] sm:$0xff]  }
  0x60   :  { %2598 = vmatprep.subr.bf16.mxu0 %v2848_v54  ;;  %v2904_v54 = vld [vmem:[%s3604_s1 + $0x4d0] sm:$0xff]  }
  0x61   :  { %2591 = vmatpush3.bf16.msra.mxu1 %v2847_v52  ;;  %v2902_v52 = vld [vmem:[%s3604_s1 + $0x450] sm:$0xff]  }
  0x62   :  { %1934 = vmatmul.mubr.bf16.vlgmr.msra.gmra.mxu0 %v469_v51  ;;  %2620 = vmatprep.subr.bf16.mxu1 %v2851_v58  ;;  %v2901_v51 = vld [vmem:[%s3604_s1 + $0x498] sm:$0xff]   ;;  %v2908_v58 = vld [vmem:[%s3604_s1 + $0x4c8] sm:$0xff]  }
  0x63   :  { %2599 = vmatpush3.bf16.msra.mxu0 %v2850_v57  ;;  %2013 = vmatprep.mubr.bf16.mxu0 %v494_v29  ;;  %v2907_v57 = vld [vmem:[%s3604_s1 + $0x408] sm:$0xff]   ;;  %v2938_v29 = vld [vmem:[%s3604_s1 + $0x590] sm:$0xff]  }
  0x64   :  { %1974 = vmatmul.mubr.bf16.vlgmr.msra.gmra.mxu1 %v476_v56  ;;  %2600 = vmatprep.subr.bf16.mxu0 %v2853_v61  ;;  %v2906_v56 = vld [vmem:[%s3604_s1 + $0x448] sm:$0xff]   ;;  %v2911_v61 = vld [vmem:[%s3604_s1 + $0x400] sm:$0xff]  }
  0x65   :  { %2621 = vmatpush3.bf16.msra.mxu1 %v2852_v60  ;;  %2053 = vmatprep.mubr.bf16.mxu1 %v495_v33  ;;  %v2910_v60 = vld [vmem:[%s3604_s1 + $0x440] sm:$0xff]   ;;  %v2942_v33 = vld [vmem:[%s3604_s1 + $0x588] sm:$0xff]  }
  0x66   :  { %2622 = vmatprep.subr.bf16.mxu1 %v2855_v63  ;;  %v19_v63 = vld [vmem:[%s3605_s0 + $0x20] sm:$0xff] }
  0x67   :  { %2601 = vmatpush3.bf16.msra.mxu0 %v2854_v62  ;;  %v2912_v62 = vld [vmem:[%s3604_s1 + $0x4c0] sm:$0xff]  }
  0x68   :  { %2602 = vmatprep.subr.bf16.mxu0 %v2857_v1  ;;  %v2913_v1 = vld [vmem:[%s3604_s1 + $0x480] sm:$0xff]  }
  0x69   :  { %2623 = vmatpush3.bf16.msra.mxu1 %v2856_v0  ;;  %v503_v0 = vrot.slane %v19_v63, %v3062_v34 }
  0x6a   :  { %2624 = vmatprep.subr.bf16.mxu1 %v2859_v3  ;;  %v2914_v3 = vld [vmem:[%s3604_s1 + $0x578] sm:$0xff]  }
  0x6b   :  { %2603 = vmatpush3.bf16.msra.mxu0 %v2858_v2  ;;  %v496_v2 = vcombine.high %v19_v63, %v19_v63 }
  0x6c   :  { %2604 = vmatprep.subr.bf16.mxu0 %v2861_v5 }
  0x6d   :  { %2625 = vmatpush3.bf16.msra.mxu1 %v2860_v4  ;;  %v511_v4 = vcombine.high %v503_v0, %v503_v0  ;;  %v510_v5 = vrot.slane %v496_v2, %v3062_v34 }
  0x6e   :  { %2626 = vmatprep.subr.bf16.mxu1 %v2863_v7  ;;  %v2917_v7 = vld [vmem:[%s3604_s1 + $0x5f8] sm:$0xff]  }
  0x6f   :  { %2605 = vmatpush3.bf16.msra.mxu0 %v2862_v6  ;;  %v2916_v6 = vld [vmem:[%s3604_s1 + $0x538] sm:$0xff]  }
  0x70   :  { %2606 = vmatprep.subr.bf16.mxu0 %v2865_v9  ;;  %v2918_v9 = vld [vmem:[%s3604_s1 + $0x5b8] sm:$0xff]  }
  0x71   :  { %2627 = vmatpush3.bf16.msra.mxu1 %v2864_v8  ;;  %v512_v8 = vcombine.high %v510_v5, %v510_v5 }
  0x72   :  { %2628 = vmatprep.subr.bf16.mxu1 %v2867_v11  ;;  %v2920_v11 = vld [vmem:[%s3604_s1 + $0x530] sm:$0xff]  }
  0x73   :  { %2607 = vmatpush3.bf16.msra.mxu0 %v2866_v10  ;;  %v2919_v10 = vld [vmem:[%s3604_s1 + $0x570] sm:$0xff]  }
  0x74   :  { %2608 = vmatprep.subr.bf16.mxu0 %v2869_v13  ;;  %v2922_v13 = vld [vmem:[%s3604_s1 + $0x5b0] sm:$0xff]  }
  0x75   :  { %2629 = vmatpush3.bf16.msra.mxu1 %v2868_v12  ;;  %v2921_v12 = vld [vmem:[%s3604_s1 + $0x5f0] sm:$0xff]  }
  0x76   :  { %2630 = vmatprep.subr.bf16.mxu1 %v2871_v15  ;;  %v2924_v15 = vld [vmem:[%s3604_s1 + $0x528] sm:$0xff]  }
  0x77   :  { %2609 = vmatpush3.bf16.msra.mxu0 %v2870_v14  ;;  %v2923_v14 = vld [vmem:[%s3604_s1 + $0x568] sm:$0xff]  }
  0x78   :  { %2610 = vmatprep.subr.bf16.mxu0 %v2873_v17  ;;  %v2926_v17 = vld [vmem:[%s3604_s1 + $0x5a8] sm:$0xff]  }
  0x79   :  { %2631 = vmatpush3.bf16.msra.mxu1 %v2872_v16  ;;  %v2925_v16 = vld [vmem:[%s3604_s1 + $0x5e8] sm:$0xff]  }
  0x7a   :  { %2632 = vmatprep.subr.bf16.mxu1 %v2875_v19  ;;  %v2928_v19 = vld [vmem:[%s3604_s1 + $0x520] sm:$0xff]  }
  0x7b   :  { %2611 = vmatpush3.bf16.msra.mxu0 %v2874_v18  ;;  %v2927_v18 = vld [vmem:[%s3604_s1 + $0x560] sm:$0xff]  }
  0x7c   :  { %2612 = vmatprep.subr.bf16.mxu0 %v2877_v21  ;;  %v2930_v21 = vld [vmem:[%s3604_s1 + $0x5a0] sm:$0xff]  }
  0x7d   :  { %2633 = vmatpush3.bf16.msra.mxu1 %v2876_v20  ;;  %v2929_v20 = vld [vmem:[%s3604_s1 + $0x5e0] sm:$0xff]  }
  0x7e   :  { %2634 = vmatprep.subr.bf16.mxu1 %v2879_v23  ;;  %v2932_v23 = vld [vmem:[%s3604_s1 + $0x518] sm:$0xff]  }
  0x7f   :  { %2613 = vmatpush3.bf16.msra.mxu0 %v2878_v22  ;;  %v2931_v22 = vld [vmem:[%s3604_s1 + $0x558] sm:$0xff]  }
  0x80   :  { %2642 = vmatprep.subr.bf16.mxu0 %v2881_v28  ;;  %v2937_v28 = vld [vmem:[%s3604_s1 + $0x5d0] sm:$0xff]  }
  0x81   :  { %2635 = vmatpush3.bf16.msra.mxu1 %v2880_v26  ;;  %v2935_v26 = vld [vmem:[%s3604_s1 + $0x550] sm:$0xff]  }
  0x82   :  { %2014 = vmatmul.mubr.bf16.vlgmr.msra.gmra.mxu0 %v486_v25  ;;  %2664 = vmatprep.subr.bf16.mxu1 %v2884_v32  ;;  %v2934_v25 = vld [vmem:[%s3604_s1 + $0x598] sm:$0xff]   ;;  %v2941_v32 = vld [vmem:[%s3604_s1 + $0x5c8] sm:$0xff]  }
  0x83   :  { %2643 = vmatpush3.bf16.msra.mxu0 %v2883_v31  ;;  %2093 = vmatprep.mubr.bf16.mxu0 %v511_v4  ;;  %v2940_v31 = vld [vmem:[%s3604_s1 + $0x508] sm:$0xff]  }
  0x84   :  { %2054 = vmatmul.mubr.bf16.vlgmr.msra.gmra.mxu1 %v493_v30  ;;  %2644 = vmatprep.subr.bf16.mxu0 %v2886_v36  ;;  %v2939_v30 = vld [vmem:[%s3604_s1 + $0x548] sm:$0xff]   ;;  %v2944_v36 = vld [vmem:[%s3604_s1 + $0x500] sm:$0xff]  }
  0x85   :  { %2665 = vmatpush3.bf16.msra.mxu1 %v2885_v35  ;;  %2133 = vmatprep.mubr.bf16.mxu1 %v512_v8  ;;  %v2943_v35 = vld [vmem:[%s3604_s1 + $0x540] sm:$0xff]  }
  0x86   :  { %2666 = vmatprep.subr.bf16.mxu1 %v2888_v38  ;;  %v20_v38 = vld [vmem:[%s3605_s0 + $0x28] sm:$0xff] }
  0x87   :  { %2645 = vmatpush3.bf16.msra.mxu0 %v2887_v37  ;;  %v2945_v37 = vld [vmem:[%s3604_s1 + $0x5c0] sm:$0xff]  }
  0x88   :  { %2646 = vmatprep.subr.bf16.mxu0 %v2890_v40  ;;  %v2946_v40 = vld [vmem:[%s3604_s1 + $0x580] sm:$0xff]  }
  0x89   :  { %2667 = vmatpush3.bf16.msra.mxu1 %v2889_v39  ;;  %v520_v39 = vrot.slane %v20_v38, %v3062_v34 }
  0x8a   :  { %2668 = vmatprep.subr.bf16.mxu1 %v2892_v42 }
  0x8b   :  { %2647 = vmatpush3.bf16.msra.mxu0 %v2891_v41  ;;  %v513_v41 = vcombine.high %v20_v38, %v20_v38  ;;  %v528_v42 = vcombine.high %v520_v39, %v520_v39 }
  0x8c   :  { %2648 = vmatprep.subr.bf16.mxu0 %v2894_v44  ;;  %v2948_v44 = vld [vmem:[%s3604_s1 + $0x618] sm:$0xff]  }
  0x8d   :  { %2669 = vmatpush3.bf16.msra.mxu1 %v2893_v43  ;;  %v527_v43 = vrot.slane %v513_v41, %v3062_v34  ;;  %v2950_v34 = vld [vmem:[%s3604_s1 + $0x608] sm:$0xff]  }
  0x8e   :  { %2670 = vmatprep.subr.bf16.mxu1 %v2896_v46 }
  0x8f   :  { %2649 = vmatpush3.bf16.msra.mxu0 %v2895_v45  ;;  %v2953_v45 = vmov 0.0   ;;  %v529_v46 = vcombine.high %v527_v43, %v527_v43 }
  0x90   :  { %2650 = vmatprep.subr.bf16.mxu0 %v2898_v48  ;;  %v2951_v48 = vld [vmem:[%s3604_s1 + $0x600] sm:$0xff]  }
  0x91   :  { %2671 = vmatpush3.bf16.msra.mxu1 %v2897_v47  ;;  %v2949_v47 = vld [vmem:[%s3604_s1 + $0x610] sm:$0xff]  }
  0x92   :  { %2672 = vmatprep.subr.bf16.mxu1 %v2900_v50 }
  0x93   :  { %2651 = vmatpush3.bf16.msra.mxu0 %v2899_v49  ;;  %v2268_v49 = vld.sshfl [vmem:[%s3605_s0 + $0x30] sm:$0x3 pattern:$0x76325410] }
  0x94   :  { %2652 = vmatprep.subr.bf16.mxu0 %v2902_v52 }
  0x95   :  { %2673 = vmatpush3.bf16.msra.mxu1 %v2901_v51  ;;  %v2267_v51 = vld [vmem:[%s3606_s2] ss:$0 sm:$0xff] }
  0x96   :  { %2674 = vmatprep.subr.bf16.mxu1 %v2904_v54 }
  0x97   :  { %2653 = vmatpush3.bf16.msra.mxu0 %v2903_v53 }
  0x98   :  { %2654 = vmatprep.subr.bf16.mxu0 %v2906_v56 }
  0x99   :  { %2675 = vmatpush3.bf16.msra.mxu1 %v2905_v55 }
  0x9a   :  { %2676 = vmatprep.subr.bf16.mxu1 %v2908_v58 }
  0x9b   :  { %2655 = vmatpush3.bf16.msra.mxu0 %v2907_v57 }
  0x9c   :  { %2656 = vmatprep.subr.bf16.mxu0 %v2910_v60 }
  0x9d   :  { %2677 = vmatpush3.bf16.msra.mxu1 %v2909_v59 }
  0x9e   :  { %2678 = vmatprep.subr.bf16.mxu1 %v2912_v62 }
  0x9f   :  { %2657 = vmatpush3.bf16.msra.mxu0 %v2911_v61 }
  0xa0   :  { %2686 = vmatprep.subr.bf16.mxu0 %v2914_v3 }
  0xa1   :  { %2679 = vmatpush3.bf16.msra.mxu1 %v2913_v1 }
  0xa2   :  { %2094 = vmatmul.mubr.bf16.vlgmr.msra.gmra.mxu0 %v503_v0  ;;  %2708 = vmatprep.subr.bf16.mxu1 %v2917_v7 }
  0xa3   :  { %2687 = vmatpush3.bf16.msra.mxu0 %v2916_v6  ;;  %2173 = vmatprep.mubr.bf16.mxu0 %v528_v42 }
  0xa4   :  { %2134 = vmatmul.mubr.bf16.vlgmr.msra.gmra.mxu1 %v510_v5  ;;  %2688 = vmatprep.subr.bf16.mxu0 %v2919_v10 }
  0xa5   :  { %2709 = vmatpush3.bf16.msra.mxu1 %v2918_v9  ;;  %2213 = vmatprep.mubr.bf16.mxu1 %v529_v46 }
  0xa6   :  { %2710 = vmatprep.subr.bf16.mxu1 %v2921_v12 }
  0xa7   :  { %2689 = vmatpush3.bf16.msra.mxu0 %v2920_v11 }
  0xa8   :  { %2690 = vmatprep.subr.bf16.mxu0 %v2923_v14 }
  0xa9   :  { %2711 = vmatpush3.bf16.msra.mxu1 %v2922_v13 }
  0xaa   :  { %2712 = vmatprep.subr.bf16.mxu1 %v2925_v16 }
  0xab   :  { %2691 = vmatpush3.bf16.msra.mxu0 %v2924_v15 }
  0xac   :  { %2692 = vmatprep.subr.bf16.mxu0 %v2927_v18 }
  0xad   :  { %2713 = vmatpush3.bf16.msra.mxu1 %v2926_v17 }
  0xae   :  { %2714 = vmatprep.subr.bf16.mxu1 %v2929_v20 }
  0xaf   :  { %2693 = vmatpush3.bf16.msra.mxu0 %v2928_v19 }
  0xb0   :  { %2694 = vmatprep.subr.bf16.mxu0 %v2931_v22 }
  0xb1   :  { %2715 = vmatpush3.bf16.msra.mxu1 %v2930_v21 }
  0xb2   :  { %2716 = vmatprep.subr.bf16.mxu1 %v2933_v24 }
  0xb3   :  { %2695 = vmatpush3.bf16.msra.mxu0 %v2932_v23 }
  0xb4   :  { %2696 = vmatprep.subr.bf16.mxu0 %v2935_v26 }
  0xb5   :  { %2717 = vmatpush3.bf16.msra.mxu1 %v2934_v25 }
  0xb6   :  { %2718 = vmatprep.subr.bf16.mxu1 %v2937_v28 }
  0xb7   :  { %2697 = vmatpush3.bf16.msra.mxu0 %v2936_v27 }
  0xb8   :  { %2698 = vmatprep.subr.bf16.mxu0 %v2939_v30 }
  0xb9   :  { %2719 = vmatpush3.bf16.msra.mxu1 %v2938_v29 }
  0xba   :  { %2720 = vmatprep.subr.bf16.mxu1 %v2941_v32 }
  0xbb   :  { %2699 = vmatpush3.bf16.msra.mxu0 %v2940_v31 }
  0xbc   :  { %2700 = vmatprep.subr.bf16.mxu0 %v2943_v35 }
  0xbd   :  { %2721 = vmatpush3.bf16.msra.mxu1 %v2942_v33 }
  0xbe   :  { %2722 = vmatprep.subr.bf16.mxu1 %v2945_v37 }
  0xbf   :  { %2701 = vmatpush3.bf16.msra.mxu0 %v2944_v36 }
  0xc0   :  { %2735 = vmatprep.subr.bf16.mxu0 %v2953_v45 }
  0xc1   :  { %2723 = vmatpush3.bf16.msra.mxu1 %v2946_v40 }
  0xc2   :  { %2174 = vmatmul.mubr.bf16.vlgmr.msra.gmra.mxu0 %v520_v39 }
  0xc3   :  { %2736 = vmatpush3.bf16.msra.mxu0 %v2948_v44  ;;  %2743 = vmatprep.mubr.msk.bf16.mxu0 %vm2954_vm0, %v2953_v45 }
  0xc4   :  { %2214 = vmatmul.mubr.bf16.vlgmr.msra.gmra.mxu1 %v527_v43  ;;  %2737 = vmatprep.subr.bf16.mxu0 %v2953_v45 }
  0xc7   :  { %2738 = vmatpush3.bf16.msra.mxu0 %v2949_v47 }
  0xc8   :  { %2739 = vmatprep.subr.bf16.mxu0 %v2953_v45 }
  0xcb   :  { %2740 = vmatpush3.bf16.msra.mxu0 %v2950_v34 }
  0xcc   :  { %2741 = vmatprep.subr.bf16.mxu0 %v2953_v45 }
  0xcf   :  { %2742 = vmatpush3.bf16.msra.mxu0 %v2951_v48 }
  0xd2   :  { %2744 = vmatmul.mubr.msk.bf16.vlgmr.msra.gmra.mxu0 %vm1737_vm1, %v2268_v49 }
  0xe2   :  { %v2482_v50 = vpop.f32.mrf.mxu0 }
  0xe4   :  { %v2483_v52 = vpop.f32.mrf.mxu0  ;;  %v2504_v53 = vpop.f32.mrf.mxu1 }
  0xe5   :  { %v2484_v54 = vadd.f32 %v2483_v52, %v2482_v50 }
  0xe6   :  { %v2485_v55 = vpop.f32.mrf.mxu0  ;;  %v2505_v56 = vpop.f32.mrf.mxu1 }
  0xe7   :  { %v1776_v57 = vadd.f32 %v2484_v54, %v2267_v51  ;;  %v2506_v58 = vadd.f32 %v2505_v56, %v2504_v53 }
  0xe8   :  { %v2486_v59 = vpop.f32.mrf.mxu0  ;;  %v2507_v60 = vpop.f32.mrf.mxu1 }
  0xe9   :  { %v1816_v61 = vadd.f32 %v2506_v58, %v1776_v57 }
  0xea   :  { %v2508_v62 = vpop.f32.mrf.mxu1 }
 0x102   :  { %v2526_v63 = vpop.f32.mrf.mxu0 }
 0x104   :  { %v2527_v0 = vpop.f32.mrf.mxu0  ;;  %v2548_v1 = vpop.f32.mrf.mxu1 }
 0x105   :  { %v2528_v2 = vadd.f32 %v2527_v0, %v2526_v63 }
 0x106   :  { %v2529_v3 = vpop.f32.mrf.mxu0  ;;  %v2549_v4 = vpop.f32.mrf.mxu1 }
 0x107   :  { %v1856_v5 = vadd.f32 %v2528_v2, %v1816_v61  ;;  %v2550_v6 = vadd.f32 %v2549_v4, %v2548_v1 }
 0x108   :  { %v2530_v7 = vpop.f32.mrf.mxu0  ;;  %v2551_v8 = vpop.f32.mrf.mxu1 }
 0x109   :  { %v1896_v9 = vadd.f32 %v2550_v6, %v1856_v5 }
 0x10a   :  { %v2552_v10 = vpop.f32.mrf.mxu1 }
 0x122   :  { %v2570_v11 = vpop.f32.mrf.mxu0 }
 0x124   :  { %v2571_v12 = vpop.f32.mrf.mxu0  ;;  %v2592_v13 = vpop.f32.mrf.mxu1 }
 0x125   :  { %v2572_v14 = vadd.f32 %v2571_v12, %v2570_v11 }
 0x126   :  { %v2573_v15 = vpop.f32.mrf.mxu0  ;;  %v2593_v16 = vpop.f32.mrf.mxu1 }
 0x127   :  { %v1936_v17 = vadd.f32 %v2572_v14, %v1896_v9  ;;  %v2594_v18 = vadd.f32 %v2593_v16, %v2592_v13 }
 0x128   :  { %v2574_v19 = vpop.f32.mrf.mxu0  ;;  %v2595_v20 = vpop.f32.mrf.mxu1 }
 0x129   :  { %v1976_v21 = vadd.f32 %v2594_v18, %v1936_v17 }
 0x12a   :  { %v2596_v22 = vpop.f32.mrf.mxu1 }
 0x142   :  { %v2614_v23 = vpop.f32.mrf.mxu0 }
 0x144   :  { %v2615_v24 = vpop.f32.mrf.mxu0  ;;  %v2636_v25 = vpop.f32.mrf.mxu1 }
 0x145   :  { %v2616_v26 = vadd.f32 %v2615_v24, %v2614_v23 }
 0x146   :  { %v2617_v27 = vpop.f32.mrf.mxu0  ;;  %v2637_v28 = vpop.f32.mrf.mxu1 }
 0x147   :  { %v2016_v29 = vadd.f32 %v2616_v26, %v1976_v21  ;;  %v2638_v30 = vadd.f32 %v2637_v28, %v2636_v25 }
 0x148   :  { %v2618_v31 = vpop.f32.mrf.mxu0  ;;  %v2639_v32 = vpop.f32.mrf.mxu1 }
 0x149   :  { %v2056_v33 = vadd.f32 %v2638_v30, %v2016_v29 }
 0x14a   :  { %v2640_v35 = vpop.f32.mrf.mxu1 }
 0x162   :  { %v2658_v36 = vpop.f32.mrf.mxu0 }
 0x164   :  { %v2659_v37 = vpop.f32.mrf.mxu0  ;;  %v2680_v38 = vpop.f32.mrf.mxu1 }
 0x165   :  { %v2660_v45 = vadd.f32 %v2659_v37, %v2658_v36 }
 0x166   :  { %v2661_v39 = vpop.f32.mrf.mxu0  ;;  %v2681_v40 = vpop.f32.mrf.mxu1 }
 0x167   :  { %v2096_v49 = vadd.f32 %v2660_v45, %v2056_v33  ;;  %v2682_v50 = vadd.f32 %v2681_v40, %v2680_v38 }
 0x168   :  { %v2662_v41 = vpop.f32.mrf.mxu0  ;;  %v2683_v42 = vpop.f32.mrf.mxu1 }
 0x169   :  { %v2136_v55 = vadd.f32 %v2682_v50, %v2096_v49 }
 0x16a   :  { %v2684_v43 = vpop.f32.mrf.mxu1 }
 0x182   :  { %v2702_v44 = vpop.f32.mrf.mxu0 }
 0x184   :  { %v2703_v46 = vpop.f32.mrf.mxu0  ;;  %v2724_v47 = vpop.f32.mrf.mxu1 }
 0x185   :  { %v2704_v53 = vadd.f32 %v2703_v46, %v2702_v44 }
 0x186   :  { %v2705_v34 = vpop.f32.mrf.mxu0  ;;  %v2725_v48 = vpop.f32.mrf.mxu1 }
 0x187   :  { %v2176_v56 = vadd.f32 %v2704_v53, %v2136_v55  ;;  %v2726_v57 = vadd.f32 %v2725_v48, %v2724_v47 }
 0x188   :  { %v2706_v51 = vpop.f32.mrf.mxu0  ;;  %v2727_v52 = vpop.f32.mrf.mxu1 }
 0x189   :  { %v2216_v58 = vadd.f32 %v2726_v57, %v2176_v56 }
 0x18a   :  { %v2728_v54 = vpop.f32.mrf.mxu1 }
 0x192   :  { %v2255_v59 = vpop.f32.mrf.mxu0 }
 0x193   :  { %v2256_v60 = vadd.f32 %v2255_v59, %v2216_v58 }
 0x194   :  { %v2745_v61 = vpop.f32.mrf.mxu0 }
 0x195   :  { %2262 = vst.msk [vmem:[%s3607_s3] sm:$0xf] %vm2261_vm2, %v2256_v60 }
 0x196   :  { %v2258_v62 = vpop.f32.mrf.mxu0 }
 0x198   :  { %v2746_v63 = vpop.f32.mrf.mxu0 }

</bundles_post_ra>
